<compile_context>
chip_gen: v5e
topology: v5e:2x2
jax: 0.10.0
libtpu: 0.0.40
codegen_flags: <defaults>
</compile_context>

<pallas_src>
import jax
import jax.numpy as jnp
from jax import lax
from jax.experimental import pallas as pl
from jax.experimental.pallas import tpu as pltpu
import numpy as np

# --- model config (from train.py) ---
VOCAB_SIZE = 65          # sorted(set(text)) for tiny-shakespeare; fixed deterministically
N_EMBD = 64
N_HEAD = 4
HEAD_SIZE = N_EMBD // N_HEAD
N_LAYER = 4
BLOCK_SIZE = 32
EPS = 1e-5               # nn.LayerNorm default
V_PAD = 128              # lane-dense padded vocab for the kernel output


def _layernorm(x, gamma, beta):
    mean = jnp.mean(x, axis=-1, keepdims=True)
    var = jnp.mean((x - mean) ** 2, axis=-1, keepdims=True)
    return (x - mean) * lax.rsqrt(var + EPS) * gamma + beta


def _softmax_rows(w):
    m = jnp.max(w, axis=-1, keepdims=True)
    e = jnp.exp(w - m)
    return e / jnp.sum(e, axis=-1, keepdims=True)


# ------------------------------ fused kernel -------------------------------

def fused_forward_kernel(
    x_ref,                                  # (T, C)   activation for this batch element
    ln1g_ref, ln1b_ref,                     # (L, C)
    wqkv_ref,                               # (L, C, 3C)  fused q|k|v projection
    wo_ref, bo_ref,                         # (L, C, C), (L, C)
    ln2g_ref, ln2b_ref,                     # (L, C)
    w1_ref, b1_ref,                         # (L, C, 4C), (L, 4C)
    w2_ref, b2_ref,                         # (L, 4C, C), (L, C)
    lnfg_ref, lnfb_ref,                     # (1, C)
    lmw_ref, lmb_ref,                       # (C, V_PAD), (1, V_PAD)
    o_ref,                                  # (T, V_PAD)
):
    x = x_ref[...].astype(jnp.float32)      # (T, C)
    T = x.shape[0]

    # causal mask + scale: hoisted once per kernel invocation (shared by all layers)
    row = lax.broadcasted_iota(jnp.int32, (T, T), 0)
    col = lax.broadcasted_iota(jnp.int32, (T, T), 1)
    causal = (row >= col)[None]             # (1, T, T) -> broadcast over heads
    scale = float(N_EMBD) ** -0.5           # reference scales by C**-0.5 with C = n_embd

    for l in range(N_LAYER):                # static unroll over layers
        # ---- multi-head causal self-attention on ln1(x) ----
        h = _layernorm(x, ln1g_ref[l], ln1b_ref[l])
        qkv = jnp.dot(h, wqkv_ref[l], preferred_element_type=jnp.float32)   # (T, 3C)
        q = qkv[:, 0 * N_EMBD:1 * N_EMBD]
        k = qkv[:, 1 * N_EMBD:2 * N_EMBD]
        v = qkv[:, 2 * N_EMBD:3 * N_EMBD]

        qh = q.reshape(T, N_HEAD, HEAD_SIZE).transpose(1, 0, 2)             # (H, T, D)
        kh = k.reshape(T, N_HEAD, HEAD_SIZE).transpose(1, 0, 2)
        vh = v.reshape(T, N_HEAD, HEAD_SIZE).transpose(1, 0, 2)

        # batched over heads, contracting last dims (no kh.T materialization)
        wei = lax.dot_general(qh, kh, (((2,), (2,)), ((0,), (0,))),
                              preferred_element_type=jnp.float32) * scale   # (H, T, T)
        wei = jnp.where(causal, wei, -jnp.inf)
        wei = _softmax_rows(wei)
        att = lax.dot_general(wei, vh, (((2,), (1,)), ((0,), (0,))),
                              preferred_element_type=jnp.float32)           # (H, T, D)
        att = att.transpose(1, 0, 2).reshape(T, N_EMBD)                     # (T, C)

        att = jnp.dot(att, wo_ref[l], preferred_element_type=jnp.float32) + bo_ref[l]
        x = x + att                                                         # dropout = 0.0

        # ---- feed-forward on ln2(x) ----
        h2 = _layernorm(x, ln2g_ref[l], ln2b_ref[l])
        ff = jnp.dot(h2, w1_ref[l], preferred_element_type=jnp.float32) + b1_ref[l]
        ff = jnp.maximum(ff, 0.0)
        ff = jnp.dot(ff, w2_ref[l], preferred_element_type=jnp.float32) + b2_ref[l]
        x = x + ff

    # ---- final LayerNorm + lm_head (padded to 128 lanes, unmasked stores) ----
    h = _layernorm(x, lnfg_ref[...], lnfb_ref[...])
    logits = jnp.dot(h, lmw_ref[...], preferred_element_type=jnp.float32) + lmb_ref[...]
    o_ref[...] = logits.astype(o_ref.dtype)


# -------------------------------- wrapper -----------------------------------

def _full_spec(shape):
    """Grid-invariant full-array block (explicit per-rank index_map)."""
    if len(shape) == 1:
        return pl.BlockSpec(shape, lambda b: (0,))
    if len(shape) == 2:
        return pl.BlockSpec(shape, lambda b: (0, 0))
    if len(shape) == 3:
        return pl.BlockSpec(shape, lambda b: (0, 0, 0))
    raise ValueError(f"unsupported rank for weight spec: {shape}")


def bigram_lm_forward(params, idx):
    """Pallas forward pass. Returns logits (B, T, vocab); loss is None (no targets)."""
    B, T = idx.shape
    # TODO(synk): nn.Embedding gather has no rectangular BlockSpec form; done with JAX indexing.
    tok = params["tok_emb"][idx]                    # (B, T, C)
    pos = params["pos_emb"][:T]                     # (T, C)
    x = (tok + pos[None]).astype(jnp.float32)

    # Host-side weight prep (one-time): fused QKV + lane-padded lm_head.
    wqkv = jnp.concatenate([params["wq"], params["wk"], params["wv"]], axis=-1)  # (L, C, 3C)
    lm_w_pad = jnp.pad(params["lm_w"], ((0, 0), (0, V_PAD - VOCAB_SIZE)))
    lm_b_pad = jnp.pad(params["lm_b"], ((0, 0), (0, V_PAD - VOCAB_SIZE)))

    weights = (
        params["ln1_g"], params["ln1_b"],
        wqkv,
        params["wo"], params["bo"],
        params["ln2_g"], params["ln2_b"],
        params["w1"], params["b1"], params["w2"], params["b2"],
        params["lnf_g"], params["lnf_b"],
        lm_w_pad, lm_b_pad,
    )

    in_specs = [pl.BlockSpec((None, T, N_EMBD), lambda b: (b, 0, 0))]   # batch dim squeezed
    in_specs += [_full_spec(w.shape) for w in weights]

    logits_pad = pl.pallas_call(
        fused_forward_kernel,
        out_shape=jax.ShapeDtypeStruct((B, T, V_PAD), jnp.float32),
        grid=(B,),
        in_specs=in_specs,
        out_specs=pl.BlockSpec((None, T, V_PAD), lambda b: (b, 0, 0)),
        compiler_params=pltpu.CompilerParams(dimension_semantics=("parallel",)),
    )(x, *weights)

    return logits_pad[:, :, :VOCAB_SIZE]


# --------------------------- deterministic params ---------------------------

def init_params(key):
    def nrm(k, shape, scale=0.02):
        return scale * jax.random.normal(k, shape, jnp.float32)

    keys = iter(jax.random.split(key, 32))
    C, F = N_EMBD, 4 * N_EMBD
    params = {
        "tok_emb": nrm(next(keys), (VOCAB_SIZE, C)),
        "pos_emb": nrm(next(keys), (BLOCK_SIZE, C)),
        # per-layer params stacked on a leading layer axis
        "ln1_g": jnp.ones((N_LAYER, C), jnp.float32),
        "ln1_b": jnp.zeros((N_LAYER, C), jnp.float32),
        "wq": nrm(next(keys), (N_LAYER, C, C)),
        "wk": nrm(next(keys), (N_LAYER, C, C)),
        "wv": nrm(next(keys), (N_LAYER, C, C)),
        "wo": nrm(next(keys), (N_LAYER, C, C)),
        "bo": nrm(next(keys), (N_LAYER, C)),
        "ln2_g": jnp.ones((N_LAYER, C), jnp.float32),
        "ln2_b": jnp.zeros((N_LAYER, C), jnp.float32),
        "w1": nrm(next(keys), (N_LAYER, C, F)),
        "b1": nrm(next(keys), (N_LAYER, F)),
        "w2": nrm(next(keys), (N_LAYER, F, C)),
        "b2": nrm(next(keys), (N_LAYER, C)),
        # final
        "lnf_g": jnp.ones((1, C), jnp.float32),
        "lnf_b": jnp.zeros((1, C), jnp.float32),
        "lm_w": nrm(next(keys), (C, VOCAB_SIZE)),
        "lm_b": nrm(next(keys), (1, VOCAB_SIZE)),
    }
    return params


# --------------------------- pure-JAX reference ------------------------------

def reference_forward(params, idx):
    B, T = idx.shape
    x = (params["tok_emb"][idx] + params["pos_emb"][:T][None]).astype(jnp.float32)
    mask = jnp.tril(jnp.ones((T, T), bool))
    scale = float(N_EMBD) ** -0.5
    for l in range(N_LAYER):
        h = _layernorm(x, params["ln1_g"][l], params["ln1_b"][l])
        q, k, v = h @ params["wq"][l], h @ params["wk"][l], h @ params["wv"][l]
        outs = []
        for hh in range(N_HEAD):
            sl = slice(hh * HEAD_SIZE, (hh + 1) * HEAD_SIZE)
            wei = (q[..., sl] @ jnp.swapaxes(k[..., sl], -1, -2)) * scale
            wei = jnp.where(mask, wei, -jnp.inf)
            wei = _softmax_rows(wei)
            outs.append(wei @ v[..., sl])
        x = x + (jnp.concatenate(outs, -1) @ params["wo"][l] + params["bo"][l])
        h2 = _layernorm(x, params["ln2_g"][l], params["ln2_b"][l])
        x = x + (jnp.maximum(h2 @ params["w1"][l] + params["b1"][l], 0.0)
                 @ params["w2"][l] + params["b2"][l])
    h = _layernorm(x, params["lnf_g"], params["lnf_b"])
    return h @ params["lm_w"] + params["lm_b"]


if __name__ == "__main__":
    key = jax.random.PRNGKey(0)
    pkey, ikey = jax.random.split(key)
    params = init_params(pkey)

    B, T = 2, 8                                   # small seq (<= block_size = 32)
    idx = jax.random.randint(ikey, (B, T), 0, VOCAB_SIZE, dtype=jnp.int32)

    logits = bigram_lm_forward(params, idx)
    logits = jax.block_until_ready(logits)
    assert logits.shape == (B, T, VOCAB_SIZE)

    ref = reference_forward(params, idx)
    np.testing.assert_allclose(np.asarray(logits), np.asarray(ref),
                               rtol=1e-3, atol=1e-3)
    print("KERNEL_OK")
</pallas_src>

<mosaic_0001>
module attributes {stable_mosaic.version = 11 : i64} {
  func.func @fused_forward_kernel(%arg0: i32, %arg1: memref<1x8x64xf32, #tpu.memory_space<vmem>>, %arg2: memref<4x64xf32, #tpu.memory_space<vmem>>, %arg3: memref<4x64xf32, #tpu.memory_space<vmem>>, %arg4: memref<4x64x192xf32, #tpu.memory_space<vmem>>, %arg5: memref<4x64x64xf32, #tpu.memory_space<vmem>>, %arg6: memref<4x64xf32, #tpu.memory_space<vmem>>, %arg7: memref<4x64xf32, #tpu.memory_space<vmem>>, %arg8: memref<4x64xf32, #tpu.memory_space<vmem>>, %arg9: memref<4x64x256xf32, #tpu.memory_space<vmem>>, %arg10: memref<4x256xf32, #tpu.memory_space<vmem>>, %arg11: memref<4x256x64xf32, #tpu.memory_space<vmem>>, %arg12: memref<4x64xf32, #tpu.memory_space<vmem>>, %arg13: memref<1x64xf32, #tpu.memory_space<vmem>>, %arg14: memref<1x64xf32, #tpu.memory_space<vmem>>, %arg15: memref<64x128xf32, #tpu.memory_space<vmem>>, %arg16: memref<1x128xf32, #tpu.memory_space<vmem>>, %arg17: memref<1x8x128xf32, #tpu.memory_space<vmem>>) attributes {dimension_semantics = [#tpu.dimension_semantics<parallel>], iteration_bounds = array<i64: 2>, scalar_prefetch = 0 : i64, scratch_operands = 0 : i64, tpu.core_type = #tpu.core_type<tc>, window_params = [{transform_indices = @transform_0, window_bounds = array<i64: 1, 8, 64>}, {pipeline_mode = #tpu.pipeline_mode<synchronous>, transform_indices = @transform_1, window_bounds = array<i64: 4, 64>}, {pipeline_mode = #tpu.pipeline_mode<synchronous>, transform_indices = @transform_2, window_bounds = array<i64: 4, 64>}, {pipeline_mode = #tpu.pipeline_mode<synchronous>, transform_indices = @transform_3, window_bounds = array<i64: 4, 64, 192>}, {pipeline_mode = #tpu.pipeline_mode<synchronous>, transform_indices = @transform_4, window_bounds = array<i64: 4, 64, 64>}, {pipeline_mode = #tpu.pipeline_mode<synchronous>, transform_indices = @transform_5, window_bounds = array<i64: 4, 64>}, {pipeline_mode = #tpu.pipeline_mode<synchronous>, transform_indices = @transform_6, window_bounds = array<i64: 4, 64>}, {pipeline_mode = #tpu.pipeline_mode<synchronous>, transform_indices = @transform_7, window_bounds = array<i64: 4, 64>}, {pipeline_mode = #tpu.pipeline_mode<synchronous>, transform_indices = @transform_8, window_bounds = array<i64: 4, 64, 256>}, {pipeline_mode = #tpu.pipeline_mode<synchronous>, transform_indices = @transform_9, window_bounds = array<i64: 4, 256>}, {pipeline_mode = #tpu.pipeline_mode<synchronous>, transform_indices = @transform_10, window_bounds = array<i64: 4, 256, 64>}, {pipeline_mode = #tpu.pipeline_mode<synchronous>, transform_indices = @transform_11, window_bounds = array<i64: 4, 64>}, {pipeline_mode = #tpu.pipeline_mode<synchronous>, transform_indices = @transform_12, window_bounds = array<i64: 1, 64>}, {pipeline_mode = #tpu.pipeline_mode<synchronous>, transform_indices = @transform_13, window_bounds = array<i64: 1, 64>}, {pipeline_mode = #tpu.pipeline_mode<synchronous>, transform_indices = @transform_14, window_bounds = array<i64: 64, 128>}, {pipeline_mode = #tpu.pipeline_mode<synchronous>, transform_indices = @transform_15, window_bounds = array<i64: 1, 128>}, {transform_indices = @transform_16, window_bounds = array<i64: 1, 8, 128>}]} {
    %c0 = arith.constant 0 : index
    %c0_0 = arith.constant 0 : index
    %c0_1 = arith.constant 0 : index
    %0 = vector.load %arg1[%c0, %c0_0, %c0_1] : memref<1x8x64xf32, #tpu.memory_space<vmem>>, vector<1x8x64xf32>
    %1 = vector.shape_cast %0 : vector<1x8x64xf32> to vector<8x64xf32>
    %2 = tpu.iota {dimensions = array<i32: 0>} : vector<8x8xi32>
    %3 = tpu.iota {dimensions = array<i32: 1>} : vector<8x8xi32>
    %4 = arith.cmpi sge, %2, %3 : vector<8x8xi32>
    %5 = vector.shape_cast %4 : vector<8x8xi1> to vector<1x8x8xi1>
    %c0_2 = arith.constant 0 : index
    %c0_3 = arith.constant 0 : index
    %6 = vector.load %arg2[%c0_2, %c0_3] : memref<4x64xf32, #tpu.memory_space<vmem>>, vector<1x64xf32>
    %7 = vector.shape_cast %6 : vector<1x64xf32> to vector<64xf32>
    %c0_4 = arith.constant 0 : index
    %c0_5 = arith.constant 0 : index
    %8 = vector.load %arg3[%c0_4, %c0_5] : memref<4x64xf32, #tpu.memory_space<vmem>>, vector<1x64xf32>
    %9 = vector.shape_cast %8 : vector<1x64xf32> to vector<64xf32>
    %cst = arith.constant dense<0.000000e+00> : vector<8xf32>
    %10 = vector.multi_reduction <add>, %1, %cst [1] : vector<8x64xf32> to vector<8xf32>
    %11 = vector.shape_cast %10 : vector<8xf32> to vector<8x1xf32>
    %cst_6 = arith.constant 6.400000e+01 : f32
    %12 = vector.broadcast %cst_6 : f32 to vector<8x1xf32>
    %13 = arith.divf %11, %12 : vector<8x1xf32>
    %14 = vector.broadcast %13 : vector<8x1xf32> to vector<8x64xf32>
    %15 = arith.subf %1, %14 : vector<8x64xf32>
    %16 = arith.mulf %15, %15 : vector<8x64xf32>
    %cst_7 = arith.constant dense<0.000000e+00> : vector<8xf32>
    %17 = vector.multi_reduction <add>, %16, %cst_7 [1] : vector<8x64xf32> to vector<8xf32>
    %18 = vector.shape_cast %17 : vector<8xf32> to vector<8x1xf32>
    %cst_8 = arith.constant 6.400000e+01 : f32
    %19 = vector.broadcast %cst_8 : f32 to vector<8x1xf32>
    %20 = arith.divf %18, %19 : vector<8x1xf32>
    %21 = vector.broadcast %13 : vector<8x1xf32> to vector<8x64xf32>
    %22 = arith.subf %1, %21 : vector<8x64xf32>
    %cst_9 = arith.constant 9.99999974E-6 : f32
    %23 = vector.broadcast %cst_9 : f32 to vector<8x1xf32>
    %24 = arith.addf %20, %23 : vector<8x1xf32>
    %25 = math.rsqrt %24 : vector<8x1xf32>
    %26 = vector.broadcast %25 : vector<8x1xf32> to vector<8x64xf32>
    %27 = arith.mulf %22, %26 : vector<8x64xf32>
    %28 = vector.shape_cast %7 : vector<64xf32> to vector<1x64xf32>
    %29 = vector.broadcast %28 : vector<1x64xf32> to vector<8x64xf32>
    %30 = arith.mulf %27, %29 : vector<8x64xf32>
    %31 = vector.shape_cast %9 : vector<64xf32> to vector<1x64xf32>
    %32 = vector.broadcast %31 : vector<1x64xf32> to vector<8x64xf32>
    %33 = arith.addf %30, %32 : vector<8x64xf32>
    %c0_10 = arith.constant 0 : index
    %c0_11 = arith.constant 0 : index
    %c0_12 = arith.constant 0 : index
    %34 = vector.load %arg4[%c0_10, %c0_11, %c0_12] : memref<4x64x192xf32, #tpu.memory_space<vmem>>, vector<1x64x192xf32>
    %35 = vector.shape_cast %34 : vector<1x64x192xf32> to vector<64x192xf32>
    %cst_13 = arith.constant dense<0.000000e+00> : vector<8x192xf32>
    %36 = tpu.matmul %33, %35, %cst_13 {dimension_numbers = #tpu.dot_dimension_numbers<[1], [0], [0], [1], [0, 0, 1, 1], [], []>} : vector<8x64xf32>, vector<64x192xf32>, vector<8x192xf32> -> vector<8x192xf32>
    %37 = vector.extract_strided_slice %36 {offsets = [0, 0], sizes = [8, 64], strides = [1, 1]} : vector<8x192xf32> to vector<8x64xf32>
    %38 = vector.extract_strided_slice %36 {offsets = [0, 64], sizes = [8, 64], strides = [1, 1]} : vector<8x192xf32> to vector<8x64xf32>
    %39 = vector.extract_strided_slice %36 {offsets = [0, 128], sizes = [8, 64], strides = [1, 1]} : vector<8x192xf32> to vector<8x64xf32>
    %40 = vector.shape_cast %37 : vector<8x64xf32> to vector<8x4x16xf32>
    %41 = tpu.transpose %40, [1, 0, 2] : vector<8x4x16xf32> -> vector<4x8x16xf32>
    %42 = vector.shape_cast %38 : vector<8x64xf32> to vector<8x4x16xf32>
    %43 = tpu.transpose %42, [1, 0, 2] : vector<8x4x16xf32> -> vector<4x8x16xf32>
    %44 = vector.shape_cast %39 : vector<8x64xf32> to vector<8x4x16xf32>
    %45 = tpu.transpose %44, [1, 0, 2] : vector<8x4x16xf32> -> vector<4x8x16xf32>
    %cst_14 = arith.constant dense<0.000000e+00> : vector<4x8x8xf32>
    %46 = tpu.matmul %41, %43, %cst_14 {dimension_numbers = #tpu.dot_dimension_numbers<[2], [2], [1], [1], [0, 0, 0, 1, 1, 1], [0], [0]>} : vector<4x8x16xf32>, vector<4x8x16xf32>, vector<4x8x8xf32> -> vector<4x8x8xf32>
    %cst_15 = arith.constant 1.250000e-01 : f32
    %47 = vector.broadcast %cst_15 : f32 to vector<4x8x8xf32>
    %48 = arith.mulf %46, %47 : vector<4x8x8xf32>
    %cst_16 = arith.constant 0xFF800000 : f32
    %49 = vector.shape_cast %5 : vector<1x8x8xi1> to vector<1x8x8xi1>
    %50 = vector.broadcast %49 : vector<1x8x8xi1> to vector<4x8x8xi1>
    %51 = vector.broadcast %cst_16 : f32 to vector<4x8x8xf32>
    %52 = arith.select %50, %48, %51 : vector<4x8x8xi1>, vector<4x8x8xf32>
    %cst_17 = arith.constant dense<0xFF800000> : vector<4x8xf32>
    %53 = vector.multi_reduction <maximumf>, %52, %cst_17 [2] : vector<4x8x8xf32> to vector<4x8xf32>
    %54 = vector.shape_cast %53 : vector<4x8xf32> to vector<4x8x1xf32>
    %55 = vector.broadcast %54 : vector<4x8x1xf32> to vector<4x8x8xf32>
    %56 = arith.subf %52, %55 : vector<4x8x8xf32>
    %57 = math.exp %56 : vector<4x8x8xf32>
    %cst_18 = arith.constant dense<0.000000e+00> : vector<4x8xf32>
    %58 = vector.multi_reduction <add>, %57, %cst_18 [2] : vector<4x8x8xf32> to vector<4x8xf32>
    %59 = vector.shape_cast %58 : vector<4x8xf32> to vector<4x8x1xf32>
    %60 = vector.broadcast %59 : vector<4x8x1xf32> to vector<4x8x8xf32>
    %61 = arith.divf %57, %60 : vector<4x8x8xf32>
    %cst_19 = arith.constant dense<0.000000e+00> : vector<4x8x16xf32>
    %62 = tpu.matmul %61, %45, %cst_19 {dimension_numbers = #tpu.dot_dimension_numbers<[2], [1], [1], [2], [0, 0, 0, 1, 1, 2], [0], [0]>} : vector<4x8x8xf32>, vector<4x8x16xf32>, vector<4x8x16xf32> -> vector<4x8x16xf32>
    %63 = tpu.transpose %62, [1, 0, 2] : vector<4x8x16xf32> -> vector<8x4x16xf32>
    %64 = vector.shape_cast %63 : vector<8x4x16xf32> to vector<8x64xf32>
    %c0_20 = arith.constant 0 : index
    %c0_21 = arith.constant 0 : index
    %c0_22 = arith.constant 0 : index
    %65 = vector.load %arg5[%c0_20, %c0_21, %c0_22] : memref<4x64x64xf32, #tpu.memory_space<vmem>>, vector<1x64x64xf32>
    %66 = vector.shape_cast %65 : vector<1x64x64xf32> to vector<64x64xf32>
    %cst_23 = arith.constant dense<0.000000e+00> : vector<8x64xf32>
    %67 = tpu.matmul %64, %66, %cst_23 {dimension_numbers = #tpu.dot_dimension_numbers<[1], [0], [0], [1], [0, 0, 1, 1], [], []>} : vector<8x64xf32>, vector<64x64xf32>, vector<8x64xf32> -> vector<8x64xf32>
    %c0_24 = arith.constant 0 : index
    %c0_25 = arith.constant 0 : index
    %68 = vector.load %arg6[%c0_24, %c0_25] : memref<4x64xf32, #tpu.memory_space<vmem>>, vector<1x64xf32>
    %69 = vector.shape_cast %68 : vector<1x64xf32> to vector<64xf32>
    %70 = vector.shape_cast %69 : vector<64xf32> to vector<1x64xf32>
    %71 = vector.broadcast %70 : vector<1x64xf32> to vector<8x64xf32>
    %72 = arith.addf %67, %71 : vector<8x64xf32>
    %73 = arith.addf %1, %72 : vector<8x64xf32>
    %c0_26 = arith.constant 0 : index
    %c0_27 = arith.constant 0 : index
    %74 = vector.load %arg7[%c0_26, %c0_27] : memref<4x64xf32, #tpu.memory_space<vmem>>, vector<1x64xf32>
    %75 = vector.shape_cast %74 : vector<1x64xf32> to vector<64xf32>
    %c0_28 = arith.constant 0 : index
    %c0_29 = arith.constant 0 : index
    %76 = vector.load %arg8[%c0_28, %c0_29] : memref<4x64xf32, #tpu.memory_space<vmem>>, vector<1x64xf32>
    %77 = vector.shape_cast %76 : vector<1x64xf32> to vector<64xf32>
    %cst_30 = arith.constant dense<0.000000e+00> : vector<8xf32>
    %78 = vector.multi_reduction <add>, %73, %cst_30 [1] : vector<8x64xf32> to vector<8xf32>
    %79 = vector.shape_cast %78 : vector<8xf32> to vector<8x1xf32>
    %cst_31 = arith.constant 6.400000e+01 : f32
    %80 = vector.broadcast %cst_31 : f32 to vector<8x1xf32>
    %81 = arith.divf %79, %80 : vector<8x1xf32>
    %82 = vector.broadcast %81 : vector<8x1xf32> to vector<8x64xf32>
    %83 = arith.subf %73, %82 : vector<8x64xf32>
    %84 = arith.mulf %83, %83 : vector<8x64xf32>
    %cst_32 = arith.constant dense<0.000000e+00> : vector<8xf32>
    %85 = vector.multi_reduction <add>, %84, %cst_32 [1] : vector<8x64xf32> to vector<8xf32>
    %86 = vector.shape_cast %85 : vector<8xf32> to vector<8x1xf32>
    %cst_33 = arith.constant 6.400000e+01 : f32
    %87 = vector.broadcast %cst_33 : f32 to vector<8x1xf32>
    %88 = arith.divf %86, %87 : vector<8x1xf32>
    %89 = vector.broadcast %81 : vector<8x1xf32> to vector<8x64xf32>
    %90 = arith.subf %73, %89 : vector<8x64xf32>
    %cst_34 = arith.constant 9.99999974E-6 : f32
    %91 = vector.broadcast %cst_34 : f32 to vector<8x1xf32>
    %92 = arith.addf %88, %91 : vector<8x1xf32>
    %93 = math.rsqrt %92 : vector<8x1xf32>
    %94 = vector.broadcast %93 : vector<8x1xf32> to vector<8x64xf32>
    %95 = arith.mulf %90, %94 : vector<8x64xf32>
    %96 = vector.shape_cast %75 : vector<64xf32> to vector<1x64xf32>
    %97 = vector.broadcast %96 : vector<1x64xf32> to vector<8x64xf32>
    %98 = arith.mulf %95, %97 : vector<8x64xf32>
    %99 = vector.shape_cast %77 : vector<64xf32> to vector<1x64xf32>
    %100 = vector.broadcast %99 : vector<1x64xf32> to vector<8x64xf32>
    %101 = arith.addf %98, %100 : vector<8x64xf32>
    %c0_35 = arith.constant 0 : index
    %c0_36 = arith.constant 0 : index
    %c0_37 = arith.constant 0 : index
    %102 = vector.load %arg9[%c0_35, %c0_36, %c0_37] : memref<4x64x256xf32, #tpu.memory_space<vmem>>, vector<1x64x256xf32>
    %103 = vector.shape_cast %102 : vector<1x64x256xf32> to vector<64x256xf32>
    %cst_38 = arith.constant dense<0.000000e+00> : vector<8x256xf32>
    %104 = tpu.matmul %101, %103, %cst_38 {dimension_numbers = #tpu.dot_dimension_numbers<[1], [0], [0], [1], [0, 0, 1, 1], [], []>} : vector<8x64xf32>, vector<64x256xf32>, vector<8x256xf32> -> vector<8x256xf32>
    %c0_39 = arith.constant 0 : index
    %c0_40 = arith.constant 0 : index
    %105 = vector.load %arg10[%c0_39, %c0_40] : memref<4x256xf32, #tpu.memory_space<vmem>>, vector<1x256xf32>
    %106 = vector.shape_cast %105 : vector<1x256xf32> to vector<256xf32>
    %107 = vector.shape_cast %106 : vector<256xf32> to vector<1x256xf32>
    %108 = vector.broadcast %107 : vector<1x256xf32> to vector<8x256xf32>
    %109 = arith.addf %104, %108 : vector<8x256xf32>
    %cst_41 = arith.constant 0.000000e+00 : f32
    %110 = vector.broadcast %cst_41 : f32 to vector<8x256xf32>
    %111 = arith.maximumf %109, %110 : vector<8x256xf32>
    %c0_42 = arith.constant 0 : index
    %c0_43 = arith.constant 0 : index
    %c0_44 = arith.constant 0 : index
    %112 = vector.load %arg11[%c0_42, %c0_43, %c0_44] : memref<4x256x64xf32, #tpu.memory_space<vmem>>, vector<1x256x64xf32>
    %113 = vector.shape_cast %112 : vector<1x256x64xf32> to vector<256x64xf32>
    %cst_45 = arith.constant dense<0.000000e+00> : vector<8x64xf32>
    %114 = tpu.matmul %111, %113, %cst_45 {dimension_numbers = #tpu.dot_dimension_numbers<[1], [0], [0], [1], [0, 0, 1, 1], [], []>} : vector<8x256xf32>, vector<256x64xf32>, vector<8x64xf32> -> vector<8x64xf32>
    %c0_46 = arith.constant 0 : index
    %c0_47 = arith.constant 0 : index
    %115 = vector.load %arg12[%c0_46, %c0_47] : memref<4x64xf32, #tpu.memory_space<vmem>>, vector<1x64xf32>
    %116 = vector.shape_cast %115 : vector<1x64xf32> to vector<64xf32>
    %117 = vector.shape_cast %116 : vector<64xf32> to vector<1x64xf32>
    %118 = vector.broadcast %117 : vector<1x64xf32> to vector<8x64xf32>
    %119 = arith.addf %114, %118 : vector<8x64xf32>
    %120 = arith.addf %73, %119 : vector<8x64xf32>
    %c1 = arith.constant 1 : index
    %c0_48 = arith.constant 0 : index
    %121 = vector.load %arg2[%c1, %c0_48] : memref<4x64xf32, #tpu.memory_space<vmem>>, vector<1x64xf32>
    %122 = vector.shape_cast %121 : vector<1x64xf32> to vector<64xf32>
    %c1_49 = arith.constant 1 : index
    %c0_50 = arith.constant 0 : index
    %123 = vector.load %arg3[%c1_49, %c0_50] : memref<4x64xf32, #tpu.memory_space<vmem>>, vector<1x64xf32>
    %124 = vector.shape_cast %123 : vector<1x64xf32> to vector<64xf32>
    %cst_51 = arith.constant dense<0.000000e+00> : vector<8xf32>
    %125 = vector.multi_reduction <add>, %120, %cst_51 [1] : vector<8x64xf32> to vector<8xf32>
    %126 = vector.shape_cast %125 : vector<8xf32> to vector<8x1xf32>
    %cst_52 = arith.constant 6.400000e+01 : f32
    %127 = vector.broadcast %cst_52 : f32 to vector<8x1xf32>
    %128 = arith.divf %126, %127 : vector<8x1xf32>
    %129 = vector.broadcast %128 : vector<8x1xf32> to vector<8x64xf32>
    %130 = arith.subf %120, %129 : vector<8x64xf32>
    %131 = arith.mulf %130, %130 : vector<8x64xf32>
    %cst_53 = arith.constant dense<0.000000e+00> : vector<8xf32>
    %132 = vector.multi_reduction <add>, %131, %cst_53 [1] : vector<8x64xf32> to vector<8xf32>
    %133 = vector.shape_cast %132 : vector<8xf32> to vector<8x1xf32>
    %cst_54 = arith.constant 6.400000e+01 : f32
    %134 = vector.broadcast %cst_54 : f32 to vector<8x1xf32>
    %135 = arith.divf %133, %134 : vector<8x1xf32>
    %136 = vector.broadcast %128 : vector<8x1xf32> to vector<8x64xf32>
    %137 = arith.subf %120, %136 : vector<8x64xf32>
    %cst_55 = arith.constant 9.99999974E-6 : f32
    %138 = vector.broadcast %cst_55 : f32 to vector<8x1xf32>
    %139 = arith.addf %135, %138 : vector<8x1xf32>
    %140 = math.rsqrt %139 : vector<8x1xf32>
    %141 = vector.broadcast %140 : vector<8x1xf32> to vector<8x64xf32>
    %142 = arith.mulf %137, %141 : vector<8x64xf32>
    %143 = vector.shape_cast %122 : vector<64xf32> to vector<1x64xf32>
    %144 = vector.broadcast %143 : vector<1x64xf32> to vector<8x64xf32>
    %145 = arith.mulf %142, %144 : vector<8x64xf32>
    %146 = vector.shape_cast %124 : vector<64xf32> to vector<1x64xf32>
    %147 = vector.broadcast %146 : vector<1x64xf32> to vector<8x64xf32>
    %148 = arith.addf %145, %147 : vector<8x64xf32>
    %c1_56 = arith.constant 1 : index
    %c0_57 = arith.constant 0 : index
    %c0_58 = arith.constant 0 : index
    %149 = vector.load %arg4[%c1_56, %c0_57, %c0_58] : memref<4x64x192xf32, #tpu.memory_space<vmem>>, vector<1x64x192xf32>
    %150 = vector.shape_cast %149 : vector<1x64x192xf32> to vector<64x192xf32>
    %cst_59 = arith.constant dense<0.000000e+00> : vector<8x192xf32>
    %151 = tpu.matmul %148, %150, %cst_59 {dimension_numbers = #tpu.dot_dimension_numbers<[1], [0], [0], [1], [0, 0, 1, 1], [], []>} : vector<8x64xf32>, vector<64x192xf32>, vector<8x192xf32> -> vector<8x192xf32>
    %152 = vector.extract_strided_slice %151 {offsets = [0, 0], sizes = [8, 64], strides = [1, 1]} : vector<8x192xf32> to vector<8x64xf32>
    %153 = vector.extract_strided_slice %151 {offsets = [0, 64], sizes = [8, 64], strides = [1, 1]} : vector<8x192xf32> to vector<8x64xf32>
    %154 = vector.extract_strided_slice %151 {offsets = [0, 128], sizes = [8, 64], strides = [1, 1]} : vector<8x192xf32> to vector<8x64xf32>
    %155 = vector.shape_cast %152 : vector<8x64xf32> to vector<8x4x16xf32>
    %156 = tpu.transpose %155, [1, 0, 2] : vector<8x4x16xf32> -> vector<4x8x16xf32>
    %157 = vector.shape_cast %153 : vector<8x64xf32> to vector<8x4x16xf32>
    %158 = tpu.transpose %157, [1, 0, 2] : vector<8x4x16xf32> -> vector<4x8x16xf32>
    %159 = vector.shape_cast %154 : vector<8x64xf32> to vector<8x4x16xf32>
    %160 = tpu.transpose %159, [1, 0, 2] : vector<8x4x16xf32> -> vector<4x8x16xf32>
    %cst_60 = arith.constant dense<0.000000e+00> : vector<4x8x8xf32>
    %161 = tpu.matmul %156, %158, %cst_60 {dimension_numbers = #tpu.dot_dimension_numbers<[2], [2], [1], [1], [0, 0, 0, 1, 1, 1], [0], [0]>} : vector<4x8x16xf32>, vector<4x8x16xf32>, vector<4x8x8xf32> -> vector<4x8x8xf32>
    %cst_61 = arith.constant 1.250000e-01 : f32
    %162 = vector.broadcast %cst_61 : f32 to vector<4x8x8xf32>
    %163 = arith.mulf %161, %162 : vector<4x8x8xf32>
    %cst_62 = arith.constant 0xFF800000 : f32
    %164 = vector.shape_cast %5 : vector<1x8x8xi1> to vector<1x8x8xi1>
    %165 = vector.broadcast %164 : vector<1x8x8xi1> to vector<4x8x8xi1>
    %166 = vector.broadcast %cst_62 : f32 to vector<4x8x8xf32>
    %167 = arith.select %165, %163, %166 : vector<4x8x8xi1>, vector<4x8x8xf32>
    %cst_63 = arith.constant dense<0xFF800000> : vector<4x8xf32>
    %168 = vector.multi_reduction <maximumf>, %167, %cst_63 [2] : vector<4x8x8xf32> to vector<4x8xf32>
    %169 = vector.shape_cast %168 : vector<4x8xf32> to vector<4x8x1xf32>
    %170 = vector.broadcast %169 : vector<4x8x1xf32> to vector<4x8x8xf32>
    %171 = arith.subf %167, %170 : vector<4x8x8xf32>
    %172 = math.exp %171 : vector<4x8x8xf32>
    %cst_64 = arith.constant dense<0.000000e+00> : vector<4x8xf32>
    %173 = vector.multi_reduction <add>, %172, %cst_64 [2] : vector<4x8x8xf32> to vector<4x8xf32>
    %174 = vector.shape_cast %173 : vector<4x8xf32> to vector<4x8x1xf32>
    %175 = vector.broadcast %174 : vector<4x8x1xf32> to vector<4x8x8xf32>
    %176 = arith.divf %172, %175 : vector<4x8x8xf32>
    %cst_65 = arith.constant dense<0.000000e+00> : vector<4x8x16xf32>
    %177 = tpu.matmul %176, %160, %cst_65 {dimension_numbers = #tpu.dot_dimension_numbers<[2], [1], [1], [2], [0, 0, 0, 1, 1, 2], [0], [0]>} : vector<4x8x8xf32>, vector<4x8x16xf32>, vector<4x8x16xf32> -> vector<4x8x16xf32>
    %178 = tpu.transpose %177, [1, 0, 2] : vector<4x8x16xf32> -> vector<8x4x16xf32>
    %179 = vector.shape_cast %178 : vector<8x4x16xf32> to vector<8x64xf32>
    %c1_66 = arith.constant 1 : index
    %c0_67 = arith.constant 0 : index
    %c0_68 = arith.constant 0 : index
    %180 = vector.load %arg5[%c1_66, %c0_67, %c0_68] : memref<4x64x64xf32, #tpu.memory_space<vmem>>, vector<1x64x64xf32>
    %181 = vector.shape_cast %180 : vector<1x64x64xf32> to vector<64x64xf32>
    %cst_69 = arith.constant dense<0.000000e+00> : vector<8x64xf32>
    %182 = tpu.matmul %179, %181, %cst_69 {dimension_numbers = #tpu.dot_dimension_numbers<[1], [0], [0], [1], [0, 0, 1, 1], [], []>} : vector<8x64xf32>, vector<64x64xf32>, vector<8x64xf32> -> vector<8x64xf32>
    %c1_70 = arith.constant 1 : index
    %c0_71 = arith.constant 0 : index
    %183 = vector.load %arg6[%c1_70, %c0_71] : memref<4x64xf32, #tpu.memory_space<vmem>>, vector<1x64xf32>
    %184 = vector.shape_cast %183 : vector<1x64xf32> to vector<64xf32>
    %185 = vector.shape_cast %184 : vector<64xf32> to vector<1x64xf32>
    %186 = vector.broadcast %185 : vector<1x64xf32> to vector<8x64xf32>
    %187 = arith.addf %182, %186 : vector<8x64xf32>
    %188 = arith.addf %120, %187 : vector<8x64xf32>
    %c1_72 = arith.constant 1 : index
    %c0_73 = arith.constant 0 : index
    %189 = vector.load %arg7[%c1_72, %c0_73] : memref<4x64xf32, #tpu.memory_space<vmem>>, vector<1x64xf32>
    %190 = vector.shape_cast %189 : vector<1x64xf32> to vector<64xf32>
    %c1_74 = arith.constant 1 : index
    %c0_75 = arith.constant 0 : index
    %191 = vector.load %arg8[%c1_74, %c0_75] : memref<4x64xf32, #tpu.memory_space<vmem>>, vector<1x64xf32>
    %192 = vector.shape_cast %191 : vector<1x64xf32> to vector<64xf32>
    %cst_76 = arith.constant dense<0.000000e+00> : vector<8xf32>
    %193 = vector.multi_reduction <add>, %188, %cst_76 [1] : vector<8x64xf32> to vector<8xf32>
    %194 = vector.shape_cast %193 : vector<8xf32> to vector<8x1xf32>
    %cst_77 = arith.constant 6.400000e+01 : f32
    %195 = vector.broadcast %cst_77 : f32 to vector<8x1xf32>
    %196 = arith.divf %194, %195 : vector<8x1xf32>
    %197 = vector.broadcast %196 : vector<8x1xf32> to vector<8x64xf32>
    %198 = arith.subf %188, %197 : vector<8x64xf32>
    %199 = arith.mulf %198, %198 : vector<8x64xf32>
    %cst_78 = arith.constant dense<0.000000e+00> : vector<8xf32>
    %200 = vector.multi_reduction <add>, %199, %cst_78 [1] : vector<8x64xf32> to vector<8xf32>
    %201 = vector.shape_cast %200 : vector<8xf32> to vector<8x1xf32>
    %cst_79 = arith.constant 6.400000e+01 : f32
    %202 = vector.broadcast %cst_79 : f32 to vector<8x1xf32>
    %203 = arith.divf %201, %202 : vector<8x1xf32>
    %204 = vector.broadcast %196 : vector<8x1xf32> to vector<8x64xf32>
    %205 = arith.subf %188, %204 : vector<8x64xf32>
    %cst_80 = arith.constant 9.99999974E-6 : f32
    %206 = vector.broadcast %cst_80 : f32 to vector<8x1xf32>
    %207 = arith.addf %203, %206 : vector<8x1xf32>
    %208 = math.rsqrt %207 : vector<8x1xf32>
    %209 = vector.broadcast %208 : vector<8x1xf32> to vector<8x64xf32>
    %210 = arith.mulf %205, %209 : vector<8x64xf32>
    %211 = vector.shape_cast %190 : vector<64xf32> to vector<1x64xf32>
    %212 = vector.broadcast %211 : vector<1x64xf32> to vector<8x64xf32>
    %213 = arith.mulf %210, %212 : vector<8x64xf32>
    %214 = vector.shape_cast %192 : vector<64xf32> to vector<1x64xf32>
    %215 = vector.broadcast %214 : vector<1x64xf32> to vector<8x64xf32>
    %216 = arith.addf %213, %215 : vector<8x64xf32>
    %c1_81 = arith.constant 1 : index
    %c0_82 = arith.constant 0 : index
    %c0_83 = arith.constant 0 : index
    %217 = vector.load %arg9[%c1_81, %c0_82, %c0_83] : memref<4x64x256xf32, #tpu.memory_space<vmem>>, vector<1x64x256xf32>
    %218 = vector.shape_cast %217 : vector<1x64x256xf32> to vector<64x256xf32>
    %cst_84 = arith.constant dense<0.000000e+00> : vector<8x256xf32>
    %219 = tpu.matmul %216, %218, %cst_84 {dimension_numbers = #tpu.dot_dimension_numbers<[1], [0], [0], [1], [0, 0, 1, 1], [], []>} : vector<8x64xf32>, vector<64x256xf32>, vector<8x256xf32> -> vector<8x256xf32>
    %c1_85 = arith.constant 1 : index
    %c0_86 = arith.constant 0 : index
    %220 = vector.load %arg10[%c1_85, %c0_86] : memref<4x256xf32, #tpu.memory_space<vmem>>, vector<1x256xf32>
    %221 = vector.shape_cast %220 : vector<1x256xf32> to vector<256xf32>
    %222 = vector.shape_cast %221 : vector<256xf32> to vector<1x256xf32>
    %223 = vector.broadcast %222 : vector<1x256xf32> to vector<8x256xf32>
    %224 = arith.addf %219, %223 : vector<8x256xf32>
    %cst_87 = arith.constant 0.000000e+00 : f32
    %225 = vector.broadcast %cst_87 : f32 to vector<8x256xf32>
    %226 = arith.maximumf %224, %225 : vector<8x256xf32>
    %c1_88 = arith.constant 1 : index
    %c0_89 = arith.constant 0 : index
    %c0_90 = arith.constant 0 : index
    %227 = vector.load %arg11[%c1_88, %c0_89, %c0_90] : memref<4x256x64xf32, #tpu.memory_space<vmem>>, vector<1x256x64xf32>
    %228 = vector.shape_cast %227 : vector<1x256x64xf32> to vector<256x64xf32>
    %cst_91 = arith.constant dense<0.000000e+00> : vector<8x64xf32>
    %229 = tpu.matmul %226, %228, %cst_91 {dimension_numbers = #tpu.dot_dimension_numbers<[1], [0], [0], [1], [0, 0, 1, 1], [], []>} : vector<8x256xf32>, vector<256x64xf32>, vector<8x64xf32> -> vector<8x64xf32>
    %c1_92 = arith.constant 1 : index
    %c0_93 = arith.constant 0 : index
    %230 = vector.load %arg12[%c1_92, %c0_93] : memref<4x64xf32, #tpu.memory_space<vmem>>, vector<1x64xf32>
    %231 = vector.shape_cast %230 : vector<1x64xf32> to vector<64xf32>
    %232 = vector.shape_cast %231 : vector<64xf32> to vector<1x64xf32>
    %233 = vector.broadcast %232 : vector<1x64xf32> to vector<8x64xf32>
    %234 = arith.addf %229, %233 : vector<8x64xf32>
    %235 = arith.addf %188, %234 : vector<8x64xf32>
    %c2 = arith.constant 2 : index
    %c0_94 = arith.constant 0 : index
    %236 = vector.load %arg2[%c2, %c0_94] : memref<4x64xf32, #tpu.memory_space<vmem>>, vector<1x64xf32>
    %237 = vector.shape_cast %236 : vector<1x64xf32> to vector<64xf32>
    %c2_95 = arith.constant 2 : index
    %c0_96 = arith.constant 0 : index
    %238 = vector.load %arg3[%c2_95, %c0_96] : memref<4x64xf32, #tpu.memory_space<vmem>>, vector<1x64xf32>
    %239 = vector.shape_cast %238 : vector<1x64xf32> to vector<64xf32>
    %cst_97 = arith.constant dense<0.000000e+00> : vector<8xf32>
    %240 = vector.multi_reduction <add>, %235, %cst_97 [1] : vector<8x64xf32> to vector<8xf32>
    %241 = vector.shape_cast %240 : vector<8xf32> to vector<8x1xf32>
    %cst_98 = arith.constant 6.400000e+01 : f32
    %242 = vector.broadcast %cst_98 : f32 to vector<8x1xf32>
    %243 = arith.divf %241, %242 : vector<8x1xf32>
    %244 = vector.broadcast %243 : vector<8x1xf32> to vector<8x64xf32>
    %245 = arith.subf %235, %244 : vector<8x64xf32>
    %246 = arith.mulf %245, %245 : vector<8x64xf32>
    %cst_99 = arith.constant dense<0.000000e+00> : vector<8xf32>
    %247 = vector.multi_reduction <add>, %246, %cst_99 [1] : vector<8x64xf32> to vector<8xf32>
    %248 = vector.shape_cast %247 : vector<8xf32> to vector<8x1xf32>
    %cst_100 = arith.constant 6.400000e+01 : f32
    %249 = vector.broadcast %cst_100 : f32 to vector<8x1xf32>
    %250 = arith.divf %248, %249 : vector<8x1xf32>
    %251 = vector.broadcast %243 : vector<8x1xf32> to vector<8x64xf32>
    %252 = arith.subf %235, %251 : vector<8x64xf32>
    %cst_101 = arith.constant 9.99999974E-6 : f32
    %253 = vector.broadcast %cst_101 : f32 to vector<8x1xf32>
    %254 = arith.addf %250, %253 : vector<8x1xf32>
    %255 = math.rsqrt %254 : vector<8x1xf32>
    %256 = vector.broadcast %255 : vector<8x1xf32> to vector<8x64xf32>
    %257 = arith.mulf %252, %256 : vector<8x64xf32>
    %258 = vector.shape_cast %237 : vector<64xf32> to vector<1x64xf32>
    %259 = vector.broadcast %258 : vector<1x64xf32> to vector<8x64xf32>
    %260 = arith.mulf %257, %259 : vector<8x64xf32>
    %261 = vector.shape_cast %239 : vector<64xf32> to vector<1x64xf32>
    %262 = vector.broadcast %261 : vector<1x64xf32> to vector<8x64xf32>
    %263 = arith.addf %260, %262 : vector<8x64xf32>
    %c2_102 = arith.constant 2 : index
    %c0_103 = arith.constant 0 : index
    %c0_104 = arith.constant 0 : index
    %264 = vector.load %arg4[%c2_102, %c0_103, %c0_104] : memref<4x64x192xf32, #tpu.memory_space<vmem>>, vector<1x64x192xf32>
    %265 = vector.shape_cast %264 : vector<1x64x192xf32> to vector<64x192xf32>
    %cst_105 = arith.constant dense<0.000000e+00> : vector<8x192xf32>
    %266 = tpu.matmul %263, %265, %cst_105 {dimension_numbers = #tpu.dot_dimension_numbers<[1], [0], [0], [1], [0, 0, 1, 1], [], []>} : vector<8x64xf32>, vector<64x192xf32>, vector<8x192xf32> -> vector<8x192xf32>
    %267 = vector.extract_strided_slice %266 {offsets = [0, 0], sizes = [8, 64], strides = [1, 1]} : vector<8x192xf32> to vector<8x64xf32>
    %268 = vector.extract_strided_slice %266 {offsets = [0, 64], sizes = [8, 64], strides = [1, 1]} : vector<8x192xf32> to vector<8x64xf32>
    %269 = vector.extract_strided_slice %266 {offsets = [0, 128], sizes = [8, 64], strides = [1, 1]} : vector<8x192xf32> to vector<8x64xf32>
    %270 = vector.shape_cast %267 : vector<8x64xf32> to vector<8x4x16xf32>
    %271 = tpu.transpose %270, [1, 0, 2] : vector<8x4x16xf32> -> vector<4x8x16xf32>
    %272 = vector.shape_cast %268 : vector<8x64xf32> to vector<8x4x16xf32>
    %273 = tpu.transpose %272, [1, 0, 2] : vector<8x4x16xf32> -> vector<4x8x16xf32>
    %274 = vector.shape_cast %269 : vector<8x64xf32> to vector<8x4x16xf32>
    %275 = tpu.transpose %274, [1, 0, 2] : vector<8x4x16xf32> -> vector<4x8x16xf32>
    %cst_106 = arith.constant dense<0.000000e+00> : vector<4x8x8xf32>
    %276 = tpu.matmul %271, %273, %cst_106 {dimension_numbers = #tpu.dot_dimension_numbers<[2], [2], [1], [1], [0, 0, 0, 1, 1, 1], [0], [0]>} : vector<4x8x16xf32>, vector<4x8x16xf32>, vector<4x8x8xf32> -> vector<4x8x8xf32>
    %cst_107 = arith.constant 1.250000e-01 : f32
    %277 = vector.broadcast %cst_107 : f32 to vector<4x8x8xf32>
    %278 = arith.mulf %276, %277 : vector<4x8x8xf32>
    %cst_108 = arith.constant 0xFF800000 : f32
    %279 = vector.shape_cast %5 : vector<1x8x8xi1> to vector<1x8x8xi1>
    %280 = vector.broadcast %279 : vector<1x8x8xi1> to vector<4x8x8xi1>
    %281 = vector.broadcast %cst_108 : f32 to vector<4x8x8xf32>
    %282 = arith.select %280, %278, %281 : vector<4x8x8xi1>, vector<4x8x8xf32>
    %cst_109 = arith.constant dense<0xFF800000> : vector<4x8xf32>
    %283 = vector.multi_reduction <maximumf>, %282, %cst_109 [2] : vector<4x8x8xf32> to vector<4x8xf32>
    %284 = vector.shape_cast %283 : vector<4x8xf32> to vector<4x8x1xf32>
    %285 = vector.broadcast %284 : vector<4x8x1xf32> to vector<4x8x8xf32>
    %286 = arith.subf %282, %285 : vector<4x8x8xf32>
    %287 = math.exp %286 : vector<4x8x8xf32>
    %cst_110 = arith.constant dense<0.000000e+00> : vector<4x8xf32>
    %288 = vector.multi_reduction <add>, %287, %cst_110 [2] : vector<4x8x8xf32> to vector<4x8xf32>
    %289 = vector.shape_cast %288 : vector<4x8xf32> to vector<4x8x1xf32>
    %290 = vector.broadcast %289 : vector<4x8x1xf32> to vector<4x8x8xf32>
    %291 = arith.divf %287, %290 : vector<4x8x8xf32>
    %cst_111 = arith.constant dense<0.000000e+00> : vector<4x8x16xf32>
    %292 = tpu.matmul %291, %275, %cst_111 {dimension_numbers = #tpu.dot_dimension_numbers<[2], [1], [1], [2], [0, 0, 0, 1, 1, 2], [0], [0]>} : vector<4x8x8xf32>, vector<4x8x16xf32>, vector<4x8x16xf32> -> vector<4x8x16xf32>
    %293 = tpu.transpose %292, [1, 0, 2] : vector<4x8x16xf32> -> vector<8x4x16xf32>
    %294 = vector.shape_cast %293 : vector<8x4x16xf32> to vector<8x64xf32>
    %c2_112 = arith.constant 2 : index
    %c0_113 = arith.constant 0 : index
    %c0_114 = arith.constant 0 : index
    %295 = vector.load %arg5[%c2_112, %c0_113, %c0_114] : memref<4x64x64xf32, #tpu.memory_space<vmem>>, vector<1x64x64xf32>
    %296 = vector.shape_cast %295 : vector<1x64x64xf32> to vector<64x64xf32>
    %cst_115 = arith.constant dense<0.000000e+00> : vector<8x64xf32>
    %297 = tpu.matmul %294, %296, %cst_115 {dimension_numbers = #tpu.dot_dimension_numbers<[1], [0], [0], [1], [0, 0, 1, 1], [], []>} : vector<8x64xf32>, vector<64x64xf32>, vector<8x64xf32> -> vector<8x64xf32>
    %c2_116 = arith.constant 2 : index
    %c0_117 = arith.constant 0 : index
    %298 = vector.load %arg6[%c2_116, %c0_117] : memref<4x64xf32, #tpu.memory_space<vmem>>, vector<1x64xf32>
    %299 = vector.shape_cast %298 : vector<1x64xf32> to vector<64xf32>
    %300 = vector.shape_cast %299 : vector<64xf32> to vector<1x64xf32>
    %301 = vector.broadcast %300 : vector<1x64xf32> to vector<8x64xf32>
    %302 = arith.addf %297, %301 : vector<8x64xf32>
    %303 = arith.addf %235, %302 : vector<8x64xf32>
    %c2_118 = arith.constant 2 : index
    %c0_119 = arith.constant 0 : index
    %304 = vector.load %arg7[%c2_118, %c0_119] : memref<4x64xf32, #tpu.memory_space<vmem>>, vector<1x64xf32>
    %305 = vector.shape_cast %304 : vector<1x64xf32> to vector<64xf32>
    %c2_120 = arith.constant 2 : index
    %c0_121 = arith.constant 0 : index
    %306 = vector.load %arg8[%c2_120, %c0_121] : memref<4x64xf32, #tpu.memory_space<vmem>>, vector<1x64xf32>
    %307 = vector.shape_cast %306 : vector<1x64xf32> to vector<64xf32>
    %cst_122 = arith.constant dense<0.000000e+00> : vector<8xf32>
    %308 = vector.multi_reduction <add>, %303, %cst_122 [1] : vector<8x64xf32> to vector<8xf32>
    %309 = vector.shape_cast %308 : vector<8xf32> to vector<8x1xf32>
    %cst_123 = arith.constant 6.400000e+01 : f32
    %310 = vector.broadcast %cst_123 : f32 to vector<8x1xf32>
    %311 = arith.divf %309, %310 : vector<8x1xf32>
    %312 = vector.broadcast %311 : vector<8x1xf32> to vector<8x64xf32>
    %313 = arith.subf %303, %312 : vector<8x64xf32>
    %314 = arith.mulf %313, %313 : vector<8x64xf32>
    %cst_124 = arith.constant dense<0.000000e+00> : vector<8xf32>
    %315 = vector.multi_reduction <add>, %314, %cst_124 [1] : vector<8x64xf32> to vector<8xf32>
    %316 = vector.shape_cast %315 : vector<8xf32> to vector<8x1xf32>
    %cst_125 = arith.constant 6.400000e+01 : f32
    %317 = vector.broadcast %cst_125 : f32 to vector<8x1xf32>
    %318 = arith.divf %316, %317 : vector<8x1xf32>
    %319 = vector.broadcast %311 : vector<8x1xf32> to vector<8x64xf32>
    %320 = arith.subf %303, %319 : vector<8x64xf32>
    %cst_126 = arith.constant 9.99999974E-6 : f32
    %321 = vector.broadcast %cst_126 : f32 to vector<8x1xf32>
    %322 = arith.addf %318, %321 : vector<8x1xf32>
    %323 = math.rsqrt %322 : vector<8x1xf32>
    %324 = vector.broadcast %323 : vector<8x1xf32> to vector<8x64xf32>
    %325 = arith.mulf %320, %324 : vector<8x64xf32>
    %326 = vector.shape_cast %305 : vector<64xf32> to vector<1x64xf32>
    %327 = vector.broadcast %326 : vector<1x64xf32> to vector<8x64xf32>
    %328 = arith.mulf %325, %327 : vector<8x64xf32>
    %329 = vector.shape_cast %307 : vector<64xf32> to vector<1x64xf32>
    %330 = vector.broadcast %329 : vector<1x64xf32> to vector<8x64xf32>
    %331 = arith.addf %328, %330 : vector<8x64xf32>
    %c2_127 = arith.constant 2 : index
    %c0_128 = arith.constant 0 : index
    %c0_129 = arith.constant 0 : index
    %332 = vector.load %arg9[%c2_127, %c0_128, %c0_129] : memref<4x64x256xf32, #tpu.memory_space<vmem>>, vector<1x64x256xf32>
    %333 = vector.shape_cast %332 : vector<1x64x256xf32> to vector<64x256xf32>
    %cst_130 = arith.constant dense<0.000000e+00> : vector<8x256xf32>
    %334 = tpu.matmul %331, %333, %cst_130 {dimension_numbers = #tpu.dot_dimension_numbers<[1], [0], [0], [1], [0, 0, 1, 1], [], []>} : vector<8x64xf32>, vector<64x256xf32>, vector<8x256xf32> -> vector<8x256xf32>
    %c2_131 = arith.constant 2 : index
    %c0_132 = arith.constant 0 : index
    %335 = vector.load %arg10[%c2_131, %c0_132] : memref<4x256xf32, #tpu.memory_space<vmem>>, vector<1x256xf32>
    %336 = vector.shape_cast %335 : vector<1x256xf32> to vector<256xf32>
    %337 = vector.shape_cast %336 : vector<256xf32> to vector<1x256xf32>
    %338 = vector.broadcast %337 : vector<1x256xf32> to vector<8x256xf32>
    %339 = arith.addf %334, %338 : vector<8x256xf32>
    %cst_133 = arith.constant 0.000000e+00 : f32
    %340 = vector.broadcast %cst_133 : f32 to vector<8x256xf32>
    %341 = arith.maximumf %339, %340 : vector<8x256xf32>
    %c2_134 = arith.constant 2 : index
    %c0_135 = arith.constant 0 : index
    %c0_136 = arith.constant 0 : index
    %342 = vector.load %arg11[%c2_134, %c0_135, %c0_136] : memref<4x256x64xf32, #tpu.memory_space<vmem>>, vector<1x256x64xf32>
    %343 = vector.shape_cast %342 : vector<1x256x64xf32> to vector<256x64xf32>
    %cst_137 = arith.constant dense<0.000000e+00> : vector<8x64xf32>
    %344 = tpu.matmul %341, %343, %cst_137 {dimension_numbers = #tpu.dot_dimension_numbers<[1], [0], [0], [1], [0, 0, 1, 1], [], []>} : vector<8x256xf32>, vector<256x64xf32>, vector<8x64xf32> -> vector<8x64xf32>
    %c2_138 = arith.constant 2 : index
    %c0_139 = arith.constant 0 : index
    %345 = vector.load %arg12[%c2_138, %c0_139] : memref<4x64xf32, #tpu.memory_space<vmem>>, vector<1x64xf32>
    %346 = vector.shape_cast %345 : vector<1x64xf32> to vector<64xf32>
    %347 = vector.shape_cast %346 : vector<64xf32> to vector<1x64xf32>
    %348 = vector.broadcast %347 : vector<1x64xf32> to vector<8x64xf32>
    %349 = arith.addf %344, %348 : vector<8x64xf32>
    %350 = arith.addf %303, %349 : vector<8x64xf32>
    %c3 = arith.constant 3 : index
    %c0_140 = arith.constant 0 : index
    %351 = vector.load %arg2[%c3, %c0_140] : memref<4x64xf32, #tpu.memory_space<vmem>>, vector<1x64xf32>
    %352 = vector.shape_cast %351 : vector<1x64xf32> to vector<64xf32>
    %c3_141 = arith.constant 3 : index
    %c0_142 = arith.constant 0 : index
    %353 = vector.load %arg3[%c3_141, %c0_142] : memref<4x64xf32, #tpu.memory_space<vmem>>, vector<1x64xf32>
    %354 = vector.shape_cast %353 : vector<1x64xf32> to vector<64xf32>
    %cst_143 = arith.constant dense<0.000000e+00> : vector<8xf32>
    %355 = vector.multi_reduction <add>, %350, %cst_143 [1] : vector<8x64xf32> to vector<8xf32>
    %356 = vector.shape_cast %355 : vector<8xf32> to vector<8x1xf32>
    %cst_144 = arith.constant 6.400000e+01 : f32
    %357 = vector.broadcast %cst_144 : f32 to vector<8x1xf32>
    %358 = arith.divf %356, %357 : vector<8x1xf32>
    %359 = vector.broadcast %358 : vector<8x1xf32> to vector<8x64xf32>
    %360 = arith.subf %350, %359 : vector<8x64xf32>
    %361 = arith.mulf %360, %360 : vector<8x64xf32>
    %cst_145 = arith.constant dense<0.000000e+00> : vector<8xf32>
    %362 = vector.multi_reduction <add>, %361, %cst_145 [1] : vector<8x64xf32> to vector<8xf32>
    %363 = vector.shape_cast %362 : vector<8xf32> to vector<8x1xf32>
    %cst_146 = arith.constant 6.400000e+01 : f32
    %364 = vector.broadcast %cst_146 : f32 to vector<8x1xf32>
    %365 = arith.divf %363, %364 : vector<8x1xf32>
    %366 = vector.broadcast %358 : vector<8x1xf32> to vector<8x64xf32>
    %367 = arith.subf %350, %366 : vector<8x64xf32>
    %cst_147 = arith.constant 9.99999974E-6 : f32
    %368 = vector.broadcast %cst_147 : f32 to vector<8x1xf32>
    %369 = arith.addf %365, %368 : vector<8x1xf32>
    %370 = math.rsqrt %369 : vector<8x1xf32>
    %371 = vector.broadcast %370 : vector<8x1xf32> to vector<8x64xf32>
    %372 = arith.mulf %367, %371 : vector<8x64xf32>
    %373 = vector.shape_cast %352 : vector<64xf32> to vector<1x64xf32>
    %374 = vector.broadcast %373 : vector<1x64xf32> to vector<8x64xf32>
    %375 = arith.mulf %372, %374 : vector<8x64xf32>
    %376 = vector.shape_cast %354 : vector<64xf32> to vector<1x64xf32>
    %377 = vector.broadcast %376 : vector<1x64xf32> to vector<8x64xf32>
    %378 = arith.addf %375, %377 : vector<8x64xf32>
    %c3_148 = arith.constant 3 : index
    %c0_149 = arith.constant 0 : index
    %c0_150 = arith.constant 0 : index
    %379 = vector.load %arg4[%c3_148, %c0_149, %c0_150] : memref<4x64x192xf32, #tpu.memory_space<vmem>>, vector<1x64x192xf32>
    %380 = vector.shape_cast %379 : vector<1x64x192xf32> to vector<64x192xf32>
    %cst_151 = arith.constant dense<0.000000e+00> : vector<8x192xf32>
    %381 = tpu.matmul %378, %380, %cst_151 {dimension_numbers = #tpu.dot_dimension_numbers<[1], [0], [0], [1], [0, 0, 1, 1], [], []>} : vector<8x64xf32>, vector<64x192xf32>, vector<8x192xf32> -> vector<8x192xf32>
    %382 = vector.extract_strided_slice %381 {offsets = [0, 0], sizes = [8, 64], strides = [1, 1]} : vector<8x192xf32> to vector<8x64xf32>
    %383 = vector.extract_strided_slice %381 {offsets = [0, 64], sizes = [8, 64], strides = [1, 1]} : vector<8x192xf32> to vector<8x64xf32>
    %384 = vector.extract_strided_slice %381 {offsets = [0, 128], sizes = [8, 64], strides = [1, 1]} : vector<8x192xf32> to vector<8x64xf32>
    %385 = vector.shape_cast %382 : vector<8x64xf32> to vector<8x4x16xf32>
    %386 = tpu.transpose %385, [1, 0, 2] : vector<8x4x16xf32> -> vector<4x8x16xf32>
    %387 = vector.shape_cast %383 : vector<8x64xf32> to vector<8x4x16xf32>
    %388 = tpu.transpose %387, [1, 0, 2] : vector<8x4x16xf32> -> vector<4x8x16xf32>
    %389 = vector.shape_cast %384 : vector<8x64xf32> to vector<8x4x16xf32>
    %390 = tpu.transpose %389, [1, 0, 2] : vector<8x4x16xf32> -> vector<4x8x16xf32>
    %cst_152 = arith.constant dense<0.000000e+00> : vector<4x8x8xf32>
    %391 = tpu.matmul %386, %388, %cst_152 {dimension_numbers = #tpu.dot_dimension_numbers<[2], [2], [1], [1], [0, 0, 0, 1, 1, 1], [0], [0]>} : vector<4x8x16xf32>, vector<4x8x16xf32>, vector<4x8x8xf32> -> vector<4x8x8xf32>
    %cst_153 = arith.constant 1.250000e-01 : f32
    %392 = vector.broadcast %cst_153 : f32 to vector<4x8x8xf32>
    %393 = arith.mulf %391, %392 : vector<4x8x8xf32>
    %cst_154 = arith.constant 0xFF800000 : f32
    %394 = vector.shape_cast %5 : vector<1x8x8xi1> to vector<1x8x8xi1>
    %395 = vector.broadcast %394 : vector<1x8x8xi1> to vector<4x8x8xi1>
    %396 = vector.broadcast %cst_154 : f32 to vector<4x8x8xf32>
    %397 = arith.select %395, %393, %396 : vector<4x8x8xi1>, vector<4x8x8xf32>
    %cst_155 = arith.constant dense<0xFF800000> : vector<4x8xf32>
    %398 = vector.multi_reduction <maximumf>, %397, %cst_155 [2] : vector<4x8x8xf32> to vector<4x8xf32>
    %399 = vector.shape_cast %398 : vector<4x8xf32> to vector<4x8x1xf32>
    %400 = vector.broadcast %399 : vector<4x8x1xf32> to vector<4x8x8xf32>
    %401 = arith.subf %397, %400 : vector<4x8x8xf32>
    %402 = math.exp %401 : vector<4x8x8xf32>
    %cst_156 = arith.constant dense<0.000000e+00> : vector<4x8xf32>
    %403 = vector.multi_reduction <add>, %402, %cst_156 [2] : vector<4x8x8xf32> to vector<4x8xf32>
    %404 = vector.shape_cast %403 : vector<4x8xf32> to vector<4x8x1xf32>
    %405 = vector.broadcast %404 : vector<4x8x1xf32> to vector<4x8x8xf32>
    %406 = arith.divf %402, %405 : vector<4x8x8xf32>
    %cst_157 = arith.constant dense<0.000000e+00> : vector<4x8x16xf32>
    %407 = tpu.matmul %406, %390, %cst_157 {dimension_numbers = #tpu.dot_dimension_numbers<[2], [1], [1], [2], [0, 0, 0, 1, 1, 2], [0], [0]>} : vector<4x8x8xf32>, vector<4x8x16xf32>, vector<4x8x16xf32> -> vector<4x8x16xf32>
    %408 = tpu.transpose %407, [1, 0, 2] : vector<4x8x16xf32> -> vector<8x4x16xf32>
    %409 = vector.shape_cast %408 : vector<8x4x16xf32> to vector<8x64xf32>
    %c3_158 = arith.constant 3 : index
    %c0_159 = arith.constant 0 : index
    %c0_160 = arith.constant 0 : index
    %410 = vector.load %arg5[%c3_158, %c0_159, %c0_160] : memref<4x64x64xf32, #tpu.memory_space<vmem>>, vector<1x64x64xf32>
    %411 = vector.shape_cast %410 : vector<1x64x64xf32> to vector<64x64xf32>
    %cst_161 = arith.constant dense<0.000000e+00> : vector<8x64xf32>
    %412 = tpu.matmul %409, %411, %cst_161 {dimension_numbers = #tpu.dot_dimension_numbers<[1], [0], [0], [1], [0, 0, 1, 1], [], []>} : vector<8x64xf32>, vector<64x64xf32>, vector<8x64xf32> -> vector<8x64xf32>
    %c3_162 = arith.constant 3 : index
    %c0_163 = arith.constant 0 : index
    %413 = vector.load %arg6[%c3_162, %c0_163] : memref<4x64xf32, #tpu.memory_space<vmem>>, vector<1x64xf32>
    %414 = vector.shape_cast %413 : vector<1x64xf32> to vector<64xf32>
    %415 = vector.shape_cast %414 : vector<64xf32> to vector<1x64xf32>
    %416 = vector.broadcast %415 : vector<1x64xf32> to vector<8x64xf32>
    %417 = arith.addf %412, %416 : vector<8x64xf32>
    %418 = arith.addf %350, %417 : vector<8x64xf32>
    %c3_164 = arith.constant 3 : index
    %c0_165 = arith.constant 0 : index
    %419 = vector.load %arg7[%c3_164, %c0_165] : memref<4x64xf32, #tpu.memory_space<vmem>>, vector<1x64xf32>
    %420 = vector.shape_cast %419 : vector<1x64xf32> to vector<64xf32>
    %c3_166 = arith.constant 3 : index
    %c0_167 = arith.constant 0 : index
    %421 = vector.load %arg8[%c3_166, %c0_167] : memref<4x64xf32, #tpu.memory_space<vmem>>, vector<1x64xf32>
    %422 = vector.shape_cast %421 : vector<1x64xf32> to vector<64xf32>
    %cst_168 = arith.constant dense<0.000000e+00> : vector<8xf32>
    %423 = vector.multi_reduction <add>, %418, %cst_168 [1] : vector<8x64xf32> to vector<8xf32>
    %424 = vector.shape_cast %423 : vector<8xf32> to vector<8x1xf32>
    %cst_169 = arith.constant 6.400000e+01 : f32
    %425 = vector.broadcast %cst_169 : f32 to vector<8x1xf32>
    %426 = arith.divf %424, %425 : vector<8x1xf32>
    %427 = vector.broadcast %426 : vector<8x1xf32> to vector<8x64xf32>
    %428 = arith.subf %418, %427 : vector<8x64xf32>
    %429 = arith.mulf %428, %428 : vector<8x64xf32>
    %cst_170 = arith.constant dense<0.000000e+00> : vector<8xf32>
    %430 = vector.multi_reduction <add>, %429, %cst_170 [1] : vector<8x64xf32> to vector<8xf32>
    %431 = vector.shape_cast %430 : vector<8xf32> to vector<8x1xf32>
    %cst_171 = arith.constant 6.400000e+01 : f32
    %432 = vector.broadcast %cst_171 : f32 to vector<8x1xf32>
    %433 = arith.divf %431, %432 : vector<8x1xf32>
    %434 = vector.broadcast %426 : vector<8x1xf32> to vector<8x64xf32>
    %435 = arith.subf %418, %434 : vector<8x64xf32>
    %cst_172 = arith.constant 9.99999974E-6 : f32
    %436 = vector.broadcast %cst_172 : f32 to vector<8x1xf32>
    %437 = arith.addf %433, %436 : vector<8x1xf32>
    %438 = math.rsqrt %437 : vector<8x1xf32>
    %439 = vector.broadcast %438 : vector<8x1xf32> to vector<8x64xf32>
    %440 = arith.mulf %435, %439 : vector<8x64xf32>
    %441 = vector.shape_cast %420 : vector<64xf32> to vector<1x64xf32>
    %442 = vector.broadcast %441 : vector<1x64xf32> to vector<8x64xf32>
    %443 = arith.mulf %440, %442 : vector<8x64xf32>
    %444 = vector.shape_cast %422 : vector<64xf32> to vector<1x64xf32>
    %445 = vector.broadcast %444 : vector<1x64xf32> to vector<8x64xf32>
    %446 = arith.addf %443, %445 : vector<8x64xf32>
    %c3_173 = arith.constant 3 : index
    %c0_174 = arith.constant 0 : index
    %c0_175 = arith.constant 0 : index
    %447 = vector.load %arg9[%c3_173, %c0_174, %c0_175] : memref<4x64x256xf32, #tpu.memory_space<vmem>>, vector<1x64x256xf32>
    %448 = vector.shape_cast %447 : vector<1x64x256xf32> to vector<64x256xf32>
    %cst_176 = arith.constant dense<0.000000e+00> : vector<8x256xf32>
    %449 = tpu.matmul %446, %448, %cst_176 {dimension_numbers = #tpu.dot_dimension_numbers<[1], [0], [0], [1], [0, 0, 1, 1], [], []>} : vector<8x64xf32>, vector<64x256xf32>, vector<8x256xf32> -> vector<8x256xf32>
    %c3_177 = arith.constant 3 : index
    %c0_178 = arith.constant 0 : index
    %450 = vector.load %arg10[%c3_177, %c0_178] : memref<4x256xf32, #tpu.memory_space<vmem>>, vector<1x256xf32>
    %451 = vector.shape_cast %450 : vector<1x256xf32> to vector<256xf32>
    %452 = vector.shape_cast %451 : vector<256xf32> to vector<1x256xf32>
    %453 = vector.broadcast %452 : vector<1x256xf32> to vector<8x256xf32>
    %454 = arith.addf %449, %453 : vector<8x256xf32>
    %cst_179 = arith.constant 0.000000e+00 : f32
    %455 = vector.broadcast %cst_179 : f32 to vector<8x256xf32>
    %456 = arith.maximumf %454, %455 : vector<8x256xf32>
    %c3_180 = arith.constant 3 : index
    %c0_181 = arith.constant 0 : index
    %c0_182 = arith.constant 0 : index
    %457 = vector.load %arg11[%c3_180, %c0_181, %c0_182] : memref<4x256x64xf32, #tpu.memory_space<vmem>>, vector<1x256x64xf32>
    %458 = vector.shape_cast %457 : vector<1x256x64xf32> to vector<256x64xf32>
    %cst_183 = arith.constant dense<0.000000e+00> : vector<8x64xf32>
    %459 = tpu.matmul %456, %458, %cst_183 {dimension_numbers = #tpu.dot_dimension_numbers<[1], [0], [0], [1], [0, 0, 1, 1], [], []>} : vector<8x256xf32>, vector<256x64xf32>, vector<8x64xf32> -> vector<8x64xf32>
    %c3_184 = arith.constant 3 : index
    %c0_185 = arith.constant 0 : index
    %460 = vector.load %arg12[%c3_184, %c0_185] : memref<4x64xf32, #tpu.memory_space<vmem>>, vector<1x64xf32>
    %461 = vector.shape_cast %460 : vector<1x64xf32> to vector<64xf32>
    %462 = vector.shape_cast %461 : vector<64xf32> to vector<1x64xf32>
    %463 = vector.broadcast %462 : vector<1x64xf32> to vector<8x64xf32>
    %464 = arith.addf %459, %463 : vector<8x64xf32>
    %465 = arith.addf %418, %464 : vector<8x64xf32>
    %c0_186 = arith.constant 0 : index
    %c0_187 = arith.constant 0 : index
    %466 = vector.load %arg13[%c0_186, %c0_187] : memref<1x64xf32, #tpu.memory_space<vmem>>, vector<1x64xf32>
    %c0_188 = arith.constant 0 : index
    %c0_189 = arith.constant 0 : index
    %467 = vector.load %arg14[%c0_188, %c0_189] : memref<1x64xf32, #tpu.memory_space<vmem>>, vector<1x64xf32>
    %cst_190 = arith.constant dense<0.000000e+00> : vector<8xf32>
    %468 = vector.multi_reduction <add>, %465, %cst_190 [1] : vector<8x64xf32> to vector<8xf32>
    %469 = vector.shape_cast %468 : vector<8xf32> to vector<8x1xf32>
    %cst_191 = arith.constant 6.400000e+01 : f32
    %470 = vector.broadcast %cst_191 : f32 to vector<8x1xf32>
    %471 = arith.divf %469, %470 : vector<8x1xf32>
    %472 = vector.broadcast %471 : vector<8x1xf32> to vector<8x64xf32>
    %473 = arith.subf %465, %472 : vector<8x64xf32>
    %474 = arith.mulf %473, %473 : vector<8x64xf32>
    %cst_192 = arith.constant dense<0.000000e+00> : vector<8xf32>
    %475 = vector.multi_reduction <add>, %474, %cst_192 [1] : vector<8x64xf32> to vector<8xf32>
    %476 = vector.shape_cast %475 : vector<8xf32> to vector<8x1xf32>
    %cst_193 = arith.constant 6.400000e+01 : f32
    %477 = vector.broadcast %cst_193 : f32 to vector<8x1xf32>
    %478 = arith.divf %476, %477 : vector<8x1xf32>
    %479 = vector.broadcast %471 : vector<8x1xf32> to vector<8x64xf32>
    %480 = arith.subf %465, %479 : vector<8x64xf32>
    %cst_194 = arith.constant 9.99999974E-6 : f32
    %481 = vector.broadcast %cst_194 : f32 to vector<8x1xf32>
    %482 = arith.addf %478, %481 : vector<8x1xf32>
    %483 = math.rsqrt %482 : vector<8x1xf32>
    %484 = vector.broadcast %483 : vector<8x1xf32> to vector<8x64xf32>
    %485 = arith.mulf %480, %484 : vector<8x64xf32>
    %486 = vector.broadcast %466 : vector<1x64xf32> to vector<8x64xf32>
    %487 = arith.mulf %485, %486 : vector<8x64xf32>
    %488 = vector.broadcast %467 : vector<1x64xf32> to vector<8x64xf32>
    %489 = arith.addf %487, %488 : vector<8x64xf32>
    %c0_195 = arith.constant 0 : index
    %c0_196 = arith.constant 0 : index
    %490 = vector.load %arg15[%c0_195, %c0_196] : memref<64x128xf32, #tpu.memory_space<vmem>>, vector<64x128xf32>
    %cst_197 = arith.constant dense<0.000000e+00> : vector<8x128xf32>
    %491 = tpu.matmul %489, %490, %cst_197 {dimension_numbers = #tpu.dot_dimension_numbers<[1], [0], [0], [1], [0, 0, 1, 1], [], []>} : vector<8x64xf32>, vector<64x128xf32>, vector<8x128xf32> -> vector<8x128xf32>
    %c0_198 = arith.constant 0 : index
    %c0_199 = arith.constant 0 : index
    %492 = vector.load %arg16[%c0_198, %c0_199] : memref<1x128xf32, #tpu.memory_space<vmem>>, vector<1x128xf32>
    %493 = vector.broadcast %492 : vector<1x128xf32> to vector<8x128xf32>
    %494 = arith.addf %491, %493 : vector<8x128xf32>
    %c0_200 = arith.constant 0 : index
    %c0_201 = arith.constant 0 : index
    %c0_202 = arith.constant 0 : index
    %495 = vector.load %arg17[%c0_200, %c0_201, %c0_202] : memref<1x8x128xf32, #tpu.memory_space<vmem>>, vector<1x8x128xf32>
    %496 = vector.shape_cast %495 : vector<1x8x128xf32> to vector<8x128xf32>
    %497 = vector.shape_cast %494 : vector<8x128xf32> to vector<1x8x128xf32>
    tpu.vector_store %arg17[%c0_200, %c0_201, %c0_202], %497 {strides = array<i32>} : memref<1x8x128xf32, #tpu.memory_space<vmem>>, vector<1x8x128xf32>,
    return
  }
  func.func @transform_0(%arg0: i32) -> (i32, i32, i32) {
    %c0_i32 = arith.constant 0 : i32
    %c0_i32_0 = arith.constant 0 : i32
    %c0_i32_1 = arith.constant 0 : i32
    return %arg0, %c0_i32, %c0_i32_0 : i32, i32, i32
  }
  func.func @transform_1(%arg0: i32) -> (i32, i32) {
    %c0_i32 = arith.constant 0 : i32
    %c0_i32_0 = arith.constant 0 : i32
    %c0_i32_1 = arith.constant 0 : i32
    return %c0_i32, %c0_i32_0 : i32, i32
  }
  func.func @transform_2(%arg0: i32) -> (i32, i32) {
    %c0_i32 = arith.constant 0 : i32
    %c0_i32_0 = arith.constant 0 : i32
    %c0_i32_1 = arith.constant 0 : i32
    return %c0_i32, %c0_i32_0 : i32, i32
  }
  func.func @transform_3(%arg0: i32) -> (i32, i32, i32) {
    %c0_i32 = arith.constant 0 : i32
    %c0_i32_0 = arith.constant 0 : i32
    %c0_i32_1 = arith.constant 0 : i32
    %c0_i32_2 = arith.constant 0 : i32
    return %c0_i32, %c0_i32_0, %c0_i32_1 : i32, i32, i32
  }
  func.func @transform_4(%arg0: i32) -> (i32, i32, i32) {
    %c0_i32 = arith.constant 0 : i32
    %c0_i32_0 = arith.constant 0 : i32
    %c0_i32_1 = arith.constant 0 : i32
    %c0_i32_2 = arith.constant 0 : i32
    return %c0_i32, %c0_i32_0, %c0_i32_1 : i32, i32, i32
  }
  func.func @transform_5(%arg0: i32) -> (i32, i32) {
    %c0_i32 = arith.constant 0 : i32
    %c0_i32_0 = arith.constant 0 : i32
    %c0_i32_1 = arith.constant 0 : i32
    return %c0_i32, %c0_i32_0 : i32, i32
  }
  func.func @transform_6(%arg0: i32) -> (i32, i32) {
    %c0_i32 = arith.constant 0 : i32
    %c0_i32_0 = arith.constant 0 : i32
    %c0_i32_1 = arith.constant 0 : i32
    return %c0_i32, %c0_i32_0 : i32, i32
  }
  func.func @transform_7(%arg0: i32) -> (i32, i32) {
    %c0_i32 = arith.constant 0 : i32
    %c0_i32_0 = arith.constant 0 : i32
    %c0_i32_1 = arith.constant 0 : i32
    return %c0_i32, %c0_i32_0 : i32, i32
  }
  func.func @transform_8(%arg0: i32) -> (i32, i32, i32) {
    %c0_i32 = arith.constant 0 : i32
    %c0_i32_0 = arith.constant 0 : i32
    %c0_i32_1 = arith.constant 0 : i32
    %c0_i32_2 = arith.constant 0 : i32
    return %c0_i32, %c0_i32_0, %c0_i32_1 : i32, i32, i32
  }
  func.func @transform_9(%arg0: i32) -> (i32, i32) {
    %c0_i32 = arith.constant 0 : i32
    %c0_i32_0 = arith.constant 0 : i32
    %c0_i32_1 = arith.constant 0 : i32
    return %c0_i32, %c0_i32_0 : i32, i32
  }
  func.func @transform_10(%arg0: i32) -> (i32, i32, i32) {
    %c0_i32 = arith.constant 0 : i32
    %c0_i32_0 = arith.constant 0 : i32
    %c0_i32_1 = arith.constant 0 : i32
    %c0_i32_2 = arith.constant 0 : i32
    return %c0_i32, %c0_i32_0, %c0_i32_1 : i32, i32, i32
  }
  func.func @transform_11(%arg0: i32) -> (i32, i32) {
    %c0_i32 = arith.constant 0 : i32
    %c0_i32_0 = arith.constant 0 : i32
    %c0_i32_1 = arith.constant 0 : i32
    return %c0_i32, %c0_i32_0 : i32, i32
  }
  func.func @transform_12(%arg0: i32) -> (i32, i32) {
    %c0_i32 = arith.constant 0 : i32
    %c0_i32_0 = arith.constant 0 : i32
    %c0_i32_1 = arith.constant 0 : i32
    return %c0_i32, %c0_i32_0 : i32, i32
  }
  func.func @transform_13(%arg0: i32) -> (i32, i32) {
    %c0_i32 = arith.constant 0 : i32
    %c0_i32_0 = arith.constant 0 : i32
    %c0_i32_1 = arith.constant 0 : i32
    return %c0_i32, %c0_i32_0 : i32, i32
  }
  func.func @transform_14(%arg0: i32) -> (i32, i32) {
    %c0_i32 = arith.constant 0 : i32
    %c0_i32_0 = arith.constant 0 : i32
    %c0_i32_1 = arith.constant 0 : i32
    return %c0_i32, %c0_i32_0 : i32, i32
  }
  func.func @transform_15(%arg0: i32) -> (i32, i32) {
    %c0_i32 = arith.constant 0 : i32
    %c0_i32_0 = arith.constant 0 : i32
    %c0_i32_1 = arith.constant 0 : i32
    return %c0_i32, %c0_i32_0 : i32, i32
  }
  func.func @transform_16(%arg0: i32) -> (i32, i32, i32) {
    %c0_i32 = arith.constant 0 : i32
    %c0_i32_0 = arith.constant 0 : i32
    %c0_i32_1 = arith.constant 0 : i32
    return %arg0, %c0_i32, %c0_i32_0 : i32, i32, i32
  }
}

</mosaic_0001>

<bundles_post_ra>
// kernel: tpu_custom_call.1
= control target key start
LH: loop header
LB: loop body
LE: loop exit
PB: predicated region body
PF: predicated region fallthrough
CT: control target
= control target key end

     0   :  { %s7724_s0 = inlined_call_operand.vmem [shape: f32[2,8,64], index: 0, kind: input, shape index: {}]   ;;  %s7725_s1 = inlined_call_operand.vmem [shape: f32[4,64], index: 1, kind: input, shape index: {}]   ;;  %s7726_s2 = inlined_call_operand.vmem [shape: f32[4,64], index: 2, kind: input, shape index: {}]   ;;  %s7727_s3 = inlined_call_operand.vmem [shape: f32[4,64,192], index: 3, kind: input, shape index: {}]   ;;  %s7728_s4 = inlined_call_operand.vmem [shape: f32[4,64,64], index: 4, kind: input, shape index: {}]   ;;  %s7729_s5 = inlined_call_operand.vmem [shape: f32[4,64], index: 5, kind: input, shape index: {}]   ;;  %s7730_s6 = inlined_call_operand.vmem [shape: f32[4,64], index: 6, kind: input, shape index: {}]   ;;  %s7731_s7 = inlined_call_operand.vmem [shape: f32[4,64], index: 7, kind: input, shape index: {}]   ;;  %s7732_s8 = inlined_call_operand.vmem [shape: f32[4,64,256], index: 8, kind: input, shape index: {}]   ;;  %s7733_s9 = inlined_call_operand.vmem [shape: f32[4,256], index: 9, kind: input, shape index: {}]   ;;  %s7734_s10 = inlined_call_operand.vmem [shape: f32[4,256,64], index: 10, kind: input, shape index: {}]   ;;  %s7735_s11 = inlined_call_operand.vmem [shape: f32[4,64], index: 11, kind: input, shape index: {}]   ;;  %s7736_s12 = inlined_call_operand.vmem [shape: f32[1,64], index: 12, kind: input, shape index: {}]   ;;  %s7737_s13 = inlined_call_operand.vmem [shape: f32[1,64], index: 13, kind: input, shape index: {}]   ;;  %s7738_s14 = inlined_call_operand.vmem [shape: f32[64,128], index: 14, kind: input, shape index: {}]   ;;  %s7739_s15 = inlined_call_operand.vmem [shape: f32[1,128], index: 15, kind: input, shape index: {}]   ;;  %s7740_s16 = inlined_call_operand.hbm [shape: f32[2,8,128], index: 16, kind: output, shape index: {}]  }
   0x1   :  { %7765 = sst [smem:[#allocation12_spill]] %s7724_s0 }
   0x2   :  { %7766 = sst [smem:[#allocation13_spill]] %s7736_s12 }
   0x3   :  { %7767 = sst [smem:[#allocation14_spill]] %s7737_s13 }
   0x4   :  { %7768 = sst [smem:[#allocation15_spill]] %s7739_s15 }
   0x5   :  { %7769 = sst [smem:[#allocation16_spill]] %s7740_s16 }
   0x6   :  { %21 = vsyncpa [#allocation3], 0 }
   0x7   :  { %23 = vsyncpa [#allocation3 + $0x1], 0  ;;  %s5626_s21 = smov 0   ;;  %s5628_s22 = smov 0  }
   0x8   :  { %s5630_s23 = smov 0   ;;  %s5632_s24 = smov 0  }
   0x9 LB: > { %7770 = sst [smem:[#allocation5_spill]] %s5517_s21  ;;  %s5647_s25 = sadd.s32 4294967295, %s5529_s24   ;;  %s5529_s24 = sphi %s5632_s24, %s7818_s24   ;;  %s5525_s23 = sphi %s5630_s23, %s7820_s23   ;;  %s5521_s22 = sphi %s5628_s22, %s7822_s22   ;;  %s5517_s21 = sphi %s5626_s21, %s7821_s21  }
   0xa   : > { %7771 = sst [smem:[#allocation6_spill]] %s5525_s23  ;;  %s5008_s26 = sadd.s32 4294967294, %s5529_s24  }
   0xb   : > { %7772 = sst [smem:[#allocation7_spill]] %s5529_s24  ;;  %s5651_s27 = sadd.s32 1, %s5529_s24  }
   0xc   : > { %7773 = sst [smem:[#allocation8_spill]] %s5651_s27  ;;  %s377_s28 = sadd.s32 1, %s5525_s23 }
   0xd   : > { %s374_s29 = ssub.s32 %s5529_s24, %s5651_s27  ;;  %p387_p0 = scmp.ne.s32.totalorder %s5525_s23, %s5521_s22 }
   0xe   : > { %p375_p1 = scmp.eq.s32.totalorder %s374_s29, 0  ;;  %p388_p2 = scmp.eq.s32.totalorder %s5647_s25, 1 }
   0xf   : > { %p393_p3 = scmp.ne.s32.totalorder %s5521_s22, %s5517_s21  ;;  %p394_p4 = scmp.eq.s32.totalorder %s5008_s26, 1 }
  0x10   : > { %s5662_s30 = scalar_select %p375_p1, %s5525_s23, %s377_s28  }
  0x11   : > { %p5664_p5 = por %p388_p2, %p387_p0  ;;  %p5668_p6 = por %p394_p4, %p393_p3 }
  0x12   : > { %7774 = sst [smem:[#allocation9_spill]] %s5662_s30  ;;  %p5011_p7 = scmp.ge.s32.totalorder %s5529_s24, 1 }
  0x13   : > { %s7775_s0 = scalar_select %p5664_p5, 1, 0 }
  0x14   : > { %s7777_s17 = scalar_select %p5668_p6, 1, 0 }
  0x15   : > { %7776 = sst [smem:[#allocation10_spill]] %s7775_s0  ;;  %p464_p8 = scmp.lt.s32.totalorder %s5529_s24, 3 }
  0x16   : > { %7778 = sst [smem:[#allocation11_spill]] %s7777_s17 }
  0x17   : > { %p465_p9 = pnand %p5011_p7, %p464_p8 }
  0x18   : > { %p513_p10 = scmp.lt.s32.totalorder (!%p465_p9), %s5647_s25, 1  ;;  %s7779_s28 = sld [smem:[#allocation12_spill]] (!%p465_p9) }
  0x19   : > { %468 = sbr.rel (%p465_p9) target bundleno = 8449 (0x2101), region = 84  ;;  %s7758_s23 = smov (!%p465_p9), 80  }
  0x1a   : > { %s7750_s27 = smov (!%p465_p9), 112   ;;  %s7746_s21 = smov (!%p465_p9), 64  }
  0x1b   : > { %s7754_s17 = smov (!%p465_p9), 96   ;;  %s7756_s20 = smov (!%p465_p9), 16  }
  0x1c   : > { %s7788_s26 = smov (!%p465_p9), 16   ;;  %s5303_s0 = sshll.u32 (!%p465_p9), %s5647_s25, 3 }
  0x1e   : > { %s514_s18 = scalar_select %p513_p10, %s5647_s25, 1  ;;  %vm7764_vm0 = vcmask 523264   ;;  %v5531_v2 = vmov 64.0   ;;  %v573_v14 = vld [vmem:[%s7727_s3 + $0x70] sm:$0xff]  ;;  %v574_v15 = vld [vmem:[%s7727_s3 + $0x78] sm:$0xff]  ;;  %v571_v16 = vld [vmem:[%s7727_s3 + $0x60] sm:$0xff] }
  0x1f   : > { %5382 = vrcp.f32 %v5531_v2  ;;  %586 = vmatpush.msra.mxu0 %v573_v14  ;;  %606 = vmatpush.msra.mxu1 %v574_v15  ;;  %v572_v17 = vld [vmem:[%s7727_s3 + $0x68] sm:$0xff]  ;;  %v569_v18 = vld [vmem:[%s7727_s3 + $0x50] sm:$0xff]  ;;  %v570_v19 = vld [vmem:[%s7727_s3 + $0x58] sm:$0xff]  ;;  %vm629_vm5 = vcmask 1047556   ;;  %v5536_v48 = vmov 1983009808  }
  0x20   : > { %s5013_s19 = sshll.u32 %s514_s18, 3  ;;  %v567_v20 = vld [vmem:[%s7727_s3 + $0x40] sm:$0xff]  ;;  %v568_v21 = vld [vmem:[%s7727_s3 + $0x48] sm:$0xff]  ;;  %v565_v22 = vld [vmem:[%s7727_s3 + $0x30] sm:$0xff]  ;;  %v634_v49 = vunpack.c.l.s4 %v5536_v48  ;;  %v5537_v55 = vmov 1934713408  }
  0x21   : > { %s5679_s29 = scalar_lea.vmem %s7779_s28, %s5013_s19  ;;  %587 = vmatpush.msra.mxu0 %v571_v16  ;;  %607 = vmatpush.msra.mxu1 %v572_v17  ;;  %v566_v23 = vld [vmem:[%s7727_s3 + $0x38] sm:$0xff]  ;;  %v563_v24 = vld [vmem:[%s7727_s3 + $0x20] sm:$0xff]  ;;  %v564_v25 = vld [vmem:[%s7727_s3 + $0x28] sm:$0xff]  ;;  %v658_v56 = vunpack.c.l.s4 %v5537_v55  ;;  %vm981_vm6 = vcmask 130048   ;;  %vm1096_vm8 = vcmask 64512   ;;  %s7748_s18 = smov 32  }
  0x22   : > { %v517_v0 = vld [vmem:[%s5679_s29] sm:$0xff]  ;;  %v561_v26 = vld [vmem:[%s7727_s3 + $0x10] sm:$0xff]  ;;  %v562_v27 = vld [vmem:[%s7727_s3 + $0x18] sm:$0xff]  ;;  %v5752_v54 = vunpack.c.0.s8 %v634_v49  ;;  %s7752_s19 = smov 48   ;;  %s7787_s28 = smov 48  }
  0x23   : > { %v526_v1 = vsel %vm7764_vm0, %v517_v0, 0.0  ;;  %588 = vmatpush.msra.mxu0 %v569_v18  ;;  %608 = vmatpush.msra.mxu1 %v570_v19  ;;  %v559_v28 = vld [vmem:[%s7727_s3] sm:$0xff]  ;;  %v560_v29 = vld [vmem:[%s7727_s3 + $0x8] sm:$0xff]  ;;  %v5756_v61 = vunpack.c.0.s8 %v658_v56 }
  0x24   : > { %527 = vadd.xlane.f32.xlu0 %v526_v1  ;;  %v5355_v39 = vld [vmem:[%s7725_s1] ss:$0 sm:$0xff] }
  0x25   : > { %v5383_v3 = vpop.eup %5382  ;;  %589 = vmatpush.msra.mxu0 %v567_v20  ;;  %609 = vmatpush.msra.mxu1 %v568_v21  ;;  %v5356_v42 = vld [vmem:[%s7726_s2] ss:$0 sm:$0xff] }
  0x26   : > { %v530_v4 = vmul.f32 64.0, %v5383_v3  ;;  %vm534_vm1 = vweird.f32 %v5383_v3 }
  0x27   : > { %590 = vmatpush.msra.mxu0 %v565_v22  ;;  %610 = vmatpush.msra.mxu1 %v566_v23 }
  0x28   : > { %v531_v5 = vsub.f32 1.0, %v530_v4 }
  0x29   : > { %591 = vmatpush.msra.mxu0 %v563_v24  ;;  %611 = vmatpush.msra.mxu1 %v564_v25 }
  0x2a   : > { %v532_v6 = vmul.f32 %v5383_v3, %v531_v5 }
  0x2b   : > { %592 = vmatpush.msra.mxu0 %v561_v26  ;;  %612 = vmatpush.msra.mxu1 %v562_v27 }
  0x2c   : > { %v533_v7 = vadd.f32 %v5383_v3, %v532_v6 }
  0x2d   : > { %593 = vmatpush.msra.mxu0 %v559_v28  ;;  %613 = vmatpush.msra.mxu1 %v560_v29 }
  0x2e   : > { %v5683_v8 = vsel %vm534_vm1, %v5383_v3, %v533_v7 }
  0x97   : > { %v528_v9 = vpop.xlane.xlu0 %527 }
  0x98   : > { %v536_v10 = vmul.f32 %v5683_v8, %v528_v9 }
  0x9a   : > { %v537_v11 = vsub.f32 %v517_v0, %v536_v10 }
  0x9c   : > { %v538_v12 = vmul.f32 %v537_v11, %v537_v11 }
  0x9e   : > { %v539_v13 = vsel %vm7764_vm0, %v538_v12, 0.0 }
  0x9f   : > { %540 = vadd.xlane.f32.xlu0 %v539_v13 }
 0x112   : > { %v541_v30 = vpop.xlane.xlu0 %540 }
 0x113   : > { %v542_v31 = vmul.f32 %v541_v30, %v5683_v8 }
 0x115   : > { %v543_v32 = vadd.f32 1e-05, %v542_v31 }
 0x117   : > { %5384 = vrsqrt.f32 %v543_v32  ;;  %vm550_vm3 = vweird.f32 %v543_v32 }
 0x11d   : > { %v5385_v33 = vpop.eup %5384 }
 0x11e   : > { %v545_v34 = vmul.f32 %v5385_v33, %v543_v32  ;;  %vm551_vm2 = vweird.f32 %v5385_v33 }
 0x11f   : > { %vm552_vm4 = vmor %vm550_vm3, %vm551_vm2 }
 0x120   : > { %v546_v35 = vmul.f32 %v5385_v33, %v545_v34 }
 0x122   : > { %v547_v36 = vmul.f32 0.5, %v546_v35 }
 0x124   : > { %v548_v37 = vsub.f32 1.5, %v547_v36 }
 0x126   : > { %v549_v38 = vmul.f32 %v5385_v33, %v548_v37 }
 0x128   : > { %v553_v40 = vsel %vm552_vm4, %v5385_v33, %v549_v38 }
 0x129   : > { %v554_v41 = vmul.f32 %v553_v40, %v537_v11 }
 0x12b   : > { %v556_v43 = vmul.f32 %v5355_v39, %v554_v41 }
 0x12d   : > { %v558_v44 = vadd.f32 %v5356_v42, %v556_v43 }
 0x12f   : > { %5014 = vmatmul.msk.f32.vlgmr.msra.gmra.mxu0 %vm7764_vm0, %v558_v44  ;;  %5015 = vmatmul.msk.f32.vlgmr.msra.gmra.mxu1 %vm7764_vm0, %v558_v44 }
 0x1ac   : > { %v595_v45 = vpop.f32.mrf.mxu0 }
 0x1ad   : > { %625 = vrot.lane.b32.xlu2 %v595_v45, %s7758_s23  ;;  %619 = vrot.lane.b32.xlu1 %v595_v45, %s7750_s27  ;;  %v631_v58 = vrot.slane %v595_v45, 4 }
 0x1b5   : > { %739 = vrot.lane.b32.xlu2 %v595_v45, %s7746_s21  ;;  %622 = vrot.lane.b32.xlu1 %v595_v45, %s7754_s17 }
 0x207   : > { %v626_v46 = vpop.permute.xlu2 %625 }
 0x208   : > { %745 = vrot.lane.b32.xlu2 %v626_v46, %s7746_s21  ;;  %v641_v47 = vrot.slane %v626_v46, 4 }
 0x20f   : > { %v740_v55 = vpop.permute.xlu2 %739 }
 0x21f   : > { %v620_v50 = vpop.permute.xlu1 %619 }
 0x220   : > { %v642_v51 = vsel %vm629_vm5, %v641_v47, %v620_v50  ;;  %v643_v52 = vrot.slane %v620_v50, 4  ;;  %741 = vrot.lane.b32.xlu0 %v620_v50, %s7746_s21 }
 0x221   : > { %v648_v59 = vperm.slane %v642_v51, %v5752_v54 }
 0x222   : > { %v644_v53 = vsel %vm629_vm5, %v626_v46, %v643_v52 }
 0x223   : > { %v652_v57 = vperm.slane %v644_v53, %v5752_v54  ;;  %v653_v3 = vrot.slane %v648_v59, 4 }
 0x225   : > { %v665_v0 = vrot.slane %v652_v57, 4 }
 0x227   : > { %v623_v60 = vpop.permute.xlu1 %622 }
 0x228   : > { %v628_v62 = vrot.slane %v623_v60, 4  ;;  %v632_v63 = vsel %vm629_vm5, %v623_v60, %v631_v58  ;;  %743 = vrot.lane.b32.xlu1 %v623_v60, %s7746_s21 }
 0x229   : > { %v640_v1 = vperm.slane %v632_v63, %v5752_v54 }
 0x22a   : > { %v630_v2 = vsel %vm629_vm5, %v628_v62, %v595_v45 }
 0x22b   : > { %v636_v4 = vperm.slane %v630_v2, %v5752_v54  ;;  %v666_v5 = vsel %vm629_vm5, %v665_v0, %v640_v1  ;;  %v667_v6 = vrot.slane %v640_v1, 4  ;;  %v753_v0 = vrot.slane %v740_v55, 4 }
 0x22c   : > { %v672_v7 = vperm.slane %v666_v5, %v5756_v61 }
 0x22d   : > { %v654_v9 = vsel %vm629_vm5, %v653_v3, %v636_v4  ;;  %v655_v10 = vrot.slane %v636_v4, 4  ;;  %v668_v11 = vsel %vm629_vm5, %v652_v57, %v667_v6 }
 0x22e   : > { %v660_v12 = vperm.slane %v654_v9, %v5756_v61  ;;  %v676_v13 = vperm.slane %v668_v11, %v5756_v61  ;;  %v681_v16 = vrot.slane %v672_v7, 4 }
 0x22f   : > { %v656_v14 = vsel %vm629_vm5, %v648_v59, %v655_v10 }
 0x230   : > { %v664_v15 = vperm.slane %v656_v14, %v5756_v61  ;;  %v683_v17 = vrot.slane %v676_v13, 4  ;;  %v677_v18 = vrot.slane %v660_v12, 4  ;;  %v682_v25 = vsel %vm629_vm5, 0.0, %v681_v16 }
 0x232   : > { %v679_v19 = vrot.slane %v664_v15, 4  ;;  %v684_v20 = vsel %vm629_vm5, 0.0, %v683_v17  ;;  %v696_v21 = vsel %vm629_vm5, %v683_v17, %v672_v7  ;;  %v678_v31 = vsel %vm629_vm5, 0.0, %v677_v18 }
 0x233   : > { %v701_v22 = vrot.slane %v684_v20, 4  ;;  %v700_v23 = vperm.slane %v696_v21, %v5752_v54 }
 0x234   : > { %v680_v24 = vsel %vm629_vm5, 0.0, %v679_v19  ;;  %v685_v26 = vsel %vm629_vm5, %v679_v19, %v660_v12 }
 0x235   : > { %v702_v27 = vsel %vm629_vm5, %v701_v22, %v682_v25  ;;  %v689_v28 = vperm.slane %v685_v26, %v5752_v54  ;;  %v690_v29 = vrot.slane %v680_v24, 4  ;;  %v721_v30 = vrot.slane %v700_v23, 4 }
 0x236   : > { %v706_v32 = vperm.slane %v702_v27, %v5752_v54 }
 0x237   : > { %v691_v33 = vsel %vm629_vm5, %v690_v29, %v678_v31  ;;  %v709_v34 = vrot.slane %v689_v28, 4 }
 0x238   : > { %v695_v35 = vperm.slane %v691_v33, %v5752_v54  ;;  %v719_v36 = vrot.slane %v706_v32, 4  ;;  %v722_v37 = vsel %vm629_vm5, %v706_v32, %v721_v30 }
 0x239   : > { %v730_v38 = vperm.slane %v722_v37, %v5756_v61 }
 0x23a   : > { %v707_v39 = vrot.slane %v695_v35, 4  ;;  %v720_v40 = vsel %vm629_vm5, %v719_v36, %v700_v23  ;;  %v710_v41 = vsel %vm629_vm5, %v695_v35, %v709_v34 }
 0x23b   : > { %v726_v42 = vperm.slane %v720_v40, %v5756_v61  ;;  %v718_v43 = vperm.slane %v710_v41, %v5756_v61  ;;  %v735_v44 = vrot.slane %v730_v38, 4 }
 0x23c   : > { %v708_v45 = vsel %vm629_vm5, %v707_v39, %v689_v28 }
 0x23d   : > { %v714_v46 = vperm.slane %v708_v45, %v5756_v61  ;;  %v731_v47 = vrot.slane %v726_v42, 4  ;;  %v5792_v48 = vsel %vm629_vm5, %v735_v44, %v718_v43  ;;  %v737_v49 = vrot.slane %v718_v43, 4 }
 0x23f   : > { %v5795_v50 = vsel %vm629_vm5, %v731_v47, %v714_v46  ;;  %v733_v51 = vrot.slane %v714_v46, 4  ;;  %v5798_v52 = vsel %vm629_vm5, %v730_v38, %v737_v49 }
 0x241   : > { %v5801_v53 = vsel %vm629_vm5, %v726_v42, %v733_v51 }
 0x262   : > { %v746_v56 = vpop.permute.xlu2 %745 }
 0x263   : > { %v763_v59 = vrot.slane %v746_v56, 4 }
 0x292   : > { %v742_v57 = vpop.permute.xlu0 %741 }
 0x293   : > { %v765_v58 = vrot.slane %v742_v57, 4  ;;  %v764_v62 = vsel %vm629_vm5, %v763_v59, %v742_v57 }
 0x294   : > { %v770_v1 = vperm.slane %v764_v62, %v5752_v54 }
 0x295   : > { %v766_v60 = vsel %vm629_vm5, %v746_v56, %v765_v58 }
 0x296   : > { %v774_v63 = vperm.slane %v766_v60, %v5752_v54  ;;  %v775_v9 = vrot.slane %v770_v1, 4 }
 0x298   : > { %v787_v5 = vrot.slane %v774_v63, 4 }
 0x29a   : > { %v744_v2 = vpop.permute.xlu1 %743 }
 0x29b   : > { %v751_v3 = vrot.slane %v744_v2, 4  ;;  %v754_v4 = vsel %vm629_vm5, %v744_v2, %v753_v0 }
 0x29c   : > { %v762_v6 = vperm.slane %v754_v4, %v5752_v54 }
 0x29d   : > { %v752_v7 = vsel %vm629_vm5, %v751_v3, %v740_v55 }
 0x29e   : > { %v758_v10 = vperm.slane %v752_v7, %v5752_v54  ;;  %v788_v11 = vsel %vm629_vm5, %v787_v5, %v762_v6  ;;  %v789_v12 = vrot.slane %v762_v6, 4 }
 0x29f   : > { %v794_v13 = vperm.slane %v788_v11, %v5756_v61 }
 0x2a0   : > { %v776_v14 = vsel %vm629_vm5, %v775_v9, %v758_v10  ;;  %v777_v15 = vrot.slane %v758_v10, 4  ;;  %v790_v16 = vsel %vm629_vm5, %v774_v63, %v789_v12 }
 0x2a1   : > { %v782_v17 = vperm.slane %v776_v14, %v5756_v61  ;;  %v798_v18 = vperm.slane %v790_v16, %v5756_v61  ;;  %v803_v21 = vrot.slane %v794_v13, 4 }
 0x2a2   : > { %v778_v19 = vsel %vm629_vm5, %v770_v1, %v777_v15  ;;  %v518_v1 = vlaneseq }
 0x2a3   : > { %v786_v20 = vperm.slane %v778_v19, %v5756_v61  ;;  %v805_v22 = vrot.slane %v798_v18, 4  ;;  %v799_v23 = vrot.slane %v782_v17, 4  ;;  %v804_v30 = vsel %vm629_vm5, 0.0, %v803_v21  ;;  %v615_v18 = vpop.f32.mrf.mxu1 }
 0x2a4   : > { %v519_v2 = vshrl.u32 %v518_v1, 7  ;;  %v521_v3 = vand.u32 127, %v518_v1 }
 0x2a5   : > { %v801_v24 = vrot.slane %v786_v20, 4  ;;  %v806_v25 = vsel %vm629_vm5, 0.0, %v805_v22  ;;  %v818_v26 = vsel %vm629_vm5, %v805_v22, %v794_v13  ;;  %v800_v36 = vsel %vm629_vm5, 0.0, %v799_v23 }
 0x2a6   : > { %v823_v27 = vrot.slane %v806_v25, 4  ;;  %v822_v28 = vperm.slane %v818_v26, %v5752_v54  ;;  %vm5855_vm7 = vcmp.ge.s32.totalorder %v519_v2, %v521_v3 }
 0x2a7   : > { %v802_v29 = vsel %vm629_vm5, 0.0, %v801_v24  ;;  %v807_v31 = vsel %vm629_vm5, %v801_v24, %v782_v17 }
 0x2a8   : > { %v812_v32 = vrot.slane %v802_v29, 4  ;;  %v824_v33 = vsel %vm629_vm5, %v823_v27, %v804_v30  ;;  %v811_v34 = vperm.slane %v807_v31, %v5752_v54  ;;  %v843_v35 = vrot.slane %v822_v28, 4 }
 0x2a9   : > { %v828_v37 = vperm.slane %v824_v33, %v5752_v54 }
 0x2aa   : > { %v813_v38 = vsel %vm629_vm5, %v812_v32, %v800_v36  ;;  %v831_v39 = vrot.slane %v811_v34, 4 }
 0x2ab   : > { %v817_v40 = vperm.slane %v813_v38, %v5752_v54  ;;  %v841_v41 = vrot.slane %v828_v37, 4  ;;  %v844_v42 = vsel %vm629_vm5, %v828_v37, %v843_v35  ;;  %v873_v37 = vrot.slane %v615_v18, 4 }
 0x2ac   : > { %v852_v43 = vperm.slane %v844_v42, %v5756_v61 }
 0x2ad   : > { %v829_v44 = vrot.slane %v817_v40, 4  ;;  %v842_v45 = vsel %vm629_vm5, %v841_v41, %v822_v28  ;;  %v832_v46 = vsel %vm629_vm5, %v817_v40, %v831_v39 }
 0x2ae   : > { %v848_v47 = vperm.slane %v842_v45, %v5756_v61  ;;  %v840_v49 = vperm.slane %v832_v46, %v5756_v61  ;;  %v857_v55 = vrot.slane %v852_v43, 4 }
 0x2af   : > { %v830_v51 = vsel %vm629_vm5, %v829_v44, %v811_v34 }
 0x2b0   : > { %v836_v56 = vperm.slane %v830_v51, %v5756_v61  ;;  %v853_v57 = vrot.slane %v848_v47, 4  ;;  %v859_v58 = vrot.slane %v840_v49, 4  ;;  %v858_v62 = vsel %vm629_vm5, %v857_v55, %v840_v49 }
 0x2b2   : > { %v854_v59 = vsel %vm629_vm5, %v853_v57, %v836_v56  ;;  %v855_v60 = vrot.slane %v836_v56, 4  ;;  %v860_v0 = vsel %vm629_vm5, %v852_v43, %v859_v58 }
 0x2b3   : > { %5016 = vmatpush.xpose.msk.msra.mxu2 %vm981_vm6, %v854_v59 }
 0x2b4   : > { %v856_v63 = vsel %vm629_vm5, %v848_v47, %v855_v60 }
 0x2b5   : > { %5018 = vmatpush.xpose.msk.msra.mxu3 %vm981_vm6, %v856_v63 }
 0x2b6   : > { %5017 = vmatmul.msk.f32.vlgmr.msra.gmra.mxu2 %vm981_vm6, %v5795_v50 }
 0x2b7   : > { %5020 = vmatpush.xpose.msk.msrb.mxu2 %vm981_vm6, %v858_v62 }
 0x2b8   : > { %5019 = vmatmul.msk.f32.vlgmr.msra.gmra.mxu3 %vm981_vm6, %v5801_v53 }
 0x2b9   : > { %5022 = vmatpush.xpose.msk.msrb.mxu3 %vm981_vm6, %v860_v0 }
 0x2be   : > { %5021 = vmatmul.msk.f32.vlgmr.msrb.gmra.mxu2 %vm981_vm6, %v5792_v48 }
 0x2c0   : > { %5023 = vmatmul.msk.f32.vlgmr.msrb.gmra.mxu3 %vm981_vm6, %v5798_v52 }
 0x339   : > { %v1005_v4 = vpop.f32.mrf.mxu2 }
 0x33a   : > { %v1086_v50 = vmul.f32 0.125, %v1005_v4 }
 0x33b   : > { %v1031_v6 = vpop.f32.mrf.mxu3 }
 0x33c   : > { %v1087_v7 = vmul.f32 0.125, %v1031_v6  ;;  %v1092_v53 = vsel %vm5855_vm7, %v1086_v50, -inf }
 0x33d   : > { %v1097_v48 = vsel %vm1096_vm8, %v1092_v53, -inf }
 0x33e   : > { %1098 = vmax.xlane.f32.xlu1 %v1097_v48  ;;  %v1093_v52 = vsel %vm5855_vm7, %v1087_v7, -inf }
 0x33f   : > { %v1100_v9 = vsel %vm1096_vm8, %v1093_v52, -inf }
 0x340   : > { %1101 = vmax.xlane.f32.xlu2 %v1100_v9 }
 0x341   : > { %v1057_v10 = vpop.f32.mrf.mxu2 }
 0x342   : > { %v1088_v11 = vmul.f32 0.125, %v1057_v10 }
 0x343   : > { %v1083_v12 = vpop.f32.mrf.mxu3 }
 0x344   : > { %v1089_v13 = vmul.f32 0.125, %v1083_v12  ;;  %v1094_v14 = vsel %vm5855_vm7, %v1088_v11, -inf }
 0x345   : > { %v1103_v15 = vsel %vm1096_vm8, %v1094_v14, -inf }
 0x346   : > { %1104 = vmax.xlane.f32.xlu0 %v1103_v15  ;;  %v1095_v16 = vsel %vm5855_vm7, %v1089_v13, -inf }
 0x347   : > { %v1106_v17 = vsel %vm1096_vm8, %v1095_v16, -inf }
 0x348   : > { %1107 = vmax.xlane.f32.xlu2 %v1106_v17 }
 0x357   : > { %862 = vrot.lane.b32.xlu1 %v615_v18, %s7750_s27  ;;  %s7812_s27 = sld [smem:[#allocation16_spill]] }
 0x35a   : > { %868 = vrot.lane.b32.xlu0 %v615_v18, %s7758_s23  ;;  %s7783_s23 = smov 96  }
 0x35d   : > { %s4944_s24 = scalar_lea.hbm %s7812_s27, %s5303_s0  ;;  %s5487_s30 = scalar_lea.hbm %s7812_s27, 16 }
 0x360   : > { %865 = vrot.lane.b32.xlu2 %v615_v18, %s7754_s17 }
 0x3b1   : > { %v1099_v19 = vpop.xlane.xlu1 %1098 }
 0x3b2   : > { %v1109_v20 = vsub.f32 %v1092_v53, %v1099_v19 }
 0x3b3   : > { %v1102_v21 = vpop.xlane.xlu2 %1101 }
 0x3b4   : > { %v1113_v22 = vmul.f32 1.442695, %v1109_v20  ;;  %v1110_v23 = vsub.f32 %v1093_v52, %v1102_v21 }
 0x3b6   : > { %5386 = vpow2.f32 %v1113_v22  ;;  %v1115_v24 = vmul.f32 1.442695, %v1110_v23 }
 0x3b8   : > { %5388 = vpow2.f32 %v1115_v24 }
 0x3b9   : > { %v1105_v25 = vpop.xlane.xlu0 %1104 }
 0x3ba   : > { %v1111_v26 = vsub.f32 %v1094_v14, %v1105_v25 }
 0x3bb   : > { %v1108_v27 = vpop.xlane.xlu2 %1107 }
 0x3bc   : > { %v5874_v28 = vpop.eup %5386  ;;  %v1117_v29 = vmul.f32 1.442695, %v1111_v26  ;;  %v1112_v30 = vsub.f32 %v1095_v16, %v1108_v27 }
 0x3bd   : > { %v1121_v31 = vsel %vm1096_vm8, %v5874_v28, 0.0 }
 0x3be   : > { %v5878_v32 = vpop.eup %5388  ;;  %5390 = vpow2.f32 %v1117_v29  ;;  %v1119_v33 = vmul.f32 1.442695, %v1112_v30  ;;  %1122 = vadd.xlane.f32.xlu1 %v1121_v31 }
 0x3bf   : > { %v1124_v34 = vsel %vm1096_vm8, %v5878_v32, 0.0 }
 0x3c0   : > { %5392 = vpow2.f32 %v1119_v33  ;;  %1125 = vadd.xlane.f32.xlu2 %v1124_v34 }
 0x3c3   : > { %v866_v35 = vpop.permute.xlu2 %865 }
 0x3c4   : > { %v5882_v36 = vpop.eup %5390  ;;  %v871_v38 = vrot.slane %v866_v35, 4  ;;  %v874_v41 = vsel %vm629_vm5, %v866_v35, %v873_v37 }
 0x3c5   : > { %v1127_v39 = vsel %vm1096_vm8, %v5882_v36, 0.0  ;;  %v882_v45 = vperm.slane %v874_v41, %v5752_v54 }
 0x3c6   : > { %v5886_v40 = vpop.eup %5392  ;;  %1128 = vadd.xlane.f32.xlu0 %v1127_v39  ;;  %v872_v43 = vsel %vm629_vm5, %v871_v38, %v615_v18 }
 0x3c7   : > { %v1130_v42 = vsel %vm1096_vm8, %v5886_v40, 0.0  ;;  %v878_v47 = vperm.slane %v872_v43, %v5752_v54  ;;  %v909_v56 = vrot.slane %v882_v45, 4 }
 0x3c8   : > { %1131 = vadd.xlane.f32.xlu1 %v1130_v42 }
 0x3c9   : > { %v863_v44 = vpop.permute.xlu1 %862  ;;  %v897_v59 = vrot.slane %v878_v47, 4 }
 0x3ca   : > { %v885_v46 = vrot.slane %v863_v44, 4 }
 0x3cc   : > { %v869_v49 = vpop.permute.xlu0 %868 }
 0x3cd   : > { %v883_v51 = vrot.slane %v869_v49, 4  ;;  %v886_v55 = vsel %vm629_vm5, %v869_v49, %v885_v46 }
 0x3ce   : > { %v894_v57 = vperm.slane %v886_v55, %v5752_v54 }
 0x3cf   : > { %v884_v58 = vsel %vm629_vm5, %v883_v51, %v863_v44 }
 0x3d0   : > { %v890_v60 = vperm.slane %v884_v58, %v5752_v54  ;;  %v907_v62 = vrot.slane %v894_v57, 4  ;;  %v910_v63 = vsel %vm629_vm5, %v894_v57, %v909_v56 }
 0x3d1   : > { %v918_v0 = vperm.slane %v910_v63, %v5756_v61 }
 0x3d2   : > { %v895_v1 = vrot.slane %v890_v60, 4  ;;  %v898_v2 = vsel %vm629_vm5, %v890_v60, %v897_v59  ;;  %v908_v3 = vsel %vm629_vm5, %v907_v62, %v882_v45 }
 0x3d3   : > { %v906_v4 = vperm.slane %v898_v2, %v5756_v61  ;;  %v914_v50 = vperm.slane %v908_v3, %v5756_v61  ;;  %v925_v6 = vrot.slane %v918_v0, 4 }
 0x3d4   : > { %v896_v7 = vsel %vm629_vm5, %v895_v1, %v878_v47 }
 0x3d5   : > { %v902_v53 = vperm.slane %v896_v7, %v5756_v61  ;;  %v921_v48 = vrot.slane %v906_v4, 4  ;;  %v923_v52 = vrot.slane %v914_v50, 4  ;;  %v926_v9 = vsel %vm629_vm5, 0.0, %v925_v6 }
 0x3d6   : > { %v938_v10 = vsel %vm629_vm5, %v925_v6, %v914_v50  ;;  %v943_v11 = vrot.slane %v926_v9, 4 }
 0x3d7   : > { %v922_v12 = vsel %vm629_vm5, 0.0, %v921_v48  ;;  %v924_v13 = vsel %vm629_vm5, 0.0, %v923_v52  ;;  %v942_v14 = vperm.slane %v938_v10, %v5752_v54  ;;  %v919_v15 = vrot.slane %v902_v53, 4 }
 0x3d8   : > { %v932_v16 = vrot.slane %v922_v12, 4  ;;  %v927_v17 = vsel %vm629_vm5, %v921_v48, %v902_v53  ;;  %v944_v18 = vsel %vm629_vm5, %v943_v11, %v924_v13 }
 0x3d9   : > { %v920_v19 = vsel %vm629_vm5, 0.0, %v919_v15  ;;  %v931_v20 = vperm.slane %v927_v17, %v5752_v54  ;;  %v948_v21 = vperm.slane %v944_v18, %v5752_v54  ;;  %v963_v22 = vrot.slane %v942_v14, 4 }
 0x3da   : > { %v933_v23 = vsel %vm629_vm5, %v932_v16, %v920_v19 }
 0x3db   : > { %v937_v24 = vperm.slane %v933_v23, %v5752_v54  ;;  %v951_v25 = vrot.slane %v931_v20, 4  ;;  %v961_v26 = vrot.slane %v948_v21, 4  ;;  %v964_v27 = vsel %vm629_vm5, %v948_v21, %v963_v22 }
 0x3dc   : > { %v972_v29 = vperm.slane %v964_v27, %v5756_v61 }
 0x3dd   : > { %v949_v30 = vrot.slane %v937_v24, 4  ;;  %v952_v31 = vsel %vm629_vm5, %v937_v24, %v951_v25  ;;  %v962_v33 = vsel %vm629_vm5, %v961_v26, %v942_v14 }
 0x3de   : > { %v960_v34 = vperm.slane %v952_v31, %v5756_v61  ;;  %v977_v35 = vrot.slane %v972_v29, 4  ;;  %v968_v37 = vperm.slane %v962_v33, %v5756_v61 }
 0x3df   : > { %v950_v38 = vsel %vm629_vm5, %v949_v30, %v931_v20 }
 0x3e0   : > { %v978_v39 = vsel %vm629_vm5, %v977_v35, %v960_v34  ;;  %v956_v41 = vperm.slane %v950_v38, %v5756_v61  ;;  %v973_v42 = vrot.slane %v968_v37, 4  ;;  %v979_v43 = vrot.slane %v960_v34, 4 }
 0x3e1   : > { %1257 = vmatpush.msrb.mxu0 %v978_v39 }
 0x3e2   : > { %v974_v44 = vsel %vm629_vm5, %v973_v42, %v956_v41  ;;  %v980_v45 = vsel %vm629_vm5, %v972_v29, %v979_v43  ;;  %v975_v46 = vrot.slane %v956_v41, 4 }
 0x3e3   : > { %1211 = vmatpush.msra.mxu2 %v974_v44  ;;  %1280 = vmatpush.msrb.mxu1 %v980_v45 }
 0x3e4   : > { %v976_v47 = vsel %vm629_vm5, %v968_v37, %v975_v46 }
 0x3e5   : > { %1234 = vmatpush.msra.mxu3 %v976_v47 }
 0x431   : > { %v1123_v49 = vpop.xlane.xlu1 %1122 }
 0x432   : > { %5394 = vrcp.f32 %v1123_v49  ;;  %v1142_v63 = vand.u32 2147483647, %v1123_v49  ;;  %v1144_v0 = vand.u32 2147483648, %v1123_v49  ;;  %vm1138_vm10 = vweird.f32 %v1123_v49 }
 0x433   : > { %v1126_v51 = vpop.xlane.xlu2 %1125 }
 0x434   : > { %5396 = vrcp.f32 %v1126_v51  ;;  %v1159_v3 = vand.u32 2147483648, %v1126_v51  ;;  %v1157_v6 = vand.u32 2147483647, %v1126_v51  ;;  %vm1143_vm13 = vcmp.eq.f32.partialorder %v1142_v63, 8.507059e+37 }
 0x435   : > { %v1145_v53 = vor.u32 1.1754944e-38, %v1144_v0  ;;  %vm1153_vm14 = vweird.f32 %v1126_v51 }
 0x436   : > { %v1160_v12 = vor.u32 1.1754944e-38, %v1159_v3  ;;  %vm1158_vm1 = vcmp.eq.f32.partialorder %v1157_v6, 8.507059e+37 }
 0x438   : > { %v5395_v55 = vpop.eup %5394 }
 0x439   : > { %v1134_v56 = vmul.f32 %v5395_v55, %v1123_v49  ;;  %v1129_v57 = vpop.xlane.xlu0 %1128  ;;  %vm1139_vm9 = vweird.f32 %v5395_v55 }
 0x43a   : > { %v5397_v58 = vpop.eup %5396  ;;  %5398 = vrcp.f32 %v1129_v57  ;;  %vm1140_vm12 = vmor %vm1138_vm10, %vm1139_vm9  ;;  %v1172_v17 = vand.u32 2147483647, %v1129_v57  ;;  %v1174_v18 = vand.u32 2147483648, %v1129_v57  ;;  %vm1168_vm3 = vweird.f32 %v1129_v57 }
 0x43b   : > { %v1135_v59 = vsub.f32 1.0, %v1134_v56  ;;  %v1149_v60 = vmul.f32 %v5397_v58, %v1126_v51  ;;  %v1132_v62 = vpop.xlane.xlu1 %1131  ;;  %vm1154_vm11 = vweird.f32 %v5397_v58 }
 0x43c   : > { %5400 = vrcp.f32 %v1132_v62  ;;  %vm1155_vm15 = vmor %vm1153_vm14, %vm1154_vm11  ;;  %v1189_v23 = vand.u32 2147483648, %v1132_v62  ;;  %v1187_v26 = vand.u32 2147483647, %v1132_v62  ;;  %v1175_v27 = vor.u32 1.1754944e-38, %v1174_v18 }
 0x43d   : > { %v1136_v1 = vmul.f32 %v5395_v55, %v1135_v59  ;;  %v1150_v2 = vsub.f32 1.0, %v1149_v60  ;;  %vm1173_vm10 = vcmp.eq.f32.partialorder %v1172_v17, 8.507059e+37  ;;  %vm1183_vm11 = vweird.f32 %v1132_v62 }
 0x43e   : > { %v1190_v30 = vor.u32 1.1754944e-38, %v1189_v23  ;;  %vm1408_vm14 = vcmask 261120  }
 0x43f   : > { %v1137_v4 = vadd.f32 %v5395_v55, %v1136_v1  ;;  %v1151_v50 = vmul.f32 %v5397_v58, %v1150_v2 }
 0x440   : > { %v5399_v7 = vpop.eup %5398 }
 0x441   : > { %v1141_v48 = vsel %vm1140_vm12, %v5395_v55, %v1137_v4  ;;  %v1152_v52 = vadd.f32 %v5397_v58, %v1151_v50  ;;  %v1164_v9 = vmul.f32 %v5399_v7, %v1129_v57  ;;  %vm1169_vm2 = vweird.f32 %v5399_v7 }
 0x442   : > { %v5401_v10 = vpop.eup %5400  ;;  %v1146_v11 = vsel %vm1143_vm13, %v1145_v53, %v1141_v48  ;;  %vm1170_vm9 = vmor %vm1168_vm3, %vm1169_vm2  ;;  %vm1188_vm13 = vcmp.eq.f32.partialorder %v1187_v26, 8.507059e+37 }
 0x443   : > { %v1156_v13 = vsel %vm1155_vm15, %v5397_v58, %v1152_v52  ;;  %v1165_v14 = vsub.f32 1.0, %v1164_v9  ;;  %v1179_v15 = vmul.f32 %v5401_v10, %v1132_v62  ;;  %v1147_v19 = vmul.f32 %v5874_v28, %v1146_v11 }
 0x444   : > { %v1161_v16 = vsel %vm1158_vm1, %v1160_v12, %v1156_v13  ;;  %vm1184_vm4 = vweird.f32 %v5401_v10  ;;  %vm1410_vm15 = vcmask 392192  }
 0x445   : > { %v1166_v20 = vmul.f32 %v5399_v7, %v1165_v14  ;;  %v1180_v21 = vsub.f32 1.0, %v1179_v15  ;;  %v1162_v22 = vmul.f32 %v5878_v32, %v1161_v16  ;;  %5024 = vmatmul.msk.f32.vlgmr.msra.gmra.mxu2 %vm1096_vm8, %v1147_v19  ;;  %vm1185_vm12 = vmor %vm1183_vm11, %vm1184_vm4 }
 0x447   : > { %v1167_v24 = vadd.f32 %v5399_v7, %v1166_v20  ;;  %v1181_v25 = vmul.f32 %v5401_v10, %v1180_v21  ;;  %5025 = vmatmul.msk.f32.vlgmr.msra.gmra.mxu3 %vm1096_vm8, %v1162_v22 }
 0x449   : > { %v1182_v29 = vadd.f32 %v5401_v10, %v1181_v25  ;;  %v1171_v28 = vsel %vm1170_vm9, %v5399_v7, %v1167_v24 }
 0x44a   : > { %v1176_v31 = vsel %vm1173_vm10, %v1175_v27, %v1171_v28 }
 0x44b   : > { %v1177_v32 = vmul.f32 %v5882_v36, %v1176_v31  ;;  %v1186_v33 = vsel %vm1185_vm12, %v5401_v10, %v1182_v29 }
 0x44c   : > { %v1191_v34 = vsel %vm1188_vm13, %v1190_v30, %v1186_v33 }
 0x44d   : > { %5026 = vmatmul.msk.f32.vlgmr.msrb.gmra.mxu0 %vm1096_vm8, %v1177_v32  ;;  %v1192_v35 = vmul.f32 %v5886_v40, %v1191_v34 }
 0x44f   : > { %5027 = vmatmul.msk.f32.vlgmr.msrb.gmra.mxu1 %vm1096_vm8, %v1192_v35 }
 0x4c8   : > { %v1213_v37 = vpop.f32.mrf.mxu2 }
 0x4c9   : > { %v1287_v38 = vrot.slane %v1213_v37, 4 }
 0x4ca   : > { %v1236_v39 = vpop.f32.mrf.mxu3  ;;  %v1259_v41 = vpop.f32.mrf.mxu0 }
 0x4cb   : > { %v1299_v42 = vrot.slane %v1236_v39, 4  ;;  %v1285_v43 = vrot.slane %v1259_v41, 4  ;;  %v1288_v44 = vsel %vm629_vm5, %v1259_v41, %v1287_v38 }
 0x4cc   : > { %v1282_v45 = vpop.f32.mrf.mxu1  ;;  %v1296_v36 = vperm.slane %v1288_v44, %v5752_v54  ;;  %v1419_v44 = vld [vmem:[%s7728_s4 + $0x38] sm:$0xff] }
 0x4cd   : > { %v1286_v46 = vsel %vm629_vm5, %v1285_v43, %v1213_v37  ;;  %v1297_v47 = vrot.slane %v1282_v45, 4  ;;  %v1300_v49 = vsel %vm629_vm5, %v1282_v45, %v1299_v42  ;;  %v1418_v45 = vld [vmem:[%s7728_s4 + $0x30] sm:$0xff]  ;;  %1433 = vmatpush.msrb.mxu2 %v1419_v44 }
 0x4ce   : > { %v1292_v40 = vperm.slane %v1286_v46, %v5752_v54  ;;  %v1308_v51 = vperm.slane %v1300_v49, %v5752_v54  ;;  %v1323_v55 = vrot.slane %v1296_v36, 4  ;;  %v1417_v46 = vld [vmem:[%s7728_s4 + $0x28] sm:$0xff]  ;;  %v1414_v49 = vld [vmem:[%s7728_s4 + $0x10] sm:$0xff] }
 0x4cf   : > { %v1298_v56 = vsel %vm629_vm5, %v1297_v47, %v1236_v39  ;;  %1434 = vmatpush.msrb.mxu2 %v1418_v45  ;;  %v1415_v47 = vld [vmem:[%s7728_s4 + $0x18] sm:$0xff] }
 0x4d0   : > { %v1311_v57 = vrot.slane %v1292_v40, 4  ;;  %v1304_v58 = vperm.slane %v1298_v56, %v5752_v54  ;;  %v1321_v59 = vrot.slane %v1308_v51, 4  ;;  %v1324_v60 = vsel %vm629_vm5, %v1308_v51, %v1323_v55  ;;  %v1412_v51 = vld [vmem:[%s7728_s4] sm:$0xff]  ;;  %v1548_v45 = vld [vmem:[%s7734_s10 + $0x38] sm:$0xff] }
 0x4d1   : > { %v1332_v1 = vperm.slane %v1324_v60, %v5756_v61  ;;  %1435 = vmatpush.msrb.mxu2 %v1417_v46  ;;  %v1564_v46 = vld [vmem:[%s7734_s10 + $0xb8] sm:$0xff] }
 0x4d2   : > { %v1309_v62 = vrot.slane %v1304_v58, 4  ;;  %v1312_v63 = vsel %vm629_vm5, %v1304_v58, %v1311_v57  ;;  %v1322_v0 = vsel %vm629_vm5, %v1321_v59, %v1296_v36  ;;  %v1416_v36 = vld [vmem:[%s7728_s4 + $0x20] sm:$0xff] }
 0x4d3   : > { %v1320_v2 = vperm.slane %v1312_v63, %v5756_v61  ;;  %v1328_v3 = vperm.slane %v1322_v0, %v5756_v61  ;;  %v1339_v50 = vrot.slane %v1332_v1, 4  ;;  %1436 = vmatpush.msrb.mxu2 %v1416_v36  ;;  %v5466_v1 = vld [vmem:[%s5679_s29] sm:$0xff]  ;;  %s7786_s29 = smov 32  }
 0x4d4   : > { %v1310_v4 = vsel %vm629_vm5, %v1309_v62, %v1292_v40  ;;  %v1413_v40 = vld [vmem:[%s7728_s4 + $0x8] sm:$0xff]  ;;  %v5357_v62 = vld [vmem:[%s7729_s5] ss:$0 sm:$0xff] }
 0x4d5   : > { %v1316_v6 = vperm.slane %v1310_v4, %v5756_v61  ;;  %v1335_v7 = vrot.slane %v1320_v2, 4  ;;  %v1337_v53 = vrot.slane %v1328_v3, 4  ;;  %v1340_v48 = vsel %vm629_vm5, 0.0, %v1339_v50  ;;  %1437 = vmatpush.msrb.mxu2 %v1415_v47  ;;  %v1547_v47 = vld [vmem:[%s7734_s10 + $0x30] sm:$0xff] }
 0x4d6   : > { %v1352_v52 = vsel %vm629_vm5, %v1339_v50, %v1328_v3  ;;  %v1357_v14 = vrot.slane %v1340_v48, 4  ;;  %v1488_v48 = vld [vmem:[%s7732_s8 + $0x70] sm:$0xff] }
 0x4d7   : > { %v1333_v9 = vrot.slane %v1316_v6, 4  ;;  %v1336_v10 = vsel %vm629_vm5, 0.0, %v1335_v7  ;;  %v1338_v11 = vsel %vm629_vm5, 0.0, %v1337_v53  ;;  %v1356_v12 = vperm.slane %v1352_v52, %v5752_v54  ;;  %1438 = vmatpush.msrb.mxu2 %v1414_v49  ;;  %v1489_v52 = vld [vmem:[%s7732_s8 + $0x78] sm:$0xff]  ;;  %1507 = vmatpush.msrb.mxu3 %v1488_v48  ;;  %v1563_v49 = vld [vmem:[%s7734_s10 + $0xb0] sm:$0xff] }
 0x4d8   : > { %v1346_v13 = vrot.slane %v1336_v10, 4  ;;  %v1341_v15 = vsel %vm629_vm5, %v1335_v7, %v1316_v6  ;;  %v1358_v20 = vsel %vm629_vm5, %v1357_v14, %v1338_v11  ;;  %v1487_v10 = vld [vmem:[%s7732_s8 + $0x68] sm:$0xff]  ;;  %v1484_v11 = vld [vmem:[%s7732_s8 + $0x50] sm:$0xff] }
 0x4d9   : > { %v1334_v16 = vsel %vm629_vm5, 0.0, %v1333_v9  ;;  %v1345_v17 = vperm.slane %v1341_v15, %v5752_v54  ;;  %v1377_v18 = vrot.slane %v1356_v12, 4  ;;  %v1362_v22 = vperm.slane %v1358_v20, %v5752_v54  ;;  %1439 = vmatpush.msrb.mxu2 %v1413_v40  ;;  %v1486_v9 = vld [vmem:[%s7732_s8 + $0x60] sm:$0xff]  ;;  %v1483_v14 = vld [vmem:[%s7732_s8 + $0x48] sm:$0xff]  ;;  %v1480_v15 = vld [vmem:[%s7732_s8 + $0x30] sm:$0xff] }
 0x4da   : > { %v1347_v19 = vsel %vm629_vm5, %v1346_v13, %v1334_v16  ;;  %1508 = vmatpush.msrb.mxu3 %v1486_v9  ;;  %v1482_v13 = vld [vmem:[%s7732_s8 + $0x40] sm:$0xff]  ;;  %v1481_v16 = vld [vmem:[%s7732_s8 + $0x38] sm:$0xff]  ;;  %v1559_v48 = vld [vmem:[%s7734_s10 + $0x90] sm:$0xff] }
 0x4db   : > { %v1351_v21 = vperm.slane %v1347_v19, %v5752_v54  ;;  %v1365_v23 = vrot.slane %v1345_v17, 4  ;;  %v1378_v25 = vsel %vm629_vm5, %v1362_v22, %v1377_v18  ;;  %v1375_v27 = vrot.slane %v1362_v22, 4  ;;  %1440 = vmatpush.msrb.mxu2 %v1412_v51  ;;  %v1479_v18 = vld [vmem:[%s7732_s8 + $0x28] sm:$0xff]  ;;  %v1476_v19 = vld [vmem:[%s7732_s8 + $0x10] sm:$0xff]  ;;  %v1477_v20 = vld [vmem:[%s7732_s8 + $0x18] sm:$0xff] }
 0x4dc   : > { %v1386_v28 = vperm.slane %v1378_v25, %v5756_v61  ;;  %1509 = vmatpush.msrb.mxu3 %v1484_v11  ;;  %v1475_v22 = vld [vmem:[%s7732_s8 + $0x8] sm:$0xff]  ;;  %v1555_v25 = vld [vmem:[%s7734_s10 + $0x70] sm:$0xff]  ;;  %v1541_v9 = vld [vmem:[%s7734_s10] sm:$0xff] }
 0x4dd   : > { %v1366_v24 = vsel %vm629_vm5, %v1351_v21, %v1365_v23  ;;  %v1363_v26 = vrot.slane %v1351_v21, 4  ;;  %v1376_v31 = vsel %vm629_vm5, %v1375_v27, %v1356_v12  ;;  %1527 = vmatpush.msra.mxu2 %v1489_v52  ;;  %v1485_v12 = vld [vmem:[%s7732_s8 + $0x58] sm:$0xff]  ;;  %v1474_v21 = vld [vmem:[%s7732_s8] sm:$0xff]  ;;  %v1554_v27 = vld [vmem:[%s7734_s10 + $0x68] sm:$0xff] }
 0x4de   : > { %v1374_v29 = vperm.slane %v1366_v24, %v5756_v61  ;;  %v1391_v32 = vrot.slane %v1386_v28, 4  ;;  %v1382_v35 = vperm.slane %v1376_v31, %v5756_v61  ;;  %1510 = vmatpush.msrb.mxu3 %v1482_v13  ;;  %v1556_v23 = vld [vmem:[%s7734_s10 + $0x78] sm:$0xff]  ;;  %v1553_v31 = vld [vmem:[%s7734_s10 + $0x60] sm:$0xff]  ;;  %v1546_v51 = vld [vmem:[%s7734_s10 + $0x28] sm:$0xff] }
 0x4df   : > { %v1364_v30 = vsel %vm629_vm5, %v1363_v26, %v1345_v17  ;;  %1528 = vmatpush.msra.mxu2 %v1487_v10  ;;  %v1478_v17 = vld [vmem:[%s7732_s8 + $0x20] sm:$0xff]  ;;  %v1572_v24 = vld [vmem:[%s7734_s10 + $0xf8] sm:$0xff]  ;;  %1575 = vmatpush.msra.mxu1 %v1556_v23  ;;  %v1571_v26 = vld [vmem:[%s7734_s10 + $0xf0] sm:$0xff] }
 0x4e0   : > { %v1393_v33 = vrot.slane %v1374_v29, 4  ;;  %v1370_v34 = vperm.slane %v1364_v30, %v5756_v61  ;;  %v1392_v37 = vsel %vm629_vm5, %v1391_v32, %v1374_v29  ;;  %v1387_v39 = vrot.slane %v1382_v35, 4  ;;  %1511 = vmatpush.msrb.mxu3 %v1480_v15  ;;  %v1570_v29 = vld [vmem:[%s7734_s10 + $0xe8] sm:$0xff]  ;;  %v1569_v32 = vld [vmem:[%s7734_s10 + $0xe0] sm:$0xff] }
 0x4e1   : > { %1400 = vrot.lane.b32.xlu0 %v1392_v37, %s7748_s18  ;;  %1529 = vmatpush.msra.mxu2 %v1485_v12  ;;  %v1551_v37 = vld [vmem:[%s7734_s10 + $0x50] sm:$0xff]  ;;  %v1558_v52 = vld [vmem:[%s7734_s10 + $0x88] sm:$0xff]  ;;  %v1557_v10 = vld [vmem:[%s7734_s10 + $0x80] sm:$0xff]  ;;  %s7782_s18 = smov 80  }
 0x4e2   : > { %v1394_v38 = vsel %vm629_vm5, %v1386_v28, %v1393_v33  ;;  %v1389_v41 = vrot.slane %v1370_v34, 4  ;;  %v1388_v43 = vsel %vm629_vm5, %v1387_v39, %v1370_v34  ;;  %1512 = vmatpush.msrb.mxu3 %v1478_v17  ;;  %1576 = vmatpush.msra.mxu1 %v1555_v25  ;;  %v1552_v34 = vld [vmem:[%s7734_s10 + $0x58] sm:$0xff]  ;;  %v1550_v39 = vld [vmem:[%s7734_s10 + $0x48] sm:$0xff]  ;;  %v1490_v11 = vld [vmem:[%s7733_s9] ss:$4 sm:$0x3] }
 0x4e3   : > { %1404 = vrot.lane.b32.xlu1 %v1394_v38, %s7752_s19  ;;  %1530 = vmatpush.msra.mxu2 %v1483_v14  ;;  %v1567_v38 = vld [vmem:[%s7734_s10 + $0xd0] sm:$0xff]  ;;  %v1492_v12 = vperm.slane %v1490_v11, 0  ;;  %v1493_v13 = vperm.slane %v1490_v11, 1  ;;  %s7784_s19 = smov 112  }
 0x4e4   : > { %v1390_v42 = vsel %vm629_vm5, %v1382_v35, %v1389_v41  ;;  %1513 = vmatpush.msrb.mxu3 %v1476_v19  ;;  %1577 = vmatpush.msra.mxu1 %v1554_v27  ;;  %v1568_v35 = vld [vmem:[%s7734_s10 + $0xd8] sm:$0xff]  ;;  %v1566_v41 = vld [vmem:[%s7734_s10 + $0xc8] sm:$0xff] }
 0x4e5   : > { %1396 = vrot.lane.b32.xlu2 %v1390_v42, %s7756_s20  ;;  %1531 = vmatpush.msra.mxu2 %v1481_v16  ;;  %v1549_v42 = vld [vmem:[%s7734_s10 + $0x40] sm:$0xff]  ;;  %s7785_s20 = smov 64  }
 0x4e6   : > { %1514 = vmatpush.msrb.mxu3 %v1474_v21  ;;  %1578 = vmatpush.msra.mxu1 %v1553_v31 }
 0x4e7   : > { %1532 = vmatpush.msra.mxu2 %v1479_v18 }
 0x4e8   : > { %1579 = vmatpush.msra.mxu1 %v1552_v34  ;;  %v5044_v34 = vld [vmem:[%s7727_s3 + $0xe8] sm:$0xff] }
 0x4e9   : > { %1533 = vmatpush.msra.mxu2 %v1477_v20  ;;  %v5360_v20 = vld [vmem:[%s7735_s11] ss:$0 sm:$0xff] }
 0x4ea   : > { %1580 = vmatpush.msra.mxu1 %v1551_v37  ;;  %v5042_v37 = vld [vmem:[%s7727_s3 + $0xd8] sm:$0xff] }
 0x4eb   : > { %1534 = vmatpush.msra.mxu2 %v1475_v22 }
 0x4ec   : > { %1581 = vmatpush.msra.mxu1 %v1550_v39  ;;  %v5040_v39 = vld [vmem:[%s7727_s3 + $0xc8] sm:$0xff] }
 0x4ee   : > { %1582 = vmatpush.msra.mxu1 %v1549_v42  ;;  %v5038_v42 = vld [vmem:[%s7727_s3 + $0xb8] sm:$0xff] }
 0x4f0   : > { %1583 = vmatpush.msra.mxu1 %v1548_v45  ;;  %v5033_v45 = vld [vmem:[%s7727_s3 + $0x90] sm:$0xff] }
 0x4f2   : > { %1584 = vmatpush.msra.mxu1 %v1547_v47  ;;  %v5032_v47 = vld [vmem:[%s7727_s3 + $0x88] sm:$0xff] }
 0x4f4   : > { %1585 = vmatpush.msra.mxu1 %v1546_v51 }
 0x53f   : > { %v1397_v55 = vpop.permute.xlu2 %1396 }
 0x540   : > { %v1407_v56 = vsel %vm981_vm6, %v1388_v43, %v1397_v55  ;;  %v1565_v43 = vld [vmem:[%s7734_s10 + $0xc0] sm:$0xff]  ;;  %v1562_v55 = vld [vmem:[%s7734_s10 + $0xa8] sm:$0xff] }
 0x553   : > { %v1401_v57 = vpop.permute.xlu0 %1400 }
 0x554   : > { %v1409_v59 = vsel %vm1408_vm14, %v1407_v56, %v1401_v57  ;;  %v1545_v57 = vld [vmem:[%s7734_s10 + $0x20] sm:$0xff] }
 0x555   : > { %v1405_v58 = vpop.permute.xlu1 %1404  ;;  %1586 = vmatpush.msra.mxu1 %v1545_v57 }
 0x556   : > { %v1411_v60 = vsel %vm1410_vm15, %v1409_v59, %v1405_v58  ;;  %v1561_v58 = vld [vmem:[%s7734_s10 + $0xa0] sm:$0xff] }
 0x557   : > { %5028 = vmatmul.msk.f32.vlgmr.msrb.gmra.mxu2 %vm7764_vm0, %v1411_v60  ;;  %v1544_v60 = vld [vmem:[%s7734_s10 + $0x18] sm:$0xff] }
 0x558   : > { %1595 = vmatpush.msrb.mxu2 %v1572_v24  ;;  %1587 = vmatpush.msra.mxu1 %v1544_v60 }
 0x55a   : > { %1596 = vmatpush.msrb.mxu2 %v1571_v26 }
 0x55c   : > { %1597 = vmatpush.msrb.mxu2 %v1570_v29 }
 0x55e   : > { %1598 = vmatpush.msrb.mxu2 %v1569_v32  ;;  %v5045_v32 = vld [vmem:[%s7727_s3 + $0xf0] sm:$0xff] }
 0x55f   : > { %1672 = vmatpush.msra.mxu3 %v5045_v32 }
 0x560   : > { %1599 = vmatpush.msrb.mxu2 %v1568_v35  ;;  %v5041_v35 = vld [vmem:[%s7727_s3 + $0xd0] sm:$0xff] }
 0x562   : > { %1600 = vmatpush.msrb.mxu2 %v1567_v38  ;;  %v5039_v38 = vld [vmem:[%s7727_s3 + $0xc0] sm:$0xff] }
 0x564   : > { %1601 = vmatpush.msrb.mxu2 %v1566_v41  ;;  %v5037_v41 = vld [vmem:[%s7727_s3 + $0xb0] sm:$0xff] }
 0x566   : > { %1602 = vmatpush.msrb.mxu2 %v1565_v43  ;;  %v5035_v43 = vld [vmem:[%s7727_s3 + $0xa0] sm:$0xff] }
 0x568   : > { %1603 = vmatpush.msrb.mxu2 %v1564_v46  ;;  %v5034_v46 = vld [vmem:[%s7727_s3 + $0x98] sm:$0xff] }
 0x56a   : > { %1604 = vmatpush.msrb.mxu2 %v1563_v49 }
 0x56c   : > { %1605 = vmatpush.msrb.mxu2 %v1562_v55 }
 0x56e   : > { %1606 = vmatpush.msrb.mxu2 %v1561_v58 }
 0x5da   : > { %v1442_v63 = vpop.f32.mrf.mxu2 }
 0x5db   : > { %v1443_v0 = vadd.f32 %v5357_v62, %v1442_v63  ;;  %v1560_v62 = vld [vmem:[%s7734_s10 + $0x98] sm:$0xff] }
 0x5dc   : > { %1607 = vmatpush.msrb.mxu2 %v1560_v62  ;;  %v5361_v62 = vld [vmem:[%s7725_s1 + $0x1] ss:$0 sm:$0xff] }
 0x5dd   : > { %v6013_v2 = vadd.f32 %v5466_v1, %v1443_v0  ;;  %v5358_v0 = vld [vmem:[%s7730_s6] ss:$0 sm:$0xff] }
 0x5de   : > { %1608 = vmatpush.msrb.mxu2 %v1559_v48 }
 0x5df   : > { %v1448_v3 = vsel %vm7764_vm0, %v6013_v2, 0.0 }
 0x5e0   : > { %1449 = vadd.xlane.f32.xlu0 %v1448_v3  ;;  %1609 = vmatpush.msrb.mxu2 %v1558_v52 }
 0x5e2   : > { %1610 = vmatpush.msrb.mxu2 %v1557_v10 }
 0x653   : > { %v1450_v4 = vpop.xlane.xlu0 %1449 }
 0x654   : > { %v1451_v50 = vmul.f32 %v1450_v4, %v5683_v8  ;;  %v5359_v4 = vld [vmem:[%s7731_s7] ss:$0 sm:$0xff] }
 0x656   : > { %v6019_v6 = vsub.f32 %v6013_v2, %v1451_v50 }
 0x658   : > { %v1453_v7 = vmul.f32 %v6019_v6, %v6019_v6 }
 0x65a   : > { %v1454_v53 = vsel %vm7764_vm0, %v1453_v7, 0.0 }
 0x65b   : > { %1455 = vadd.xlane.f32.xlu2 %v1454_v53  ;;  %v1543_v53 = vld [vmem:[%s7734_s10 + $0x10] sm:$0xff] }
 0x65c   : > { %1588 = vmatpush.msra.mxu1 %v1543_v53 }
 0x6ce   : > { %v1456_v28 = vpop.xlane.xlu2 %1455 }
 0x6cf   : > { %v1457_v30 = vmul.f32 %v1456_v28, %v5683_v8 }
 0x6d1   : > { %v1458_v33 = vadd.f32 1e-05, %v1457_v30 }
 0x6d3   : > { %5402 = vrsqrt.f32 %v1458_v33  ;;  %vm1465_vm2 = vweird.f32 %v1458_v33 }
 0x6d9   : > { %v5403_v44 = vpop.eup %5402 }
 0x6da   : > { %v1460_v36 = vmul.f32 %v5403_v44, %v1458_v33  ;;  %vm1466_vm1 = vweird.f32 %v5403_v44  ;;  %v5043_v33 = vld [vmem:[%s7727_s3 + $0xe0] sm:$0xff] }
 0x6db   : > { %vm1467_vm3 = vmor %vm1465_vm2, %vm1466_vm1  ;;  %1673 = vmatpush.msra.mxu3 %v5043_v33 }
 0x6dc   : > { %v1461_v40 = vmul.f32 %v5403_v44, %v1460_v36  ;;  %v5031_v36 = vld [vmem:[%s7727_s3 + $0x80] sm:$0xff] }
 0x6dd   : > { %1674 = vmatpush.msra.mxu3 %v5041_v35 }
 0x6de   : > { %v1462_v56 = vmul.f32 0.5, %v1461_v40 }
 0x6df   : > { %1675 = vmatpush.msra.mxu3 %v5039_v38 }
 0x6e0   : > { %v1463_v59 = vsub.f32 1.5, %v1462_v56 }
 0x6e1   : > { %1676 = vmatpush.msra.mxu3 %v5037_v41 }
 0x6e2   : > { %v1464_v63 = vmul.f32 %v5403_v44, %v1463_v59 }
 0x6e3   : > { %1677 = vmatpush.msra.mxu3 %v5035_v43 }
 0x6e4   : > { %v1468_v1 = vsel %vm1467_vm3, %v5403_v44, %v1464_v63  ;;  %v5036_v44 = vld [vmem:[%s7727_s3 + $0xa8] sm:$0xff] }
 0x6e5   : > { %v1469_v3 = vmul.f32 %v1468_v1, %v6019_v6  ;;  %v1542_v6 = vld [vmem:[%s7734_s10 + $0x8] sm:$0xff]  ;;  %1678 = vmatpush.msra.mxu3 %v5033_v45  ;;  %v5362_v1 = vld [vmem:[%s7726_s2 + $0x1] ss:$0 sm:$0xff] }
 0x6e6   : > { %1589 = vmatpush.msra.mxu1 %v1542_v6 }
 0x6e7   : > { %v1471_v50 = vmul.f32 %v5358_v0, %v1469_v3  ;;  %1679 = vmatpush.msra.mxu3 %v5031_v36 }
 0x6e8   : > { %1590 = vmatpush.msra.mxu1 %v1541_v9 }
 0x6e9   : > { %v1473_v7 = vadd.f32 %v5359_v4, %v1471_v50 }
 0x6eb   : > { %5029 = vmatmul.msk.f32.vlgmr.msrb.gmra.mxu3 %vm7764_vm0, %v1473_v7  ;;  %5030 = vmatmul.msk.f32.vlgmr.msra.gmra.mxu2 %vm7764_vm0, %v1473_v7 }
 0x76e   : > { %v1516_v14 = vpop.f32.mrf.mxu3  ;;  %v1536_v15 = vpop.f32.mrf.mxu2 }
 0x76f   : > { %v1517_v16 = vadd.f32 %v1516_v14, %v1492_v12  ;;  %v1537_v17 = vadd.f32 %v1536_v15, %v1493_v13 }
 0x771   : > { %v1539_v18 = vmax.f32 %v1517_v16, 0.0  ;;  %v1540_v19 = vmax.f32 %v1537_v17, 0.0 }
 0x773   : > { %1591 = vmatmul.f32.vlgmr.msra.gmra.mxu1 %v1539_v18  ;;  %1611 = vmatmul.f32.vlgmr.msrb.gmra.mxu2 %v1540_v19 }
 0x7f0   : > { %v1592_v21 = vpop.f32.mrf.mxu1 }
 0x7f1   : > { %v1593_v22 = vadd.f32 %v5360_v20, %v1592_v21 }
 0x7f6   : > { %v1612_v23 = vpop.f32.mrf.mxu2 }
 0x7f7   : > { %v1613_v24 = vadd.f32 %v1612_v23, %v1593_v22 }
 0x7f9   : > { %v6185_v25 = vadd.f32 %v1613_v24, %v6013_v2  ;;  %v5046_v2 = vld [vmem:[%s7727_s3 + $0xf8] sm:$0xff] }
 0x7fa   : > { %1692 = vmatpush.msra.mxu0 %v5046_v2 }
 0x7fb   : > { %v1618_v26 = vsel %vm7764_vm0, %v6185_v25, 0.0 }
 0x7fc   : > { %1619 = vadd.xlane.f32.xlu1 %v1618_v26  ;;  %1693 = vmatpush.msra.mxu0 %v5044_v34 }
 0x7fe   : > { %1694 = vmatpush.msra.mxu0 %v5042_v37 }
 0x800   : > { %1695 = vmatpush.msra.mxu0 %v5040_v39 }
 0x802   : > { %1696 = vmatpush.msra.mxu0 %v5038_v42 }
 0x804   : > { %1697 = vmatpush.msra.mxu0 %v5036_v44 }
 0x806   : > { %1698 = vmatpush.msra.mxu0 %v5034_v46 }
 0x808   : > { %1699 = vmatpush.msra.mxu0 %v5032_v47 }
 0x86f   : > { %v1620_v27 = vpop.xlane.xlu1 %1619 }
 0x870   : > { %v1621_v29 = vmul.f32 %v1620_v27, %v5683_v8 }
 0x872   : > { %v1622_v28 = vsub.f32 %v6185_v25, %v1621_v29 }
 0x874   : > { %v1623_v30 = vmul.f32 %v1622_v28, %v1622_v28 }
 0x876   : > { %v1624_v31 = vsel %vm7764_vm0, %v1623_v30, 0.0 }
 0x877   : > { %1625 = vadd.xlane.f32.xlu0 %v1624_v31 }
 0x8ea   : > { %v1626_v49 = vpop.xlane.xlu0 %1625 }
 0x8eb   : > { %v1627_v40 = vmul.f32 %v1626_v49, %v5683_v8 }
 0x8ed   : > { %v1628_v51 = vadd.f32 1e-05, %v1627_v40 }
 0x8ef   : > { %5404 = vrsqrt.f32 %v1628_v51  ;;  %vm1635_vm9 = vweird.f32 %v1628_v51 }
 0x8f5   : > { %v5405_v55 = vpop.eup %5404 }
 0x8f6   : > { %v1630_v56 = vmul.f32 %v5405_v55, %v1628_v51  ;;  %vm1636_vm4 = vweird.f32 %v5405_v55 }
 0x8f7   : > { %vm1637_vm10 = vmor %vm1635_vm9, %vm1636_vm4 }
 0x8f8   : > { %v1631_v57 = vmul.f32 %v5405_v55, %v1630_v56 }
 0x8fa   : > { %v1632_v58 = vmul.f32 0.5, %v1631_v57 }
 0x8fc   : > { %v1633_v59 = vsub.f32 1.5, %v1632_v58 }
 0x8fe   : > { %v1634_v60 = vmul.f32 %v5405_v55, %v1633_v59 }
 0x900   : > { %v1638_v63 = vsel %vm1637_vm10, %v5405_v55, %v1634_v60 }
 0x901   : > { %v1639_v0 = vmul.f32 %v1638_v63, %v1622_v28 }
 0x903   : > { %v1641_v3 = vmul.f32 %v5361_v62, %v1639_v0 }
 0x905   : > { %v1643_v4 = vadd.f32 %v5362_v1, %v1641_v3 }
 0x907   : > { %5047 = vmatmul.msk.f32.vlgmr.msra.gmra.mxu3 %vm7764_vm0, %v1643_v4  ;;  %5048 = vmatmul.msk.f32.vlgmr.msra.gmra.mxu0 %vm7764_vm0, %v1643_v4 }
 0x98a   : > { %v1681_v50 = vpop.f32.mrf.mxu3 }
 0x98b   : > { %1711 = vrot.lane.b32.xlu0 %v1681_v50, %s7782_s18  ;;  %1708 = vrot.lane.b32.xlu1 %v1681_v50, %s7783_s23  ;;  %v1716_v52 = vrot.slane %v1681_v50, 4 }
 0x98c   : > { %1705 = vrot.lane.b32.xlu2 %v1681_v50, %s7784_s19 }
 0x994   : > { %1824 = vrot.lane.b32.xlu2 %v1681_v50, %s7785_s20 }
 0x9e6   : > { %v1706_v7 = vpop.permute.xlu2 %1705 }
 0x9e7   : > { %1826 = vrot.lane.b32.xlu0 %v1706_v7, %s7785_s20  ;;  %v1728_v11 = vrot.slane %v1706_v7, 4 }
 0x9ee   : > { %v1825_v16 = vpop.permute.xlu2 %1824 }
 0x9ef   : > { %v1838_v44 = vrot.slane %v1825_v16, 4 }
 0x9fd   : > { %v1712_v53 = vpop.permute.xlu0 %1711  ;;  %v1709_v48 = vpop.permute.xlu1 %1708 }
 0x9fe   : > { %1828 = vrot.lane.b32.xlu1 %v1709_v48, %s7785_s20  ;;  %1830 = vrot.lane.b32.xlu2 %v1712_v53, %s7785_s20  ;;  %v1714_v6 = vrot.slane %v1709_v48, 4  ;;  %v1717_v9 = vsel %vm629_vm5, %v1709_v48, %v1716_v52  ;;  %v1726_v12 = vrot.slane %v1712_v53, 4  ;;  %v1729_v15 = vsel %vm629_vm5, %v1712_v53, %v1728_v11 }
 0x9ff   : > { %v1725_v13 = vperm.slane %v1717_v9, %v5752_v54  ;;  %v1737_v19 = vperm.slane %v1729_v15, %v5752_v54 }
 0xa00   : > { %v1715_v10 = vsel %vm629_vm5, %v1714_v6, %v1681_v50  ;;  %v1727_v17 = vsel %vm629_vm5, %v1726_v12, %v1706_v7 }
 0xa01   : > { %v1721_v14 = vperm.slane %v1715_v10, %v5752_v54  ;;  %v1752_v18 = vrot.slane %v1725_v13, 4  ;;  %v1733_v21 = vperm.slane %v1727_v17, %v5752_v54  ;;  %v1750_v23 = vrot.slane %v1737_v19, 4 }
 0xa03   : > { %v1740_v20 = vrot.slane %v1721_v14, 4  ;;  %v1753_v22 = vsel %vm629_vm5, %v1737_v19, %v1752_v18  ;;  %v1738_v27 = vrot.slane %v1733_v21, 4  ;;  %v1751_v32 = vsel %vm629_vm5, %v1750_v23, %v1725_v13 }
 0xa04   : > { %v1761_v29 = vperm.slane %v1753_v22, %v5756_v61  ;;  %v1757_v35 = vperm.slane %v1751_v32, %v5756_v61 }
 0xa05   : > { %v1741_v24 = vsel %vm629_vm5, %v1733_v21, %v1740_v20  ;;  %v1739_v33 = vsel %vm629_vm5, %v1738_v27, %v1721_v14 }
 0xa06   : > { %v1749_v30 = vperm.slane %v1741_v24, %v5756_v61  ;;  %v1768_v34 = vrot.slane %v1761_v29, 4  ;;  %v1745_v39 = vperm.slane %v1739_v33, %v5756_v61  ;;  %v1766_v46 = vrot.slane %v1757_v35, 4 }
 0xa08   : > { %v1764_v37 = vrot.slane %v1749_v30, 4  ;;  %v1769_v42 = vsel %vm629_vm5, 0.0, %v1768_v34  ;;  %v1781_v36 = vsel %vm629_vm5, %v1768_v34, %v1757_v35  ;;  %v1762_v40 = vrot.slane %v1745_v39, 4 }
 0xa09   : > { %v1786_v51 = vrot.slane %v1769_v42, 4  ;;  %v1767_v62 = vsel %vm629_vm5, 0.0, %v1766_v46  ;;  %v1785_v63 = vperm.slane %v1781_v36, %v5752_v54 }
 0xa0a   : > { %v1765_v45 = vsel %vm629_vm5, 0.0, %v1764_v37  ;;  %v1770_v60 = vsel %vm629_vm5, %v1764_v37, %v1745_v39  ;;  %v1763_v7 = vsel %vm629_vm5, 0.0, %v1762_v40 }
 0xa0b   : > { %v1775_v57 = vrot.slane %v1765_v45, 4  ;;  %v1787_v53 = vsel %vm629_vm5, %v1786_v51, %v1767_v62  ;;  %v1774_v6 = vperm.slane %v1770_v60, %v5752_v54  ;;  %v1806_v15 = vrot.slane %v1785_v63, 4 }
 0xa0c   : > { %v1791_v14 = vperm.slane %v1787_v53, %v5752_v54 }
 0xa0d   : > { %v1776_v11 = vsel %vm629_vm5, %v1775_v57, %v1763_v7  ;;  %v1794_v21 = vrot.slane %v1774_v6, 4 }
 0xa0e   : > { %v1780_v20 = vperm.slane %v1776_v11, %v5752_v54  ;;  %v1804_v30 = vrot.slane %v1791_v14, 4 }
 0xa10   : > { %v1792_v33 = vrot.slane %v1780_v20, 4  ;;  %v1795_v40 = vsel %vm629_vm5, %v1780_v20, %v1794_v21 }
 0xa12   : > { %v1793_v51 = vsel %vm629_vm5, %v1792_v33, %v1774_v6 }
 0xa58   : > { %v1831_v28 = vpop.permute.xlu2 %1830 }
 0xa59   : > { %v1827_v26 = vpop.permute.xlu0 %1826  ;;  %v1848_v2 = vrot.slane %v1831_v28, 4 }
 0xa5a   : > { %v1850_v31 = vrot.slane %v1827_v26, 4 }
 0xa5b   : > { %v1849_v41 = vsel %vm629_vm5, %v1848_v2, %v1827_v26 }
 0xa5c   : > { %v1851_v38 = vsel %vm629_vm5, %v1831_v28, %v1850_v31  ;;  %v1855_v47 = vperm.slane %v1849_v41, %v5752_v54  ;;  %v1807_v28 = vsel %vm629_vm5, %v1791_v14, %v1806_v15 }
 0xa5d   : > { %v1859_v43 = vperm.slane %v1851_v38, %v5752_v54 }
 0xa5e   : > { %v1860_v1 = vrot.slane %v1855_v47, 4 }
 0xa5f   : > { %v1872_v58 = vrot.slane %v1859_v43, 4 }
 0xa70   : > { %v1829_v49 = vpop.permute.xlu1 %1828 }
 0xa71   : > { %v1836_v55 = vrot.slane %v1829_v49, 4  ;;  %v1839_v56 = vsel %vm629_vm5, %v1829_v49, %v1838_v44  ;;  %v1805_v44 = vsel %vm629_vm5, %v1804_v30, %v1785_v63 }
 0xa72   : > { %v1847_v59 = vperm.slane %v1839_v56, %v5752_v54 }
 0xa73   : > { %v1837_v0 = vsel %vm629_vm5, %v1836_v55, %v1825_v16 }
 0xa74   : > { %v1843_v3 = vperm.slane %v1837_v0, %v5752_v54  ;;  %v1873_v4 = vsel %vm629_vm5, %v1872_v58, %v1847_v59  ;;  %v1874_v50 = vrot.slane %v1847_v59, 4  ;;  %v1811_v58 = vperm.slane %v1805_v44, %v5756_v61 }
 0xa75   : > { %v1879_v48 = vperm.slane %v1873_v4, %v5756_v61  ;;  %v1803_v0 = vperm.slane %v1795_v40, %v5756_v61 }
 0xa76   : > { %v1861_v52 = vsel %vm629_vm5, %v1860_v1, %v1843_v3  ;;  %v1862_v9 = vrot.slane %v1843_v3, 4  ;;  %v1875_v10 = vsel %vm629_vm5, %v1859_v43, %v1874_v50  ;;  %v1799_v3 = vperm.slane %v1793_v51, %v5756_v61 }
 0xa77   : > { %v1867_v12 = vperm.slane %v1861_v52, %v5756_v61  ;;  %v1883_v13 = vperm.slane %v1875_v10, %v5756_v61  ;;  %v1888_v18 = vrot.slane %v1879_v48, 4  ;;  %v1822_v15 = vrot.slane %v1803_v0, 4 }
 0xa78   : > { %v1863_v16 = vsel %vm629_vm5, %v1855_v47, %v1862_v9  ;;  %v1815_v47 = vperm.slane %v1807_v28, %v5756_v61  ;;  %v1818_v11 = vrot.slane %v1799_v3, 4 }
 0xa79   : > { %v1871_v17 = vperm.slane %v1863_v16, %v5756_v61  ;;  %v1890_v19 = vrot.slane %v1883_v13, 4  ;;  %v1884_v22 = vrot.slane %v1867_v12, 4  ;;  %v1889_v32 = vsel %vm629_vm5, 0.0, %v1888_v18 }
 0xa7a   : > { %v1820_v1 = vrot.slane %v1815_v47, 4  ;;  %v1819_v14 = vsel %vm629_vm5, %v1811_v58, %v1818_v11  ;;  %v1823_v16 = vsel %vm629_vm5, %v1815_v47, %v1822_v15 }
 0xa7b   : > { %v1886_v23 = vrot.slane %v1871_v17, 4  ;;  %v1891_v24 = vsel %vm629_vm5, 0.0, %v1890_v19  ;;  %v1903_v26 = vsel %vm629_vm5, %v1890_v19, %v1879_v48  ;;  %v1885_v39 = vsel %vm629_vm5, 0.0, %v1884_v22  ;;  %v1701_v17 = vpop.f32.mrf.mxu0 }
 0xa7c   : > { %v1907_v27 = vperm.slane %v1903_v26, %v5752_v54  ;;  %v1908_v29 = vrot.slane %v1891_v24, 4  ;;  %v1816_v48 = vrot.slane %v1811_v58, 4  ;;  %v1821_v10 = vsel %vm629_vm5, %v1820_v1, %v1803_v0 }
 0xa7d   : > { %v1887_v31 = vsel %vm629_vm5, 0.0, %v1886_v23  ;;  %v1892_v2 = vsel %vm629_vm5, %v1886_v23, %v1867_v12 }
 0xa7e   : > { %v1897_v34 = vrot.slane %v1887_v31, 4  ;;  %v1909_v35 = vsel %vm629_vm5, %v1908_v29, %v1889_v32  ;;  %v1928_v37 = vrot.slane %v1907_v27, 4  ;;  %v1896_v38 = vperm.slane %v1892_v2, %v5752_v54 }
 0xa7f   : > { %v1913_v41 = vperm.slane %v1909_v35, %v5752_v54  ;;  %v1817_v13 = vsel %vm629_vm5, %v1816_v48, %v1799_v3 }
 0xa80   : > { %v1898_v42 = vsel %vm629_vm5, %v1897_v34, %v1885_v39  ;;  %v1916_v43 = vrot.slane %v1896_v38, 4 }
 0xa81   : > { %v1926_v45 = vrot.slane %v1913_v41, 4  ;;  %v1902_v46 = vperm.slane %v1898_v42, %v5752_v54  ;;  %v1929_v36 = vsel %vm629_vm5, %v1913_v41, %v1928_v37 }
 0xa82   : > { %v1937_v49 = vperm.slane %v1929_v36, %v5756_v61 }
 0xa83   : > { %v1917_v55 = vsel %vm629_vm5, %v1902_v46, %v1916_v43  ;;  %v1914_v56 = vrot.slane %v1902_v46, 4  ;;  %v1927_v57 = vsel %vm629_vm5, %v1926_v45, %v1907_v27 }
 0xa84   : > { %v1925_v59 = vperm.slane %v1917_v55, %v5756_v61  ;;  %v1942_v60 = vrot.slane %v1937_v49, 4  ;;  %v1933_v62 = vperm.slane %v1927_v57, %v5756_v61 }
 0xa85   : > { %v1915_v63 = vsel %vm629_vm5, %v1914_v56, %v1896_v38 }
 0xa86   : > { %v1943_v4 = vsel %vm629_vm5, %v1942_v60, %v1925_v59  ;;  %v1921_v50 = vperm.slane %v1915_v63, %v5756_v61  ;;  %v1938_v7 = vrot.slane %v1933_v62, 4  ;;  %v1944_v53 = vrot.slane %v1925_v59, 4 }
 0xa87   : > { %5053 = vmatpush.xpose.msk.msrb.mxu1 %vm981_vm6, %v1943_v4 }
 0xa88   : > { %v1939_v6 = vsel %vm629_vm5, %v1938_v7, %v1921_v50  ;;  %v1945_v52 = vsel %vm629_vm5, %v1937_v49, %v1944_v53  ;;  %v1940_v9 = vrot.slane %v1921_v50, 4 }
 0xa89   : > { %5049 = vmatpush.xpose.msk.msrb.mxu3 %vm981_vm6, %v1939_v6 }
 0xa8a   : > { %5054 = vmatmul.msk.f32.vlgmr.msrb.gmra.mxu1 %vm981_vm6, %v1821_v10  ;;  %v1941_v12 = vsel %vm629_vm5, %v1933_v62, %v1940_v9  ;;  %v1958_v62 = vrot.slane %v1701_v17, 4 }
 0xa8b   : > { %5051 = vmatpush.xpose.msk.msrb.mxu0 %vm981_vm6, %v1941_v12 }
 0xa8c   : > { %5050 = vmatmul.msk.f32.vlgmr.msrb.gmra.mxu3 %vm981_vm6, %v1817_v13 }
 0xa8d   : > { %5055 = vmatpush.xpose.msk.msra.mxu3 %vm981_vm6, %v1945_v52 }
 0xa8e   : > { %5052 = vmatmul.msk.f32.vlgmr.msrb.gmra.mxu0 %vm981_vm6, %v1819_v14 }
 0xa94   : > { %5056 = vmatmul.msk.f32.vlgmr.msra.gmra.mxu3 %vm981_vm6, %v1823_v16 }
 0xb07   : > { %v2141_v18 = vpop.f32.mrf.mxu1 }
 0xb08   : > { %v2172_v19 = vmul.f32 0.125, %v2141_v18 }
 0xb0a   : > { %v2176_v20 = vsel %vm5855_vm7, %v2172_v19, -inf }
 0xb0b   : > { %v2115_v21 = vpop.f32.mrf.mxu0  ;;  %v2184_v22 = vsel %vm1096_vm8, %v2176_v20, -inf }
 0xb0c   : > { %v2171_v23 = vmul.f32 0.125, %v2115_v21  ;;  %2185 = vmax.xlane.f32.xlu0 %v2184_v22 }
 0xb0e   : > { %v2175_v27 = vsel %vm5855_vm7, %v2171_v23, -inf }
 0xb0f   : > { %v2089_v24 = vpop.f32.mrf.mxu3  ;;  %v2181_v28 = vsel %vm1096_vm8, %v2175_v27, -inf }
 0xb10   : > { %v2170_v26 = vmul.f32 0.125, %v2089_v24 }
 0xb12   : > { %v2174_v29 = vsel %vm5855_vm7, %v2170_v26, -inf }
 0xb13   : > { %v2178_v30 = vsel %vm1096_vm8, %v2174_v29, -inf }
 0xb14   : > { %2182 = vmax.xlane.f32.xlu0 %v2181_v28  ;;  %2179 = vmax.xlane.f32.xlu2 %v2178_v30 }
 0xb17   : > { %v2167_v31 = vpop.f32.mrf.mxu3 }
 0xb18   : > { %v2173_v32 = vmul.f32 0.125, %v2167_v31 }
 0xb1a   : > { %v2177_v2 = vsel %vm5855_vm7, %v2173_v32, -inf }
 0xb1b   : > { %v2187_v33 = vsel %vm1096_vm8, %v2177_v2, -inf }
 0xb1c   : > { %2188 = vmax.xlane.f32.xlu1 %v2187_v33 }
 0xb28   : > { %1953 = vrot.lane.b32.xlu0 %v1701_v17, %s7782_s18 }
 0xb2c   : > { %1950 = vrot.lane.b32.xlu2 %v1701_v17, %s7783_s23 }
 0xb35   : > { %1947 = vrot.lane.b32.xlu1 %v1701_v17, %s7784_s19 }
 0xb7f   : > { %v2186_v34 = vpop.xlane.xlu0 %2185 }
 0xb80   : > { %v2192_v35 = vsub.f32 %v2176_v20, %v2186_v34 }
 0xb82   : > { %v2198_v37 = vmul.f32 1.442695, %v2192_v35 }
 0xb84   : > { %5406 = vpow2.f32 %v2198_v37 }
 0xb87   : > { %v2180_v38 = vpop.xlane.xlu2 %2179  ;;  %v2183_v39 = vpop.xlane.xlu0 %2182 }
 0xb88   : > { %v2190_v41 = vsub.f32 %v2174_v29, %v2180_v38  ;;  %v2191_v44 = vsub.f32 %v2175_v27, %v2183_v39 }
 0xb8a   : > { %v6359_v42 = vpop.eup %5406  ;;  %v2194_v43 = vmul.f32 1.442695, %v2190_v41  ;;  %v2196_v46 = vmul.f32 1.442695, %v2191_v44 }
 0xb8b   : > { %v2208_v45 = vsel %vm1096_vm8, %v6359_v42, 0.0 }
 0xb8c   : > { %2209 = vadd.xlane.f32.xlu0 %v2208_v45  ;;  %5408 = vpow2.f32 %v2194_v43 }
 0xb8d   : > { %5410 = vpow2.f32 %v2196_v46 }
 0xb8f   : > { %v2189_v36 = vpop.xlane.xlu1 %2188  ;;  %v1951_v57 = vpop.permute.xlu2 %1950 }
 0xb90   : > { %v2193_v47 = vsub.f32 %v2177_v2, %v2189_v36  ;;  %v1956_v60 = vrot.slane %v1951_v57, 4  ;;  %v1959_v1 = vsel %vm629_vm5, %v1951_v57, %v1958_v62 }
 0xb91   : > { %v1967_v50 = vperm.slane %v1959_v1, %v5752_v54 }
 0xb92   : > { %v2200_v49 = vmul.f32 1.442695, %v2193_v47  ;;  %v6363_v40 = vpop.eup %5408  ;;  %v1957_v63 = vsel %vm629_vm5, %v1956_v60, %v1701_v17 }
 0xb93   : > { %v2202_v51 = vsel %vm1096_vm8, %v6363_v40, 0.0  ;;  %v6367_v55 = vpop.eup %5410  ;;  %v1963_v3 = vperm.slane %v1957_v63, %v5752_v54  ;;  %v1994_v10 = vrot.slane %v1967_v50, 4 }
 0xb94   : > { %5412 = vpow2.f32 %v2200_v49  ;;  %2203 = vadd.xlane.f32.xlu2 %v2202_v51  ;;  %v2205_v59 = vsel %vm1096_vm8, %v6367_v55, 0.0 }
 0xb95   : > { %v1982_v6 = vrot.slane %v1963_v3, 4 }
 0xb9a   : > { %v6369_v56 = vpop.eup %5412  ;;  %v1954_v0 = vpop.permute.xlu0 %1953 }
 0xb9b   : > { %v2211_v58 = vsel %vm1096_vm8, %v6369_v56, 0.0  ;;  %v1968_v4 = vrot.slane %v1954_v0, 4 }
 0xb9c   : > { %2212 = vadd.xlane.f32.xlu1 %v2211_v58  ;;  %2206 = vadd.xlane.f32.xlu2 %v2205_v59 }
 0xba7   : > { %v1948_v7 = vpop.permute.xlu1 %1947 }
 0xba8   : > { %v1969_v53 = vsel %vm629_vm5, %v1968_v4, %v1948_v7  ;;  %v1970_v48 = vrot.slane %v1948_v7, 4 }
 0xba9   : > { %v1975_v52 = vperm.slane %v1969_v53, %v5752_v54 }
 0xbaa   : > { %v1971_v9 = vsel %vm629_vm5, %v1954_v0, %v1970_v48 }
 0xbab   : > { %v1979_v11 = vperm.slane %v1971_v9, %v5752_v54  ;;  %v1980_v12 = vrot.slane %v1975_v52, 4  ;;  %v1983_v13 = vsel %vm629_vm5, %v1975_v52, %v1982_v6 }
 0xbac   : > { %v1991_v14 = vperm.slane %v1983_v13, %v5756_v61 }
 0xbad   : > { %v1981_v15 = vsel %vm629_vm5, %v1980_v12, %v1963_v3  ;;  %v1992_v16 = vrot.slane %v1979_v11, 4  ;;  %v1995_v17 = vsel %vm629_vm5, %v1979_v11, %v1994_v10 }
 0xbae   : > { %v1987_v18 = vperm.slane %v1981_v15, %v5756_v61  ;;  %v2003_v19 = vperm.slane %v1995_v17, %v5756_v61  ;;  %v2006_v20 = vrot.slane %v1991_v14, 4 }
 0xbaf   : > { %v1993_v21 = vsel %vm629_vm5, %v1992_v16, %v1967_v50 }
 0xbb0   : > { %v1999_v22 = vperm.slane %v1993_v21, %v5756_v61  ;;  %v2004_v23 = vrot.slane %v1987_v18, 4  ;;  %v2007_v24 = vsel %vm629_vm5, 0.0, %v2006_v20  ;;  %v2010_v26 = vrot.slane %v2003_v19, 4 }
 0xbb1   : > { %v2012_v27 = vsel %vm629_vm5, %v2006_v20, %v1987_v18  ;;  %v2017_v29 = vrot.slane %v2007_v24, 4 }
 0xbb2   : > { %v2005_v28 = vsel %vm629_vm5, 0.0, %v2004_v23  ;;  %v2008_v30 = vrot.slane %v1999_v22, 4  ;;  %v2011_v31 = vsel %vm629_vm5, 0.0, %v2010_v26  ;;  %v2016_v32 = vperm.slane %v2012_v27, %v5752_v54 }
 0xbb3   : > { %v2018_v2 = vsel %vm629_vm5, %v2017_v29, %v2005_v28  ;;  %v2028_v33 = vrot.slane %v2011_v31, 4  ;;  %v2023_v34 = vsel %vm629_vm5, %v2010_v26, %v1999_v22 }
 0xbb4   : > { %v2009_v35 = vsel %vm629_vm5, 0.0, %v2008_v30  ;;  %v2022_v37 = vperm.slane %v2018_v2, %v5752_v54  ;;  %v2027_v38 = vperm.slane %v2023_v34, %v5752_v54  ;;  %v2036_v39 = vrot.slane %v2016_v32, 4 }
 0xbb5   : > { %v2029_v41 = vsel %vm629_vm5, %v2028_v33, %v2009_v35 }
 0xbb6   : > { %v2033_v43 = vperm.slane %v2029_v41, %v5752_v54  ;;  %v2037_v44 = vsel %vm629_vm5, %v2022_v37, %v2036_v39  ;;  %v2048_v45 = vrot.slane %v2027_v38, 4  ;;  %v2034_v46 = vrot.slane %v2022_v37, 4 }
 0xbb7   : > { %v2045_v36 = vperm.slane %v2037_v44, %v5756_v61 }
 0xbb8   : > { %v2049_v47 = vsel %vm629_vm5, %v2033_v43, %v2048_v45  ;;  %v2035_v49 = vsel %vm629_vm5, %v2034_v46, %v2016_v32  ;;  %v2046_v51 = vrot.slane %v2033_v43, 4 }
 0xbb9   : > { %v2057_v57 = vperm.slane %v2049_v47, %v5756_v61  ;;  %v2064_v58 = vrot.slane %v2045_v36, 4  ;;  %v2041_v59 = vperm.slane %v2035_v49, %v5756_v61 }
 0xbba   : > { %v2047_v60 = vsel %vm629_vm5, %v2046_v51, %v2027_v38 }
 0xbbb   : > { %v2065_v62 = vsel %vm629_vm5, %v2057_v57, %v2064_v58  ;;  %v2053_v63 = vperm.slane %v2047_v60, %v5756_v61  ;;  %v2060_v0 = vrot.slane %v2041_v59, 4  ;;  %v2062_v1 = vrot.slane %v2057_v57, 4 }
 0xbbc   : > { %2361 = vmatpush.msrb.mxu3 %v2065_v62 }
 0xbbd   : > { %v2061_v3 = vsel %vm629_vm5, %v2053_v63, %v2060_v0  ;;  %v2063_v4 = vsel %vm629_vm5, %v2062_v1, %v2045_v36  ;;  %v2058_v50 = vrot.slane %v2053_v63, 4 }
 0xbbe   : > { %2315 = vmatpush.msra.mxu1 %v2061_v3  ;;  %2338 = vmatpush.msra.mxu2 %v2063_v4 }
 0xbbf   : > { %v2059_v7 = vsel %vm629_vm5, %v2058_v50, %v2041_v59 }
 0xbc0   : > { %2292 = vmatpush.msra.mxu0 %v2059_v7 }
 0xbff   : > { %v2210_v53 = vpop.xlane.xlu0 %2209 }
 0xc00   : > { %5414 = vrcp.f32 %v2210_v53  ;;  %v2255_v10 = vand.u32 2147483648, %v2210_v53  ;;  %v2253_v12 = vand.u32 2147483647, %v2210_v53  ;;  %vm2249_vm12 = vweird.f32 %v2210_v53 }
 0xc02   : > { %v2256_v14 = vor.u32 1.1754944e-38, %v2255_v10  ;;  %vm2254_vm1 = vcmp.eq.f32.partialorder %v2253_v12, 8.507059e+37 }
 0xc06   : > { %v5415_v48 = vpop.eup %5414 }
 0xc07   : > { %v2245_v6 = vmul.f32 %v5415_v48, %v2210_v53  ;;  %v2204_v52 = vpop.xlane.xlu2 %2203  ;;  %vm2250_vm11 = vweird.f32 %v5415_v48 }
 0xc08   : > { %5416 = vrcp.f32 %v2204_v52  ;;  %vm2251_vm13 = vmor %vm2249_vm12, %vm2250_vm11  ;;  %v2225_v22 = vand.u32 2147483648, %v2204_v52  ;;  %v2223_v26 = vand.u32 2147483647, %v2204_v52  ;;  %vm2219_vm3 = vweird.f32 %v2204_v52 }
 0xc09   : > { %v2246_v9 = vsub.f32 1.0, %v2245_v6 }
 0xc0a   : > { %v2226_v30 = vor.u32 1.1754944e-38, %v2225_v22  ;;  %vm2224_vm9 = vcmp.eq.f32.partialorder %v2223_v26, 8.507059e+37 }
 0xc0b   : > { %v2247_v11 = vmul.f32 %v5415_v48, %v2246_v9 }
 0xc0d   : > { %v2248_v13 = vadd.f32 %v5415_v48, %v2247_v11 }
 0xc0e   : > { %v5417_v15 = vpop.eup %5416 }
 0xc0f   : > { %v2252_v16 = vsel %vm2251_vm13, %v5415_v48, %v2248_v13  ;;  %v2213_v17 = vpop.xlane.xlu1 %2212  ;;  %v2215_v19 = vmul.f32 %v5417_v15, %v2204_v52  ;;  %v2207_v20 = vpop.xlane.xlu2 %2206  ;;  %vm2220_vm2 = vweird.f32 %v5417_v15 }
 0xc10   : > { %v2257_v18 = vsel %vm2254_vm1, %v2256_v14, %v2252_v16  ;;  %5418 = vrcp.f32 %v2213_v17  ;;  %vm2221_vm4 = vmor %vm2219_vm3, %vm2220_vm2  ;;  %v2270_v37 = vand.u32 2147483648, %v2213_v17  ;;  %v2240_v38 = vand.u32 2147483648, %v2207_v20 }
 0xc11   : > { %5420 = vrcp.f32 %v2207_v20  ;;  %v2216_v21 = vsub.f32 1.0, %v2215_v19  ;;  %v2258_v23 = vmul.f32 %v6359_v42, %v2257_v18  ;;  %v2268_v41 = vand.u32 2147483647, %v2213_v17 }
 0xc12   : > { %v2238_v44 = vand.u32 2147483647, %v2207_v20  ;;  %vm2264_vm12 = vweird.f32 %v2213_v17  ;;  %vm2234_vm13 = vweird.f32 %v2207_v20  ;;  %v2271_v36 = vor.u32 1.1754944e-38, %v2270_v37 }
 0xc13   : > { %v2217_v24 = vmul.f32 %v5417_v15, %v2216_v21  ;;  %5059 = vmatmul.msk.f32.vlgmr.msra.gmra.mxu2 %vm1096_vm8, %v2258_v23  ;;  %v2241_v47 = vor.u32 1.1754944e-38, %v2240_v38  ;;  %vm2269_vm3 = vcmp.eq.f32.partialorder %v2268_v41, 8.507059e+37 }
 0xc15   : > { %v2218_v29 = vadd.f32 %v5417_v15, %v2217_v24 }
 0xc16   : > { %v5419_v27 = vpop.eup %5418 }
 0xc17   : > { %v5421_v28 = vpop.eup %5420  ;;  %v2260_v31 = vmul.f32 %v5419_v27, %v2213_v17  ;;  %v2222_v32 = vsel %vm2221_vm4, %v5417_v15, %v2218_v29  ;;  %vm2265_vm10 = vweird.f32 %v5419_v27  ;;  %vm2239_vm4 = vcmp.eq.f32.partialorder %v2238_v44, 8.507059e+37 }
 0xc18   : > { %v2230_v2 = vmul.f32 %v5421_v28, %v2207_v20  ;;  %v2227_v33 = vsel %vm2224_vm9, %v2226_v30, %v2222_v32  ;;  %vm2235_vm11 = vweird.f32 %v5421_v28  ;;  %vm2266_vm1 = vmor %vm2264_vm12, %vm2265_vm10 }
 0xc19   : > { %v2261_v34 = vsub.f32 1.0, %v2260_v31  ;;  %v2228_v42 = vmul.f32 %v6363_v40, %v2227_v33  ;;  %vm2236_vm2 = vmor %vm2234_vm13, %vm2235_vm11 }
 0xc1a   : > { %v2231_v35 = vsub.f32 1.0, %v2230_v2 }
 0xc1b   : > { %v2262_v39 = vmul.f32 %v5419_v27, %v2261_v34  ;;  %5057 = vmatmul.msk.f32.vlgmr.msra.gmra.mxu0 %vm1096_vm8, %v2228_v42 }
 0xc1c   : > { %v2232_v43 = vmul.f32 %v5421_v28, %v2231_v35 }
 0xc1d   : > { %v2263_v45 = vadd.f32 %v5419_v27, %v2262_v39 }
 0xc1e   : > { %v2233_v46 = vadd.f32 %v5421_v28, %v2232_v43 }
 0xc1f   : > { %v2267_v49 = vsel %vm2266_vm1, %v5419_v27, %v2263_v45 }
 0xc20   : > { %v2237_v40 = vsel %vm2236_vm2, %v5421_v28, %v2233_v46  ;;  %v2272_v51 = vsel %vm2269_vm3, %v2271_v36, %v2267_v49 }
 0xc21   : > { %v2242_v57 = vsel %vm2239_vm4, %v2241_v47, %v2237_v40  ;;  %v2273_v58 = vmul.f32 %v6369_v56, %v2272_v51 }
 0xc22   : > { %v2243_v59 = vmul.f32 %v6367_v55, %v2242_v57 }
 0xc23   : > { %5060 = vmatmul.msk.f32.vlgmr.msrb.gmra.mxu3 %vm1096_vm8, %v2273_v58 }
 0xc24   : > { %5058 = vmatmul.msk.f32.vlgmr.msra.gmra.mxu1 %vm1096_vm8, %v2243_v59 }
 0xc96   : > { %v2340_v62 = vpop.f32.mrf.mxu2 }
 0xc97   : > { %v2366_v0 = vrot.slane %v2340_v62, 4 }
 0xc98   : > { %v2294_v60 = vpop.f32.mrf.mxu0 }
 0xc99   : > { %v2368_v63 = vrot.slane %v2294_v60, 4  ;;  %v2367_v4 = vsel %vm629_vm5, %v2366_v0, %v2294_v60 }
 0xc9a   : > { %v2373_v56 = vperm.slane %v2367_v4, %v5752_v54 }
 0xc9b   : > { %v2369_v1 = vsel %vm629_vm5, %v2340_v62, %v2368_v63 }
 0xc9c   : > { %v2377_v50 = vperm.slane %v2369_v1, %v5752_v54  ;;  %v2392_v10 = vrot.slane %v2373_v56, 4 }
 0xc9e   : > { %v2404_v6 = vrot.slane %v2377_v50, 4 }
 0xca1   : > { %v2317_v3 = vpop.f32.mrf.mxu1 }
 0xca2   : > { %v2380_v7 = vrot.slane %v2317_v3, 4 }
 0xca6   : > { %v2363_v53 = vpop.f32.mrf.mxu3 }
 0xca7   : > { %v2378_v55 = vrot.slane %v2363_v53, 4  ;;  %v2381_v48 = vsel %vm629_vm5, %v2363_v53, %v2380_v7  ;;  %v5067_v7 = vld [vmem:[%s7728_s4 + $0x70] sm:$0xff]  ;;  %v5065_v53 = vld [vmem:[%s7728_s4 + $0x60] sm:$0xff] }
 0xca8   : > { %v2389_v52 = vperm.slane %v2381_v48, %v5752_v54  ;;  %v5063_v48 = vld [vmem:[%s7728_s4 + $0x50] sm:$0xff] }
 0xca9   : > { %v2379_v9 = vsel %vm629_vm5, %v2378_v55, %v2317_v3  ;;  %v5064_v55 = vld [vmem:[%s7728_s4 + $0x58] sm:$0xff] }
 0xcaa   : > { %v2385_v11 = vperm.slane %v2379_v9, %v5752_v54  ;;  %v2402_v12 = vrot.slane %v2389_v52, 4  ;;  %v2405_v13 = vsel %vm629_vm5, %v2389_v52, %v2404_v6  ;;  %v5062_v6 = vld [vmem:[%s7728_s4 + $0x48] sm:$0xff]  ;;  %v5061_v52 = vld [vmem:[%s7728_s4 + $0x40] sm:$0xff] }
 0xcab   : > { %v2413_v14 = vperm.slane %v2405_v13, %v5756_v61 }
 0xcac   : > { %v2390_v15 = vrot.slane %v2385_v11, 4  ;;  %v2393_v16 = vsel %vm629_vm5, %v2385_v11, %v2392_v10  ;;  %v2403_v17 = vsel %vm629_vm5, %v2402_v12, %v2377_v50  ;;  %v5068_v50 = vld [vmem:[%s7728_s4 + $0x78] sm:$0xff] }
 0xcad   : > { %v2401_v18 = vperm.slane %v2393_v16, %v5756_v61  ;;  %v2409_v19 = vperm.slane %v2403_v17, %v5756_v61  ;;  %v2420_v20 = vrot.slane %v2413_v14, 4  ;;  %2513 = vmatpush.msrb.mxu0 %v5068_v50 }
 0xcae   : > { %v2391_v21 = vsel %vm629_vm5, %v2390_v15, %v2373_v56  ;;  %v5066_v56 = vld [vmem:[%s7728_s4 + $0x68] sm:$0xff]  ;;  %v5363_v15 = vld [vmem:[%s7729_s5 + $0x1] ss:$0 sm:$0xff] }
 0xcaf   : > { %v2397_v22 = vperm.slane %v2391_v21, %v5756_v61  ;;  %v2416_v23 = vrot.slane %v2401_v18, 4  ;;  %v2418_v24 = vrot.slane %v2409_v19, 4  ;;  %v2421_v26 = vsel %vm629_vm5, 0.0, %v2420_v20  ;;  %2514 = vmatpush.msrb.mxu0 %v5067_v7  ;;  %v5096_v7 = vld [vmem:[%s7734_s10 + $0x138] sm:$0xff] }
 0xcb0   : > { %v2433_v27 = vsel %vm629_vm5, %v2420_v20, %v2409_v19  ;;  %v2438_v29 = vrot.slane %v2421_v26, 4  ;;  %v5085_v26 = vld [vmem:[%s7732_s8 + $0xf8] sm:$0xff] }
 0xcb1   : > { %v2414_v28 = vrot.slane %v2397_v22, 4  ;;  %v2417_v30 = vsel %vm629_vm5, 0.0, %v2416_v23  ;;  %v2419_v31 = vsel %vm629_vm5, 0.0, %v2418_v24  ;;  %v2437_v32 = vperm.slane %v2433_v27, %v5752_v54  ;;  %2515 = vmatpush.msrb.mxu0 %v5066_v56  ;;  %2609 = vmatpush.msrb.mxu2 %v5085_v26  ;;  %v5082_v27 = vld [vmem:[%s7732_s8 + $0xe0] sm:$0xff]  ;;  %v5112_v56 = vld [vmem:[%s7734_s10 + $0x1b8] sm:$0xff]  ;;  %v5107_v26 = vld [vmem:[%s7734_s10 + $0x190] sm:$0xff] }
 0xcb2   : > { %v2427_v2 = vrot.slane %v2417_v30, 4  ;;  %v2422_v33 = vsel %vm629_vm5, %v2416_v23, %v2397_v22  ;;  %v2439_v34 = vsel %vm629_vm5, %v2438_v29, %v2419_v31  ;;  %v5083_v29 = vld [vmem:[%s7732_s8 + $0xe8] sm:$0xff]  ;;  %v5081_v30 = vld [vmem:[%s7732_s8 + $0xd8] sm:$0xff]  ;;  %v5078_v31 = vld [vmem:[%s7732_s8 + $0xc0] sm:$0xff] }
 0xcb3   : > { %v2415_v35 = vsel %vm629_vm5, 0.0, %v2414_v28  ;;  %v2426_v37 = vperm.slane %v2422_v33, %v5752_v54  ;;  %v2443_v42 = vperm.slane %v2439_v34, %v5752_v54  ;;  %v2458_v38 = vrot.slane %v2437_v32, 4  ;;  %2516 = vmatpush.msrb.mxu0 %v5065_v53  ;;  %2610 = vmatpush.msrb.mxu2 %v5083_v29  ;;  %v5080_v28 = vld [vmem:[%s7732_s8 + $0xd0] sm:$0xff]  ;;  %v5077_v33 = vld [vmem:[%s7732_s8 + $0xb8] sm:$0xff]  ;;  %v5074_v34 = vld [vmem:[%s7732_s8 + $0xa0] sm:$0xff] }
 0xcb4   : > { %v2428_v39 = vsel %vm629_vm5, %v2427_v2, %v2415_v35  ;;  %v5076_v2 = vld [vmem:[%s7732_s8 + $0xb0] sm:$0xff]  ;;  %v5075_v35 = vld [vmem:[%s7732_s8 + $0xa8] sm:$0xff]  ;;  %v5105_v29 = vld [vmem:[%s7734_s10 + $0x180] sm:$0xff] }
 0xcb5   : > { %v2432_v41 = vperm.slane %v2428_v39, %v5752_v54  ;;  %v2446_v43 = vrot.slane %v2426_v37, 4  ;;  %v2459_v44 = vsel %vm629_vm5, %v2443_v42, %v2458_v38  ;;  %v2456_v45 = vrot.slane %v2443_v42, 4  ;;  %2517 = vmatpush.msrb.mxu0 %v5064_v55  ;;  %2611 = vmatpush.msrb.mxu2 %v5081_v30  ;;  %v5073_v42 = vld [vmem:[%s7732_s8 + $0x98] sm:$0xff]  ;;  %v5070_v38 = vld [vmem:[%s7732_s8 + $0x80] sm:$0xff]  ;;  %v5071_v39 = vld [vmem:[%s7732_s8 + $0x88] sm:$0xff] }
 0xcb6   : > { %v2467_v46 = vperm.slane %v2459_v44, %v5756_v61  ;;  %v5120_v44 = vld [vmem:[%s7734_s10 + $0x1f8] sm:$0xff]  ;;  %v5095_v55 = vld [vmem:[%s7734_s10 + $0x130] sm:$0xff] }
 0xcb7   : > { %v2447_v36 = vsel %vm629_vm5, %v2432_v41, %v2446_v43  ;;  %v2444_v47 = vrot.slane %v2432_v41, 4  ;;  %v2457_v49 = vsel %vm629_vm5, %v2456_v45, %v2437_v32  ;;  %2518 = vmatpush.msrb.mxu0 %v5063_v48  ;;  %v5079_v32 = vld [vmem:[%s7732_s8 + $0xc8] sm:$0xff]  ;;  %v5104_v41 = vld [vmem:[%s7734_s10 + $0x178] sm:$0xff]  ;;  %v5103_v43 = vld [vmem:[%s7734_s10 + $0x170] sm:$0xff] }
 0xcb8   : > { %v2455_v40 = vperm.slane %v2447_v36, %v5756_v61  ;;  %v2472_v51 = vrot.slane %v2467_v46, 4  ;;  %v2463_v57 = vperm.slane %v2457_v49, %v5756_v61  ;;  %2612 = vmatpush.msrb.mxu2 %v5079_v32  ;;  %2658 = vmatpush.msra.mxu3 %v5104_v41  ;;  %v5119_v45 = vld [vmem:[%s7734_s10 + $0x1f0] sm:$0xff]  ;;  %v5102_v36 = vld [vmem:[%s7734_s10 + $0x168] sm:$0xff] }
 0xcb9   : > { %v2445_v58 = vsel %vm629_vm5, %v2444_v47, %v2426_v37  ;;  %2519 = vmatpush.msrb.mxu0 %v5062_v6  ;;  %v5072_v37 = vld [vmem:[%s7732_s8 + $0x90] sm:$0xff]  ;;  %v5118_v47 = vld [vmem:[%s7734_s10 + $0x1e8] sm:$0xff] }
 0xcba   : > { %v2473_v59 = vsel %vm629_vm5, %v2472_v51, %v2455_v40  ;;  %v2474_v60 = vrot.slane %v2455_v40, 4  ;;  %v2451_v62 = vperm.slane %v2445_v58, %v5756_v61  ;;  %v2468_v63 = vrot.slane %v2463_v57, 4  ;;  %2613 = vmatpush.msrb.mxu2 %v5077_v33  ;;  %2659 = vmatpush.msra.mxu3 %v5103_v43  ;;  %v5101_v40 = vld [vmem:[%s7734_s10 + $0x160] sm:$0xff]  ;;  %v5100_v58 = vld [vmem:[%s7734_s10 + $0x158] sm:$0xff]  ;;  %v5111_v48 = vld [vmem:[%s7734_s10 + $0x1b0] sm:$0xff] }
 0xcbb   : > { %2481 = vrot.lane.b32.xlu1 %v2473_v59, %s7786_s29  ;;  %2520 = vmatpush.msrb.mxu0 %v5061_v52  ;;  %v5117_v51 = vld [vmem:[%s7734_s10 + $0x1e0] sm:$0xff]  ;;  %v5116_v59 = vld [vmem:[%s7734_s10 + $0x1d8] sm:$0xff]  ;;  %v5094_v52 = vld [vmem:[%s7734_s10 + $0x128] sm:$0xff] }
 0xcbc   : > { %v2475_v0 = vsel %vm629_vm5, %v2467_v46, %v2474_v60  ;;  %v2470_v1 = vrot.slane %v2451_v62, 4  ;;  %v2469_v3 = vsel %vm629_vm5, %v2468_v63, %v2451_v62  ;;  %2614 = vmatpush.msrb.mxu2 %v5075_v35  ;;  %2660 = vmatpush.msra.mxu3 %v5102_v36  ;;  %v5099_v60 = vld [vmem:[%s7734_s10 + $0x150] sm:$0xff]  ;;  %v5098_v63 = vld [vmem:[%s7734_s10 + $0x148] sm:$0xff] }
 0xcbd   : > { %2485 = vrot.lane.b32.xlu2 %v2475_v0, %s7787_s28  ;;  %2678 = vmatpush.msra.mxu0 %v5120_v44  ;;  %v5115_v62 = vld [vmem:[%s7734_s10 + $0x1d0] sm:$0xff]  ;;  %v5114_v0 = vld [vmem:[%s7734_s10 + $0x1c8] sm:$0xff] }
 0xcbe   : > { %v2471_v4 = vsel %vm629_vm5, %v2463_v57, %v2470_v1  ;;  %2615 = vmatpush.msrb.mxu2 %v5073_v42  ;;  %2661 = vmatpush.msra.mxu3 %v5101_v40  ;;  %v5097_v1 = vld [vmem:[%s7734_s10 + $0x140] sm:$0xff] }
 0xcbf   : > { %2477 = vrot.lane.b32.xlu0 %v2471_v4, %s7788_s26  ;;  %2679 = vmatpush.msra.mxu0 %v5119_v45  ;;  %v5366_v42 = vld [vmem:[%s7735_s11 + $0x1] ss:$0 sm:$0xff] }
 0xcc0   : > { %2616 = vmatpush.msrb.mxu2 %v5071_v39  ;;  %2662 = vmatpush.msra.mxu3 %v5100_v58  ;;  %v5134_v58 = vld [vmem:[%s7727_s3 + $0x168] sm:$0xff] }
 0xcc1   : > { %2680 = vmatpush.msra.mxu0 %v5118_v47 }
 0xcc2   : > { %2663 = vmatpush.msra.mxu3 %v5099_v60  ;;  %v5132_v60 = vld [vmem:[%s7727_s3 + $0x158] sm:$0xff] }
 0xcc3   : > { %2681 = vmatpush.msra.mxu0 %v5117_v51  ;;  %v5135_v51 = vld [vmem:[%s7727_s3 + $0x170] sm:$0xff] }
 0xcc4   : > { %2664 = vmatpush.msra.mxu3 %v5098_v63  ;;  %v5130_v63 = vld [vmem:[%s7727_s3 + $0x148] sm:$0xff] }
 0xcc5   : > { %2682 = vmatpush.msra.mxu0 %v5116_v59  ;;  %v5131_v59 = vld [vmem:[%s7727_s3 + $0x150] sm:$0xff] }
 0xcc6   : > { %2665 = vmatpush.msra.mxu3 %v5097_v1  ;;  %v5128_v1 = vld [vmem:[%s7727_s3 + $0x138] sm:$0xff] }
 0xcc7   : > { %2683 = vmatpush.msra.mxu0 %v5115_v62  ;;  %v5129_v62 = vld [vmem:[%s7727_s3 + $0x140] sm:$0xff] }
 0xcc8   : > { %2666 = vmatpush.msra.mxu3 %v5096_v7  ;;  %v5124_v7 = vld [vmem:[%s7727_s3 + $0x118] sm:$0xff] }
 0xcc9   : > { %2684 = vmatpush.msra.mxu0 %v5114_v0  ;;  %v5127_v0 = vld [vmem:[%s7727_s3 + $0x130] sm:$0xff] }
 0xcca   : > { %2667 = vmatpush.msra.mxu3 %v5095_v55 }
 0xccc   : > { %2668 = vmatpush.msra.mxu3 %v5094_v52 }
 0xd17   : > { %v2486_v12 = vpop.permute.xlu2 %2485 }
 0xd2d   : > { %v2482_v10 = vpop.permute.xlu1 %2481 }
 0xd31   : > { %v2478_v9 = vpop.permute.xlu0 %2477 }
 0xd32   : > { %v2488_v11 = vsel %vm981_vm6, %v2469_v3, %v2478_v9  ;;  %v5113_v3 = vld [vmem:[%s7734_s10 + $0x1c0] sm:$0xff] }
 0xd33   : > { %v2489_v13 = vsel %vm1408_vm14, %v2488_v11, %v2482_v10  ;;  %2685 = vmatpush.msra.mxu0 %v5113_v3  ;;  %v5093_v10 = vld [vmem:[%s7734_s10 + $0x120] sm:$0xff] }
 0xd34   : > { %v2490_v14 = vsel %vm1410_vm15, %v2489_v13, %v2486_v12  ;;  %v5092_v12 = vld [vmem:[%s7734_s10 + $0x118] sm:$0xff]  ;;  %v5364_v13 = vld [vmem:[%s7730_s6 + $0x1] ss:$0 sm:$0xff]  ;;  %2669 = vmatpush.msra.mxu3 %v5093_v10 }
 0xd35   : > { %5069 = vmatmul.msk.f32.vlgmr.msrb.gmra.mxu0 %vm7764_vm0, %v2490_v14  ;;  %v5125_v3 = vld [vmem:[%s7727_s3 + $0x120] sm:$0xff] }
 0xd36   : > { %2686 = vmatpush.msra.mxu0 %v5112_v56  ;;  %2670 = vmatpush.msra.mxu3 %v5092_v12  ;;  %v5121_v56 = vld [vmem:[%s7727_s3 + $0x100] sm:$0xff] }
 0xd38   : > { %2687 = vmatpush.msra.mxu0 %v5111_v48 }
 0xdb2   : > { %v2522_v16 = vpop.f32.mrf.mxu0 }
 0xdb3   : > { %v2523_v17 = vadd.f32 %v5363_v15, %v2522_v16  ;;  %v5365_v16 = vld [vmem:[%s7731_s7 + $0x1] ss:$0 sm:$0xff] }
 0xdb5   : > { %v6498_v18 = vadd.f32 %v2523_v17, %v6185_v25  ;;  %v5084_v25 = vld [vmem:[%s7732_s8 + $0xf0] sm:$0xff] }
 0xdb6   : > { %2589 = vmatpush.msrb.mxu1 %v5084_v25  ;;  %v5108_v25 = vld [vmem:[%s7734_s10 + $0x198] sm:$0xff] }
 0xdb7   : > { %v2528_v19 = vsel %vm7764_vm0, %v6498_v18, 0.0 }
 0xdb8   : > { %2529 = vadd.xlane.f32.xlu0 %v2528_v19  ;;  %2590 = vmatpush.msrb.mxu1 %v5082_v27  ;;  %v5106_v27 = vld [vmem:[%s7734_s10 + $0x188] sm:$0xff] }
 0xdba   : > { %2591 = vmatpush.msrb.mxu1 %v5080_v28  ;;  %v5086_v28 = vld [vmem:[%s7733_s9 + $0x1] ss:$4 sm:$0x3] }
 0xdbb   : > { %v2574_v30 = vperm.slane %v5086_v28, 0  ;;  %v2575_v33 = vperm.slane %v5086_v28, 1 }
 0xdbc   : > { %2592 = vmatpush.msrb.mxu1 %v5078_v31 }
 0xdbe   : > { %2593 = vmatpush.msrb.mxu1 %v5076_v2 }
 0xdc0   : > { %2594 = vmatpush.msrb.mxu1 %v5074_v34 }
 0xdc2   : > { %2595 = vmatpush.msrb.mxu1 %v5072_v37 }
 0xdc4   : > { %2596 = vmatpush.msrb.mxu1 %v5070_v38 }
 0xdc6   : > { %2755 = vmatpush.msra.mxu1 %v5135_v51 }
 0xe2b   : > { %v2530_v20 = vpop.xlane.xlu0 %2529 }
 0xe2c   : > { %v2531_v21 = vmul.f32 %v2530_v20, %v5683_v8  ;;  %v5091_v20 = vld [vmem:[%s7734_s10 + $0x110] sm:$0xff] }
 0xe2d   : > { %2671 = vmatpush.msra.mxu3 %v5091_v20 }
 0xe2e   : > { %v6504_v22 = vsub.f32 %v6498_v18, %v2531_v21  ;;  %v5110_v21 = vld [vmem:[%s7734_s10 + $0x1a8] sm:$0xff] }
 0xe2f   : > { %2688 = vmatpush.msra.mxu0 %v5110_v21 }
 0xe30   : > { %v2533_v23 = vmul.f32 %v6504_v22, %v6504_v22 }
 0xe32   : > { %v2534_v24 = vsel %vm7764_vm0, %v2533_v23, 0.0  ;;  %v5109_v23 = vld [vmem:[%s7734_s10 + $0x1a0] sm:$0xff] }
 0xe33   : > { %2535 = vadd.xlane.f32.xlu1 %v2534_v24  ;;  %v5089_v24 = vld [vmem:[%s7734_s10 + $0x100] sm:$0xff]  ;;  %2689 = vmatpush.msra.mxu0 %v5109_v23 }
 0xe35   : > { %2690 = vmatpush.msra.mxu0 %v5108_v25 }
 0xe37   : > { %2691 = vmatpush.msra.mxu0 %v5107_v26 }
 0xe39   : > { %2692 = vmatpush.msra.mxu0 %v5106_v27 }
 0xe3b   : > { %2693 = vmatpush.msra.mxu0 %v5105_v29 }
 0xea6   : > { %v2536_v46 = vpop.xlane.xlu1 %2535 }
 0xea7   : > { %v2537_v49 = vmul.f32 %v2536_v46, %v5683_v8 }
 0xea9   : > { %v2538_v57 = vadd.f32 1e-05, %v2537_v49 }
 0xeab   : > { %5422 = vrsqrt.f32 %v2538_v57  ;;  %vm2545_vm10 = vweird.f32 %v2538_v57 }
 0xeb1   : > { %v5423_v4 = vpop.eup %5422 }
 0xeb2   : > { %v2540_v50 = vmul.f32 %v5423_v4, %v2538_v57  ;;  %vm2546_vm9 = vweird.f32 %v5423_v4  ;;  %v5133_v57 = vld [vmem:[%s7727_s3 + $0x160] sm:$0xff] }
 0xeb3   : > { %vm2547_vm11 = vmor %vm2545_vm10, %vm2546_vm9  ;;  %2756 = vmatpush.msra.mxu1 %v5133_v57 }
 0xeb4   : > { %v2541_v53 = vmul.f32 %v5423_v4, %v2540_v50  ;;  %v5123_v50 = vld [vmem:[%s7727_s3 + $0x110] sm:$0xff] }
 0xeb5   : > { %2757 = vmatpush.msra.mxu1 %v5131_v59 }
 0xeb6   : > { %v2542_v6 = vmul.f32 0.5, %v2541_v53  ;;  %v5122_v53 = vld [vmem:[%s7727_s3 + $0x108] sm:$0xff] }
 0xeb7   : > { %2758 = vmatpush.msra.mxu1 %v5129_v62 }
 0xeb8   : > { %v2543_v9 = vsub.f32 1.5, %v2542_v6 }
 0xeb9   : > { %2759 = vmatpush.msra.mxu1 %v5127_v0 }
 0xeba   : > { %v2544_v11 = vmul.f32 %v5423_v4, %v2543_v9 }
 0xebb   : > { %2760 = vmatpush.msra.mxu1 %v5125_v3 }
 0xebc   : > { %v2548_v14 = vsel %vm2547_vm11, %v5423_v4, %v2544_v11  ;;  %v5126_v4 = vld [vmem:[%s7727_s3 + $0x128] sm:$0xff] }
 0xebd   : > { %v2549_v15 = vmul.f32 %v2548_v14, %v6504_v22  ;;  %v5090_v22 = vld [vmem:[%s7734_s10 + $0x108] sm:$0xff]  ;;  %2761 = vmatpush.msra.mxu1 %v5123_v50  ;;  %v5367_v14 = vld [vmem:[%s7725_s1 + $0x2] ss:$0 sm:$0xff] }
 0xebe   : > { %2672 = vmatpush.msra.mxu3 %v5090_v22 }
 0xebf   : > { %v2551_v17 = vmul.f32 %v5364_v13, %v2549_v15  ;;  %2762 = vmatpush.msra.mxu1 %v5121_v56 }
 0xec0   : > { %2673 = vmatpush.msra.mxu3 %v5089_v24 }
 0xec1   : > { %v2553_v19 = vadd.f32 %v5365_v16, %v2551_v17  ;;  %v5368_v17 = vld [vmem:[%s7726_s2 + $0x2] ss:$0 sm:$0xff] }
 0xec3   : > { %5087 = vmatmul.msk.f32.vlgmr.msrb.gmra.mxu1 %vm7764_vm0, %v2553_v19  ;;  %5088 = vmatmul.msk.f32.vlgmr.msrb.gmra.mxu2 %vm7764_vm0, %v2553_v19 }
 0xf40   : > { %v2598_v31 = vpop.f32.mrf.mxu1 }
 0xf41   : > { %v2599_v32 = vadd.f32 %v2598_v31, %v2574_v30 }
 0xf43   : > { %v2621_v2 = vmax.f32 %v2599_v32, 0.0 }
 0xf45   : > { %2674 = vmatmul.f32.vlgmr.msra.gmra.mxu3 %v2621_v2 }
 0xf46   : > { %v2618_v34 = vpop.f32.mrf.mxu2 }
 0xf47   : > { %v2619_v35 = vadd.f32 %v2618_v34, %v2575_v33 }
 0xf49   : > { %v2622_v37 = vmax.f32 %v2619_v35, 0.0 }
 0xf4b   : > { %2694 = vmatmul.f32.vlgmr.msra.gmra.mxu0 %v2622_v37 }
 0xfc8   : > { %v2675_v38 = vpop.f32.mrf.mxu3  ;;  %v2695_v41 = vpop.f32.mrf.mxu0 }
 0xfc9   : > { %v2676_v39 = vadd.f32 %v5366_v42, %v2675_v38 }
 0xfcb   : > { %v2696_v43 = vadd.f32 %v2695_v41, %v2676_v39 }
 0xfcd   : > { %v6670_v44 = vadd.f32 %v2696_v43, %v6498_v18  ;;  %v5136_v18 = vld [vmem:[%s7727_s3 + $0x178] sm:$0xff] }
 0xfce   : > { %2775 = vmatpush.msra.mxu2 %v5136_v18 }
 0xfcf   : > { %v2701_v45 = vsel %vm7764_vm0, %v6670_v44, 0.0 }
 0xfd0   : > { %2702 = vadd.xlane.f32.xlu2 %v2701_v45  ;;  %2776 = vmatpush.msra.mxu2 %v5134_v58 }
 0xfd2   : > { %2777 = vmatpush.msra.mxu2 %v5132_v60 }
 0xfd4   : > { %2778 = vmatpush.msra.mxu2 %v5130_v63 }
 0xfd6   : > { %2779 = vmatpush.msra.mxu2 %v5128_v1 }
 0xfd8   : > { %2780 = vmatpush.msra.mxu2 %v5126_v4 }
 0xfda   : > { %2781 = vmatpush.msra.mxu2 %v5124_v7 }
 0xfdc   : > { %2782 = vmatpush.msra.mxu2 %v5122_v53 }
0x1043   : > { %v2703_v46 = vpop.xlane.xlu2 %2702 }
0x1044   : > { %v2704_v36 = vmul.f32 %v2703_v46, %v5683_v8 }
0x1046   : > { %v2705_v47 = vsub.f32 %v6670_v44, %v2704_v36 }
0x1048   : > { %v2706_v49 = vmul.f32 %v2705_v47, %v2705_v47 }
0x104a   : > { %v2707_v40 = vsel %vm7764_vm0, %v2706_v49, 0.0 }
0x104b   : > { %2708 = vadd.xlane.f32.xlu0 %v2707_v40 }
0x10be   : > { %v2709_v55 = vpop.xlane.xlu0 %2708 }
0x10bf   : > { %v2710_v48 = vmul.f32 %v2709_v55, %v5683_v8 }
0x10c1   : > { %v2711_v6 = vadd.f32 1e-05, %v2710_v48 }
0x10c3   : > { %5424 = vrsqrt.f32 %v2711_v6  ;;  %vm2718_vm13 = vweird.f32 %v2711_v6 }
0x10c9   : > { %v5425_v52 = vpop.eup %5424 }
0x10ca   : > { %v2713_v9 = vmul.f32 %v5425_v52, %v2711_v6  ;;  %vm2719_vm12 = vweird.f32 %v5425_v52 }
0x10cb   : > { %vm2720_vm1 = vmor %vm2718_vm13, %vm2719_vm12 }
0x10cc   : > { %v2714_v10 = vmul.f32 %v5425_v52, %v2713_v9 }
0x10ce   : > { %v2715_v11 = vmul.f32 0.5, %v2714_v10 }
0x10d0   : > { %v2716_v12 = vsub.f32 1.5, %v2715_v11 }
0x10d2   : > { %v2717_v13 = vmul.f32 %v5425_v52, %v2716_v12 }
0x10d4   : > { %v2721_v15 = vsel %vm2720_vm1, %v5425_v52, %v2717_v13 }
0x10d5   : > { %v2722_v16 = vmul.f32 %v2721_v15, %v2705_v47 }
0x10d7   : > { %v2724_v19 = vmul.f32 %v5367_v14, %v2722_v16 }
0x10d9   : > { %v2726_v20 = vadd.f32 %v5368_v17, %v2724_v19 }
0x10db   : > { %5137 = vmatmul.msk.f32.vlgmr.msra.gmra.mxu1 %vm7764_vm0, %v2726_v20  ;;  %5138 = vmatmul.msk.f32.vlgmr.msra.gmra.mxu2 %vm7764_vm0, %v2726_v20 }
0x1158   : > { %v2764_v21 = vpop.f32.mrf.mxu1 }
0x1159   : > { %2788 = vrot.lane.b32.xlu2 %v2764_v21, %s7784_s19  ;;  %2794 = vrot.lane.b32.xlu0 %v2764_v21, %s7782_s18  ;;  %v2799_v26 = vrot.slane %v2764_v21, 4 }
0x115a   : > { %2791 = vrot.lane.b32.xlu1 %v2764_v21, %s7783_s23 }
0x1162   : > { %2907 = vrot.lane.b32.xlu1 %v2764_v21, %s7785_s20 }
0x11b3   : > { %v2789_v24 = vpop.permute.xlu2 %2788 }
0x11b4   : > { %v2811_v31 = vrot.slane %v2789_v24, 4 }
0x11cb   : > { %v2795_v22 = vpop.permute.xlu0 %2794 }
0x11cc   : > { %v2792_v23 = vpop.permute.xlu1 %2791  ;;  %2913 = vrot.lane.b32.xlu2 %v2795_v22, %s7785_s20  ;;  %v2809_v28 = vrot.slane %v2795_v22, 4  ;;  %v2812_v2 = vsel %vm629_vm5, %v2795_v22, %v2811_v31 }
0x11cd   : > { %2911 = vrot.lane.b32.xlu0 %v2792_v23, %s7785_s20  ;;  %v2797_v25 = vrot.slane %v2792_v23, 4  ;;  %v2800_v27 = vsel %vm629_vm5, %v2792_v23, %v2799_v26  ;;  %v2820_v37 = vperm.slane %v2812_v2, %v5752_v54 }
0x11ce   : > { %v2808_v30 = vperm.slane %v2800_v27, %v5752_v54  ;;  %v2810_v33 = vsel %vm629_vm5, %v2809_v28, %v2789_v24 }
0x11cf   : > { %v2798_v29 = vsel %vm629_vm5, %v2797_v25, %v2764_v21  ;;  %v2816_v42 = vperm.slane %v2810_v33, %v5752_v54  ;;  %v2833_v41 = vrot.slane %v2820_v37, 4 }
0x11d0   : > { %v2804_v32 = vperm.slane %v2798_v29, %v5752_v54  ;;  %v2835_v34 = vrot.slane %v2808_v30, 4 }
0x11d1   : > { %v2821_v43 = vrot.slane %v2816_v42, 4  ;;  %v2834_v36 = vsel %vm629_vm5, %v2833_v41, %v2808_v30 }
0x11d2   : > { %v2823_v35 = vrot.slane %v2804_v32, 4  ;;  %v2836_v38 = vsel %vm629_vm5, %v2820_v37, %v2835_v34  ;;  %v2840_v57 = vperm.slane %v2834_v36, %v5756_v61 }
0x11d3   : > { %v2844_v45 = vperm.slane %v2836_v38, %v5756_v61  ;;  %v2822_v47 = vsel %vm629_vm5, %v2821_v43, %v2804_v32 }
0x11d4   : > { %v2824_v39 = vsel %vm629_vm5, %v2816_v42, %v2823_v35  ;;  %v2908_v51 = vpop.permute.xlu1 %2907  ;;  %v2828_v59 = vperm.slane %v2822_v47, %v5756_v61  ;;  %v2849_v3 = vrot.slane %v2840_v57, 4 }
0x11d5   : > { %2909 = vrot.lane.b32.xlu0 %v2789_v24, %s7785_s20  ;;  %v2832_v46 = vperm.slane %v2824_v39, %v5756_v61  ;;  %v2851_v49 = vrot.slane %v2844_v45, 4  ;;  %v2921_v62 = vrot.slane %v2908_v51, 4 }
0x11d6   : > { %v2845_v50 = vrot.slane %v2828_v59, 4  ;;  %v2850_v9 = vsel %vm629_vm5, 0.0, %v2849_v3 }
0x11d7   : > { %v2847_v40 = vrot.slane %v2832_v46, 4  ;;  %v2852_v60 = vsel %vm629_vm5, 0.0, %v2851_v49  ;;  %v2864_v48 = vsel %vm629_vm5, %v2851_v49, %v2840_v57 }
0x11d8   : > { %v2869_v7 = vrot.slane %v2852_v60, 4  ;;  %v2846_v12 = vsel %vm629_vm5, 0.0, %v2845_v50  ;;  %v2868_v16 = vperm.slane %v2864_v48, %v5752_v54 }
0x11d9   : > { %v2848_v0 = vsel %vm629_vm5, 0.0, %v2847_v40  ;;  %v2853_v26 = vsel %vm629_vm5, %v2847_v40, %v2828_v59 }
0x11da   : > { %v2858_v53 = vrot.slane %v2848_v0, 4  ;;  %v2870_v13 = vsel %vm629_vm5, %v2869_v7, %v2850_v9  ;;  %v2889_v33 = vrot.slane %v2868_v16, 4  ;;  %v2857_v35 = vperm.slane %v2853_v26, %v5752_v54 }
0x11db   : > { %v2874_v24 = vperm.slane %v2870_v13, %v5752_v54 }
0x11dc   : > { %v2859_v19 = vsel %vm629_vm5, %v2858_v53, %v2846_v12  ;;  %v2877_v3 = vrot.slane %v2857_v35, 4 }
0x11dd   : > { %v2863_v30 = vperm.slane %v2859_v19, %v5752_v54  ;;  %v2887_v46 = vrot.slane %v2874_v24, 4 }
0x11df   : > { %v2875_v45 = vrot.slane %v2863_v30, 4  ;;  %v2888_v53 = vsel %vm629_vm5, %v2887_v46, %v2868_v16  ;;  %v2878_v13 = vsel %vm629_vm5, %v2863_v30, %v2877_v3 }
0x1226   : > { %v2914_v1 = vpop.permute.xlu2 %2913 }
0x1227   : > { %v2931_v55 = vrot.slane %v2914_v1, 4 }
0x123f   : > { %v2912_v18 = vpop.permute.xlu0 %2911 }
0x1240   : > { %v2919_v58 = vrot.slane %v2912_v18, 4  ;;  %v2922_v4 = vsel %vm629_vm5, %v2912_v18, %v2921_v62 }
0x1241   : > { %v2930_v6 = vperm.slane %v2922_v4, %v5752_v54 }
0x1242   : > { %v2920_v63 = vsel %vm629_vm5, %v2919_v58, %v2908_v51  ;;  %v2890_v58 = vsel %vm629_vm5, %v2874_v24, %v2889_v33 }
0x1243   : > { %v2926_v56 = vperm.slane %v2920_v63, %v5752_v54  ;;  %v2957_v20 = vrot.slane %v2930_v6, 4 }
0x1245   : > { %v2945_v14 = vrot.slane %v2926_v56, 4 }
0x1247   : > { %v2910_v52 = vpop.permute.xlu0 %2909 }
0x1248   : > { %v2932_v10 = vsel %vm629_vm5, %v2931_v55, %v2910_v52  ;;  %v2933_v11 = vrot.slane %v2910_v52, 4  ;;  %v2898_v55 = vperm.slane %v2890_v58, %v5756_v61 }
0x1249   : > { %v2938_v15 = vperm.slane %v2932_v10, %v5752_v54 }
0x124a   : > { %v2934_v17 = vsel %vm629_vm5, %v2914_v1, %v2933_v11  ;;  %v2876_v1 = vsel %vm629_vm5, %v2875_v45, %v2857_v35 }
0x124b   : > { %v2942_v21 = vperm.slane %v2934_v17, %v5752_v54  ;;  %v2943_v22 = vrot.slane %v2938_v15, 4  ;;  %v2946_v23 = vsel %vm629_vm5, %v2938_v15, %v2945_v14  ;;  %v2882_v9 = vperm.slane %v2876_v1, %v5756_v61 }
0x124c   : > { %v2954_v25 = vperm.slane %v2946_v23, %v5756_v61  ;;  %v2894_v15 = vperm.slane %v2888_v53, %v5756_v61 }
0x124d   : > { %v2944_v27 = vsel %vm629_vm5, %v2943_v22, %v2926_v56  ;;  %v2955_v29 = vrot.slane %v2942_v21, 4  ;;  %v2958_v28 = vsel %vm629_vm5, %v2942_v21, %v2957_v20  ;;  %v2901_v20 = vrot.slane %v2882_v9, 4 }
0x124e   : > { %v2950_v31 = vperm.slane %v2944_v27, %v5756_v61  ;;  %v2966_v32 = vperm.slane %v2958_v28, %v5756_v61  ;;  %v2969_v2 = vrot.slane %v2954_v25, 4  ;;  %v2886_v21 = vperm.slane %v2878_v13, %v5756_v61 }
0x124f   : > { %v2956_v34 = vsel %vm629_vm5, %v2955_v29, %v2930_v6  ;;  %v2903_v22 = vrot.slane %v2898_v55, 4  ;;  %v2899_v27 = vrot.slane %v2894_v15, 4  ;;  %v2902_v28 = vsel %vm629_vm5, %v2894_v15, %v2901_v20 }
0x1250   : > { %v2962_v37 = vperm.slane %v2956_v34, %v5756_v61  ;;  %v2967_v42 = vrot.slane %v2950_v31, 4  ;;  %v2970_v38 = vsel %vm629_vm5, 0.0, %v2969_v2  ;;  %v2973_v39 = vrot.slane %v2966_v32, 4  ;;  %v2784_v34 = vpop.f32.mrf.mxu2 }
0x1251   : > { %v2975_v41 = vsel %vm629_vm5, %v2969_v2, %v2950_v31  ;;  %v2980_v43 = vrot.slane %v2970_v38, 4  ;;  %v2904_v30 = vsel %vm629_vm5, %v2903_v22, %v2886_v21  ;;  %v2900_v32 = vsel %vm629_vm5, %v2899_v27, %v2882_v9 }
0x1252   : > { %v2968_v36 = vsel %vm629_vm5, 0.0, %v2967_v42  ;;  %v2971_v47 = vrot.slane %v2962_v37, 4  ;;  %v2974_v49 = vsel %vm629_vm5, 0.0, %v2973_v39  ;;  %v2979_v40 = vperm.slane %v2975_v41, %v5752_v54 }
0x1253   : > { %v2981_v51 = vsel %vm629_vm5, %v2980_v43, %v2968_v36  ;;  %v2991_v18 = vrot.slane %v2974_v49, 4  ;;  %v2986_v57 = vsel %vm629_vm5, %v2973_v39, %v2962_v37  ;;  %v2905_v2 = vrot.slane %v2886_v21, 4 }
0x1254   : > { %v2972_v59 = vsel %vm629_vm5, 0.0, %v2971_v47  ;;  %v2985_v60 = vperm.slane %v2981_v51, %v5752_v54  ;;  %v2990_v62 = vperm.slane %v2986_v57, %v5752_v54  ;;  %v2999_v63 = vrot.slane %v2979_v40, 4 }
0x1255   : > { %v2992_v0 = vsel %vm629_vm5, %v2991_v18, %v2972_v59  ;;  %v2906_v33 = vsel %vm629_vm5, %v2898_v55, %v2905_v2  ;;  %v3041_v13 = vrot.slane %v2784_v34, 4 }
0x1256   : > { %v2996_v4 = vperm.slane %v2992_v0, %v5752_v54  ;;  %v2997_v50 = vrot.slane %v2985_v60, 4  ;;  %v3000_v7 = vsel %vm629_vm5, %v2985_v60, %v2999_v63  ;;  %v3011_v56 = vrot.slane %v2990_v62, 4 }
0x1257   : > { %v3008_v11 = vperm.slane %v3000_v7, %v5756_v61 }
0x1258   : > { %v2998_v48 = vsel %vm629_vm5, %v2997_v50, %v2979_v40  ;;  %v3009_v6 = vrot.slane %v2996_v4, 4  ;;  %v3012_v52 = vsel %vm629_vm5, %v2996_v4, %v3011_v56 }
0x1259   : > { %v3004_v10 = vperm.slane %v2998_v48, %v5756_v61  ;;  %v3020_v12 = vperm.slane %v3012_v52, %v5756_v61  ;;  %v3027_v26 = vrot.slane %v3008_v11, 4 }
0x125a   : > { %v3010_v14 = vsel %vm629_vm5, %v3009_v6, %v2990_v62 }
0x125b   : > { %v3016_v16 = vperm.slane %v3010_v14, %v5756_v61  ;;  %v3023_v17 = vrot.slane %v3004_v10, 4  ;;  %v3025_v19 = vrot.slane %v3020_v12, 4  ;;  %v3028_v31 = vsel %vm629_vm5, %v3020_v12, %v3027_v26 }
0x125d   : > { %v3024_v23 = vsel %vm629_vm5, %v3016_v16, %v3023_v17  ;;  %v3026_v24 = vsel %vm629_vm5, %v3025_v19, %v3008_v11  ;;  %v3021_v25 = vrot.slane %v3016_v16, 4 }
0x125e   : > { %5141 = vmatpush.xpose.msk.msrb.mxu2 %vm981_vm6, %v3024_v23  ;;  %5143 = vmatpush.xpose.msk.msrb.mxu3 %vm981_vm6, %v3026_v24 }
0x125f   : > { %v3022_v29 = vsel %vm629_vm5, %v3021_v25, %v3004_v10 }
0x1260   : > { %5139 = vmatpush.xpose.msk.msrb.mxu1 %vm981_vm6, %v3022_v29 }
0x1261   : > { %5142 = vmatmul.msk.f32.vlgmr.msrb.gmra.mxu2 %vm981_vm6, %v2902_v28  ;;  %5144 = vmatmul.msk.f32.vlgmr.msrb.gmra.mxu3 %vm981_vm6, %v2904_v30 }
0x1263   : > { %5140 = vmatmul.msk.f32.vlgmr.msrb.gmra.mxu1 %vm981_vm6, %v2900_v32 }
0x1264   : > { %5145 = vmatpush.xpose.msk.msra.mxu1 %vm981_vm6, %v3028_v31 }
0x126b   : > { %5146 = vmatmul.msk.f32.vlgmr.msra.gmra.mxu1 %vm981_vm6, %v2906_v33 }
0x12e0   : > { %v3172_v35 = vpop.f32.mrf.mxu1 }
0x12e1   : > { %v3253_v37 = vmul.f32 0.125, %v3172_v35 }
0x12e3   : > { %v3257_v42 = vsel %vm5855_vm7, %v3253_v37, -inf }
0x12e4   : > { %v3198_v38 = vpop.f32.mrf.mxu2  ;;  %v3224_v39 = vpop.f32.mrf.mxu3  ;;  %v3261_v41 = vsel %vm1096_vm8, %v3257_v42, -inf }
0x12e5   : > { %v3254_v43 = vmul.f32 0.125, %v3198_v38  ;;  %v3255_v45 = vmul.f32 0.125, %v3224_v39  ;;  %3262 = vmax.xlane.f32.xlu1 %v3261_v41 }
0x12e7   : > { %v3259_v46 = vsel %vm5855_vm7, %v3255_v45, -inf  ;;  %v3258_v36 = vsel %vm5855_vm7, %v3254_v43, -inf }
0x12e8   : > { %v3250_v47 = vpop.f32.mrf.mxu1  ;;  %v3267_v49 = vsel %vm1096_vm8, %v3259_v46, -inf  ;;  %v3264_v40 = vsel %vm1096_vm8, %v3258_v36, -inf }
0x12e9   : > { %v3256_v51 = vmul.f32 0.125, %v3250_v47  ;;  %3268 = vmax.xlane.f32.xlu0 %v3267_v49  ;;  %3265 = vmax.xlane.f32.xlu2 %v3264_v40 }
0x12eb   : > { %v3260_v18 = vsel %vm5855_vm7, %v3256_v51, -inf }
0x12ec   : > { %v3270_v57 = vsel %vm1096_vm8, %v3260_v18, -inf }
0x12ed   : > { %3271 = vmax.xlane.f32.xlu1 %v3270_v57 }
0x12fd   : > { %3033 = vrot.lane.b32.xlu0 %v2784_v34, %s7783_s23 }
0x1301   : > { %3030 = vrot.lane.b32.xlu2 %v2784_v34, %s7784_s19 }
0x1306   : > { %3036 = vrot.lane.b32.xlu1 %v2784_v34, %s7782_s18 }
0x1358   : > { %v3263_v58 = vpop.xlane.xlu1 %3262 }
0x1359   : > { %v3273_v59 = vsub.f32 %v3257_v42, %v3263_v58 }
0x135b   : > { %v3277_v60 = vmul.f32 1.442695, %v3273_v59 }
0x135c   : > { %v3269_v62 = vpop.xlane.xlu0 %3268  ;;  %v3266_v63 = vpop.xlane.xlu2 %3265 }
0x135d   : > { %5426 = vpow2.f32 %v3277_v60  ;;  %v3275_v0 = vsub.f32 %v3259_v46, %v3269_v62  ;;  %v3274_v1 = vsub.f32 %v3258_v36, %v3266_v63 }
0x135f   : > { %v3281_v3 = vmul.f32 1.442695, %v3275_v0  ;;  %v3279_v4 = vmul.f32 1.442695, %v3274_v1 }
0x1360   : > { %v3272_v50 = vpop.xlane.xlu1 %3271 }
0x1361   : > { %5428 = vpow2.f32 %v3281_v3  ;;  %v3276_v7 = vsub.f32 %v3260_v18, %v3272_v50 }
0x1362   : > { %5430 = vpow2.f32 %v3279_v4 }
0x1363   : > { %v6844_v56 = vpop.eup %5426  ;;  %v3283_v53 = vmul.f32 1.442695, %v3276_v7 }
0x1364   : > { %v3285_v55 = vsel %vm1096_vm8, %v6844_v56, 0.0  ;;  %v3031_v16 = vpop.permute.xlu2 %3030 }
0x1365   : > { %5432 = vpow2.f32 %v3283_v53  ;;  %3286 = vadd.xlane.f32.xlu0 %v3285_v55  ;;  %v3053_v20 = vrot.slane %v3031_v16, 4 }
0x1367   : > { %v6848_v48 = vpop.eup %5428 }
0x1368   : > { %v6850_v6 = vpop.eup %5430  ;;  %v3291_v52 = vsel %vm1096_vm8, %v6848_v48, 0.0 }
0x1369   : > { %v3288_v9 = vsel %vm1096_vm8, %v6850_v6, 0.0  ;;  %3292 = vadd.xlane.f32.xlu1 %v3291_v52 }
0x136a   : > { %3289 = vadd.xlane.f32.xlu2 %v3288_v9 }
0x136b   : > { %v6856_v10 = vpop.eup %5432 }
0x136c   : > { %v3294_v11 = vsel %vm1096_vm8, %v6856_v10, 0.0 }
0x136d   : > { %3295 = vadd.xlane.f32.xlu0 %v3294_v11 }
0x136f   : > { %v3034_v12 = vpop.permute.xlu0 %3033 }
0x1370   : > { %v3039_v14 = vrot.slane %v3034_v12, 4  ;;  %v3042_v15 = vsel %vm629_vm5, %v3034_v12, %v3041_v13 }
0x1371   : > { %v3050_v19 = vperm.slane %v3042_v15, %v5752_v54 }
0x1372   : > { %v3040_v17 = vsel %vm629_vm5, %v3039_v14, %v2784_v34 }
0x1373   : > { %v3046_v21 = vperm.slane %v3040_v17, %v5752_v54  ;;  %v3077_v25 = vrot.slane %v3050_v19, 4 }
0x1375   : > { %v3065_v29 = vrot.slane %v3046_v21, 4 }
0x1378   : > { %v3037_v22 = vpop.permute.xlu1 %3036 }
0x1379   : > { %v3051_v23 = vrot.slane %v3037_v22, 4  ;;  %v3054_v24 = vsel %vm629_vm5, %v3037_v22, %v3053_v20 }
0x137a   : > { %v3062_v26 = vperm.slane %v3054_v24, %v5752_v54 }
0x137b   : > { %v3052_v27 = vsel %vm629_vm5, %v3051_v23, %v3031_v16 }
0x137c   : > { %v3058_v28 = vperm.slane %v3052_v27, %v5752_v54  ;;  %v3075_v30 = vrot.slane %v3062_v26, 4  ;;  %v3078_v31 = vsel %vm629_vm5, %v3062_v26, %v3077_v25 }
0x137d   : > { %v3086_v32 = vperm.slane %v3078_v31, %v5756_v61 }
0x137e   : > { %v3063_v2 = vrot.slane %v3058_v28, 4  ;;  %v3066_v33 = vsel %vm629_vm5, %v3058_v28, %v3065_v29  ;;  %v3076_v34 = vsel %vm629_vm5, %v3075_v30, %v3050_v19 }
0x137f   : > { %v3074_v35 = vperm.slane %v3066_v33, %v5756_v61  ;;  %v3082_v37 = vperm.slane %v3076_v34, %v5756_v61  ;;  %v3093_v42 = vrot.slane %v3086_v32, 4 }
0x1380   : > { %v3064_v38 = vsel %vm629_vm5, %v3063_v2, %v3046_v21 }
0x1381   : > { %v3070_v39 = vperm.slane %v3064_v38, %v5756_v61  ;;  %v3089_v41 = vrot.slane %v3074_v35, 4  ;;  %v3091_v43 = vrot.slane %v3082_v37, 4  ;;  %v3094_v45 = vsel %vm629_vm5, 0.0, %v3093_v42 }
0x1382   : > { %v3106_v46 = vsel %vm629_vm5, %v3093_v42, %v3082_v37  ;;  %v3111_v36 = vrot.slane %v3094_v45, 4 }
0x1383   : > { %v3087_v47 = vrot.slane %v3070_v39, 4  ;;  %v3090_v49 = vsel %vm629_vm5, 0.0, %v3089_v41  ;;  %v3092_v40 = vsel %vm629_vm5, 0.0, %v3091_v43  ;;  %v3110_v51 = vperm.slane %v3106_v46, %v5752_v54 }
0x1384   : > { %v3100_v18 = vrot.slane %v3090_v49, 4  ;;  %v3112_v57 = vsel %vm629_vm5, %v3111_v36, %v3092_v40  ;;  %v3095_v58 = vsel %vm629_vm5, %v3089_v41, %v3070_v39 }
0x1385   : > { %v3088_v59 = vsel %vm629_vm5, 0.0, %v3087_v47  ;;  %v3099_v60 = vperm.slane %v3095_v58, %v5752_v54  ;;  %v3116_v62 = vperm.slane %v3112_v57, %v5752_v54  ;;  %v3131_v63 = vrot.slane %v3110_v51, 4 }
0x1386   : > { %v3101_v0 = vsel %vm629_vm5, %v3100_v18, %v3088_v59 }
0x1387   : > { %v3105_v1 = vperm.slane %v3101_v0, %v5752_v54  ;;  %v3119_v3 = vrot.slane %v3099_v60, 4  ;;  %v3132_v4 = vsel %vm629_vm5, %v3116_v62, %v3131_v63  ;;  %v3129_v50 = vrot.slane %v3116_v62, 4 }
0x1388   : > { %v3140_v7 = vperm.slane %v3132_v4, %v5756_v61 }
0x1389   : > { %v3120_v53 = vsel %vm629_vm5, %v3105_v1, %v3119_v3  ;;  %v3117_v55 = vrot.slane %v3105_v1, 4  ;;  %v3130_v52 = vsel %vm629_vm5, %v3129_v50, %v3110_v51 }
0x138a   : > { %v3128_v9 = vperm.slane %v3120_v53, %v5756_v61  ;;  %v3145_v11 = vrot.slane %v3140_v7, 4  ;;  %v3136_v12 = vperm.slane %v3130_v52, %v5756_v61 }
0x138b   : > { %v3118_v13 = vsel %vm629_vm5, %v3117_v55, %v3099_v60 }
0x138c   : > { %v3146_v14 = vsel %vm629_vm5, %v3145_v11, %v3128_v9  ;;  %v3124_v15 = vperm.slane %v3118_v13, %v5756_v61  ;;  %v3141_v16 = vrot.slane %v3136_v12, 4  ;;  %v3147_v17 = vrot.slane %v3128_v9, 4 }
0x138d   : > { %3421 = vmatpush.msrb.mxu0 %v3146_v14 }
0x138e   : > { %v3142_v19 = vsel %vm629_vm5, %v3141_v16, %v3124_v15  ;;  %v3148_v20 = vsel %vm629_vm5, %v3140_v7, %v3147_v17  ;;  %v3143_v21 = vrot.slane %v3124_v15, 4 }
0x138f   : > { %3375 = vmatpush.msra.mxu2 %v3142_v19  ;;  %3444 = vmatpush.msrb.mxu1 %v3148_v20 }
0x1390   : > { %v3144_v22 = vsel %vm629_vm5, %v3136_v12, %v3143_v21 }
0x1391   : > { %3398 = vmatpush.msra.mxu3 %v3144_v22 }
0x13d8   : > { %v3287_v23 = vpop.xlane.xlu0 %3286 }
0x13d9   : > { %5434 = vrcp.f32 %v3287_v23  ;;  %v3306_v28 = vand.u32 2147483647, %v3287_v23  ;;  %v3308_v30 = vand.u32 2147483648, %v3287_v23  ;;  %vm3302_vm3 = vweird.f32 %v3287_v23 }
0x13db   : > { %vm6900_vm4 = vcmp.eq.f32.partialorder %v3306_v28, 8.507059e+37  ;;  %v3309_v37 = vor.u32 1.1754944e-38, %v3308_v30 }
0x13dc   : > { %v3293_v24 = vpop.xlane.xlu1 %3292 }
0x13dd   : > { %v3290_v25 = vpop.xlane.xlu2 %3289  ;;  %5436 = vrcp.f32 %v3293_v24  ;;  %vm3332_vm9 = vweird.f32 %v3293_v24  ;;  %v3336_v41 = vand.u32 2147483647, %v3293_v24  ;;  %v3338_v36 = vand.u32 2147483648, %v3293_v24 }
0x13de   : > { %5438 = vrcp.f32 %v3290_v25  ;;  %vm3317_vm11 = vweird.f32 %v3290_v25  ;;  %v3323_v46 = vand.u32 2147483648, %v3290_v25  ;;  %v3321_v57 = vand.u32 2147483647, %v3290_v25 }
0x13df   : > { %v5435_v26 = vpop.eup %5434  ;;  %vm6906_vm1 = vcmp.eq.f32.partialorder %v3336_v41, 8.507059e+37  ;;  %v3339_v1 = vor.u32 1.1754944e-38, %v3338_v36 }
0x13e0   : > { %v3298_v27 = vmul.f32 %v5435_v26, %v3287_v23  ;;  %v3296_v29 = vpop.xlane.xlu0 %3295  ;;  %vm3303_vm2 = vweird.f32 %v5435_v26  ;;  %v3324_v0 = vor.u32 1.1754944e-38, %v3323_v46 }
0x13e1   : > { %5440 = vrcp.f32 %v3296_v29  ;;  %vm3304_vm10 = vmor %vm3302_vm3, %vm3303_vm2  ;;  %v3353_v3 = vand.u32 2147483648, %v3296_v29  ;;  %v3351_v7 = vand.u32 2147483647, %v3296_v29  ;;  %vm3347_vm0 = vweird.f32 %v3296_v29 }
0x13e2   : > { %v3299_v31 = vsub.f32 1.0, %v3298_v27 }
0x13e3   : > { %v5437_v32 = vpop.eup %5436  ;;  %v3354_v11 = vor.u32 1.1754944e-38, %v3353_v3 }
0x13e4   : > { %v5439_v2 = vpop.eup %5438  ;;  %v3300_v33 = vmul.f32 %v5435_v26, %v3299_v31  ;;  %v3328_v34 = vmul.f32 %v5437_v32, %v3293_v24  ;;  %vm3333_vm12 = vweird.f32 %v5437_v32 }
0x13e5   : > { %v3313_v42 = vmul.f32 %v5439_v2, %v3290_v25  ;;  %vm3318_vm13 = vweird.f32 %v5439_v2  ;;  %vm3334_vm2 = vmor %vm3332_vm9, %vm3333_vm12 }
0x13e6   : > { %v3301_v38 = vadd.f32 %v5435_v26, %v3300_v33  ;;  %v3329_v39 = vsub.f32 1.0, %v3328_v34  ;;  %vm3319_vm3 = vmor %vm3317_vm11, %vm3318_vm13  ;;  %vm3352_vm11 = vcmp.eq.f32.partialorder %v3351_v7, 8.507059e+37 }
0x13e7   : > { %v5441_v43 = vpop.eup %5440  ;;  %v3314_v45 = vsub.f32 1.0, %v3313_v42 }
0x13e8   : > { %v3305_v47 = vsel %vm3304_vm10, %v5435_v26, %v3301_v38  ;;  %v3330_v49 = vmul.f32 %v5437_v32, %v3329_v39  ;;  %v3343_v40 = vmul.f32 %v5441_v43, %v3296_v29  ;;  %vm3322_vm10 = vcmp.eq.f32.partialorder %v3321_v57, 8.507059e+37 }
0x13e9   : > { %v3310_v51 = vsel %vm6900_vm4, %v3309_v37, %v3305_v47  ;;  %v3315_v18 = vmul.f32 %v5439_v2, %v3314_v45  ;;  %vm3348_vm4 = vweird.f32 %v5441_v43 }
0x13ea   : > { %v3331_v58 = vadd.f32 %v5437_v32, %v3330_v49  ;;  %v3344_v60 = vsub.f32 1.0, %v3343_v40  ;;  %v3311_v62 = vmul.f32 %v6844_v56, %v3310_v51  ;;  %vm3349_vm9 = vmor %vm3347_vm0, %vm3348_vm4  ;;  %vm7793_vm0 = vcmask 523264  }
0x13eb   : > { %v3316_v63 = vadd.f32 %v5439_v2, %v3315_v18  ;;  %vm7794_vm12 = vmmov %vm7793_vm0 }
0x13ec   : > { %v3335_v4 = vsel %vm3334_vm2, %v5437_v32, %v3331_v58  ;;  %v3345_v50 = vmul.f32 %v5441_v43, %v3344_v60  ;;  %5147 = vmatmul.msk.f32.vlgmr.msra.gmra.mxu2 %vm1096_vm8, %v3311_v62  ;;  %vm7795_vm13 = vmmov %vm7793_vm0 }
0x13ed   : > { %v3320_v53 = vsel %vm3319_vm3, %v5439_v2, %v3316_v63  ;;  %v3340_v55 = vsel %vm6906_vm1, %v3339_v1, %v3335_v4  ;;  %vm7796_vm4 = vmmov %vm7793_vm0 }
0x13ee   : > { %v3325_v56 = vsel %vm3322_vm10, %v3324_v0, %v3320_v53  ;;  %v3346_v52 = vadd.f32 %v5441_v43, %v3345_v50  ;;  %v3341_v9 = vmul.f32 %v6848_v48, %v3340_v55  ;;  %vm7797_vm10 = vmmov %vm7793_vm0 }
0x13ef   : > { %v3326_v12 = vmul.f32 %v6850_v6, %v3325_v56 }
0x13f0   : > { %v3350_v13 = vsel %vm3349_vm9, %v5441_v43, %v3346_v52  ;;  %5149 = vmatmul.msk.f32.vlgmr.msrb.gmra.mxu0 %vm1096_vm8, %v3341_v9  ;;  %vm7798_vm9 = vmmov %vm7793_vm0 }
0x13f1   : > { %v3355_v14 = vsel %vm3352_vm11, %v3354_v11, %v3350_v13  ;;  %5148 = vmatmul.msk.f32.vlgmr.msra.gmra.mxu3 %vm1096_vm8, %v3326_v12  ;;  %vm7799_vm11 = vmmov %vm7793_vm0 }
0x13f2   : > { %v3356_v15 = vmul.f32 %v6856_v10, %v3355_v14 }
0x13f4   : > { %5150 = vmatmul.msk.f32.vlgmr.msrb.gmra.mxu1 %vm1096_vm8, %v3356_v15 }
0x146d   : > { %v3423_v16 = vpop.f32.mrf.mxu0 }
0x146e   : > { %v3449_v17 = vrot.slane %v3423_v16, 4 }
0x146f   : > { %v3377_v19 = vpop.f32.mrf.mxu2 }
0x1470   : > { %v3450_v48 = vsel %vm629_vm5, %v3449_v17, %v3377_v19  ;;  %v3451_v20 = vrot.slane %v3377_v19, 4 }
0x1471   : > { %v3446_v21 = vpop.f32.mrf.mxu1  ;;  %v3456_v22 = vperm.slane %v3450_v48, %v5752_v54 }
0x1472   : > { %v3452_v6 = vsel %vm629_vm5, %v3423_v16, %v3451_v20  ;;  %v3461_v23 = vrot.slane %v3446_v21, 4 }
0x1473   : > { %v3460_v24 = vperm.slane %v3452_v6, %v5752_v54  ;;  %v3475_v27 = vrot.slane %v3456_v22, 4 }
0x1474   : > { %v3400_v25 = vpop.f32.mrf.mxu3 }
0x1475   : > { %v3462_v26 = vsel %vm629_vm5, %v3461_v23, %v3400_v25  ;;  %v3463_v10 = vrot.slane %v3400_v25, 4  ;;  %v3487_v30 = vrot.slane %v3460_v24, 4  ;;  %v5157_v23 = vld [vmem:[%s7728_s4 + $0xb0] sm:$0xff]  ;;  %v5155_v25 = vld [vmem:[%s7728_s4 + $0xa0] sm:$0xff] }
0x1476   : > { %v3468_v29 = vperm.slane %v3462_v26, %v5752_v54  ;;  %v5154_v26 = vld [vmem:[%s7728_s4 + $0x98] sm:$0xff] }
0x1477   : > { %v3464_v28 = vsel %vm629_vm5, %v3446_v21, %v3463_v10  ;;  %v5153_v10 = vld [vmem:[%s7728_s4 + $0x90] sm:$0xff] }
0x1478   : > { %v3472_v31 = vperm.slane %v3464_v28, %v5752_v54  ;;  %v3473_v32 = vrot.slane %v3468_v29, 4  ;;  %v3476_v2 = vsel %vm629_vm5, %v3468_v29, %v3475_v27  ;;  %v5152_v27 = vld [vmem:[%s7728_s4 + $0x88] sm:$0xff]  ;;  %v5151_v29 = vld [vmem:[%s7728_s4 + $0x80] sm:$0xff] }
0x1479   : > { %v3484_v33 = vperm.slane %v3476_v2, %v5756_v61 }
0x147a   : > { %v3474_v34 = vsel %vm629_vm5, %v3473_v32, %v3456_v22  ;;  %v3485_v35 = vrot.slane %v3472_v31, 4  ;;  %v3488_v37 = vsel %vm629_vm5, %v3472_v31, %v3487_v30  ;;  %v5158_v22 = vld [vmem:[%s7728_s4 + $0xb8] sm:$0xff] }
0x147b   : > { %v3480_v42 = vperm.slane %v3474_v34, %v5756_v61  ;;  %v3496_v38 = vperm.slane %v3488_v37, %v5756_v61  ;;  %v3499_v39 = vrot.slane %v3484_v33, 4  ;;  %3596 = vmatpush.msrb.mxu2 %v5158_v22  ;;  %v5369_v34 = vld [vmem:[%s7729_s5 + $0x2] ss:$0 sm:$0xff]  ;;  %v5202_v22 = vld [vmem:[%s7734_s10 + $0x2b8] sm:$0xff] }
0x147c   : > { %v3486_v41 = vsel %vm629_vm5, %v3485_v35, %v3460_v24  ;;  %v5156_v24 = vld [vmem:[%s7728_s4 + $0xa8] sm:$0xff] }
0x147d   : > { %v3492_v43 = vperm.slane %v3486_v41, %v5756_v61  ;;  %v3497_v45 = vrot.slane %v3480_v42, 4  ;;  %v3500_v46 = vsel %vm629_vm5, 0.0, %v3499_v39  ;;  %v3503_v36 = vrot.slane %v3496_v38, 4  ;;  %3597 = vmatpush.msrb.mxu2 %v5157_v23 }
0x147e   : > { %v3505_v47 = vsel %vm629_vm5, %v3499_v39, %v3480_v42  ;;  %v3510_v49 = vrot.slane %v3500_v46, 4 }
0x147f   : > { %v3498_v40 = vsel %vm629_vm5, 0.0, %v3497_v45  ;;  %v3501_v51 = vrot.slane %v3492_v43, 4  ;;  %v3504_v18 = vsel %vm629_vm5, 0.0, %v3503_v36  ;;  %v3509_v57 = vperm.slane %v3505_v47, %v5752_v54  ;;  %3598 = vmatpush.msrb.mxu2 %v5156_v24  ;;  %v5172_v47 = vld [vmem:[%s7732_s8 + $0x160] sm:$0xff]  ;;  %v5186_v24 = vld [vmem:[%s7734_s10 + $0x238] sm:$0xff] }
0x1480   : > { %v3521_v58 = vrot.slane %v3504_v18, 4  ;;  %v3511_v59 = vsel %vm629_vm5, %v3510_v49, %v3498_v40  ;;  %v3516_v60 = vsel %vm629_vm5, %v3503_v36, %v3492_v43  ;;  %v5175_v36 = vld [vmem:[%s7732_s8 + $0x178] sm:$0xff]  ;;  %v5173_v49 = vld [vmem:[%s7732_s8 + $0x168] sm:$0xff]  ;;  %v5170_v40 = vld [vmem:[%s7732_s8 + $0x150] sm:$0xff] }
0x1481   : > { %v3502_v62 = vsel %vm629_vm5, 0.0, %v3501_v51  ;;  %v3515_v63 = vperm.slane %v3511_v59, %v5752_v54  ;;  %v3520_v0 = vperm.slane %v3516_v60, %v5752_v54  ;;  %v3529_v1 = vrot.slane %v3509_v57, 4  ;;  %3599 = vmatpush.msrb.mxu2 %v5155_v25  ;;  %3692 = vmatpush.msra.mxu0 %v5175_v36  ;;  %v5171_v51 = vld [vmem:[%s7732_s8 + $0x158] sm:$0xff]  ;;  %v5168_v18 = vld [vmem:[%s7732_s8 + $0x140] sm:$0xff]  ;;  %v5201_v25 = vld [vmem:[%s7734_s10 + $0x2b0] sm:$0xff] }
0x1482   : > { %v3522_v3 = vsel %vm629_vm5, %v3521_v58, %v3502_v62  ;;  %v5166_v58 = vld [vmem:[%s7732_s8 + $0x130] sm:$0xff]  ;;  %v5167_v59 = vld [vmem:[%s7732_s8 + $0x138] sm:$0xff]  ;;  %v5164_v60 = vld [vmem:[%s7732_s8 + $0x120] sm:$0xff] }
0x1483   : > { %v3526_v4 = vperm.slane %v3522_v3, %v5752_v54  ;;  %v3530_v50 = vsel %vm629_vm5, %v3515_v63, %v3529_v1  ;;  %v3541_v7 = vrot.slane %v3520_v0, 4  ;;  %v3527_v53 = vrot.slane %v3515_v63, 4  ;;  %3600 = vmatpush.msrb.mxu2 %v5154_v26  ;;  %3693 = vmatpush.msra.mxu0 %v5173_v49  ;;  %v5165_v62 = vld [vmem:[%s7732_s8 + $0x128] sm:$0xff]  ;;  %v5162_v63 = vld [vmem:[%s7732_s8 + $0x110] sm:$0xff]  ;;  %v5160_v1 = vld [vmem:[%s7732_s8 + $0x100] sm:$0xff] }
0x1484   : > { %v3538_v55 = vperm.slane %v3530_v50, %v5756_v61  ;;  %v5161_v3 = vld [vmem:[%s7732_s8 + $0x108] sm:$0xff]  ;;  %v5209_v50 = vld [vmem:[%s7734_s10 + $0x2f0] sm:$0xff]  ;;  %v5179_v49 = vld [vmem:[%s7734_s10 + $0x200] sm:$0xff] }
0x1485   : > { %v3542_v56 = vsel %vm629_vm5, %v3526_v4, %v3541_v7  ;;  %v3528_v52 = vsel %vm629_vm5, %v3527_v53, %v3509_v57  ;;  %v3539_v9 = vrot.slane %v3526_v4, 4  ;;  %3601 = vmatpush.msrb.mxu2 %v5153_v10  ;;  %3694 = vmatpush.msra.mxu0 %v5171_v51  ;;  %v5169_v57 = vld [vmem:[%s7732_s8 + $0x148] sm:$0xff]  ;;  %v5210_v4 = vld [vmem:[%s7734_s10 + $0x2f8] sm:$0xff]  ;;  %v5193_v53 = vld [vmem:[%s7734_s10 + $0x270] sm:$0xff] }
0x1486   : > { %v3550_v11 = vperm.slane %v3542_v56, %v5756_v61  ;;  %v3557_v12 = vrot.slane %v3538_v55, 4  ;;  %v3534_v13 = vperm.slane %v3528_v52, %v5756_v61  ;;  %v5194_v7 = vld [vmem:[%s7734_s10 + $0x278] sm:$0xff]  ;;  %v5192_v52 = vld [vmem:[%s7734_s10 + $0x268] sm:$0xff]  ;;  %v5185_v10 = vld [vmem:[%s7734_s10 + $0x230] sm:$0xff] }
0x1487   : > { %v3540_v14 = vsel %vm629_vm5, %v3539_v9, %v3520_v0  ;;  %3602 = vmatpush.msrb.mxu2 %v5152_v27  ;;  %3695 = vmatpush.msra.mxu0 %v5169_v57  ;;  %v5163_v0 = vld [vmem:[%s7732_s8 + $0x118] sm:$0xff]  ;;  %v5200_v27 = vld [vmem:[%s7734_s10 + $0x2a8] sm:$0xff]  ;;  %v5181_v36 = vld [vmem:[%s7734_s10 + $0x210] sm:$0xff] }
0x1488   : > { %v3558_v15 = vsel %vm629_vm5, %v3550_v11, %v3557_v12  ;;  %v3555_v16 = vrot.slane %v3550_v11, 4  ;;  %v3546_v17 = vperm.slane %v3540_v14, %v5756_v61  ;;  %v3553_v19 = vrot.slane %v3534_v13, 4  ;;  %3741 = vmatpush.msra.mxu1 %v5194_v7  ;;  %v5207_v11 = vld [vmem:[%s7734_s10 + $0x2e0] sm:$0xff]  ;;  %v5206_v14 = vld [vmem:[%s7734_s10 + $0x2d8] sm:$0xff] }
0x1489   : > { %3568 = vrot.lane.b32.xlu0 %v3558_v15, %s7787_s28  ;;  %3603 = vmatpush.msrb.mxu2 %v5151_v29  ;;  %v5191_v12 = vld [vmem:[%s7734_s10 + $0x260] sm:$0xff]  ;;  %v5190_v15 = vld [vmem:[%s7734_s10 + $0x258] sm:$0xff] }
0x148a   : > { %v3556_v48 = vsel %vm629_vm5, %v3555_v16, %v3538_v55  ;;  %v3551_v20 = vrot.slane %v3546_v17, 4  ;;  %v3554_v21 = vsel %vm629_vm5, %v3546_v17, %v3553_v19  ;;  %3696 = vmatpush.msra.mxu0 %v5167_v59  ;;  %v5208_v55 = vld [vmem:[%s7734_s10 + $0x2e8] sm:$0xff]  ;;  %3742 = vmatpush.msra.mxu1 %v5193_v53  ;;  %v5205_v16 = vld [vmem:[%s7734_s10 + $0x2d0] sm:$0xff] }
0x148b   : > { %3564 = vrot.lane.b32.xlu1 %v3556_v48, %s7786_s29  ;;  %3560 = vrot.lane.b32.xlu2 %v3554_v21, %s7788_s26  ;;  %v5189_v17 = vld [vmem:[%s7734_s10 + $0x250] sm:$0xff]  ;;  %v5204_v19 = vld [vmem:[%s7734_s10 + $0x2c8] sm:$0xff] }
0x148c   : > { %v3552_v6 = vsel %vm629_vm5, %v3551_v20, %v3534_v13  ;;  %3697 = vmatpush.msra.mxu0 %v5165_v62  ;;  %3761 = vmatpush.msra.mxu2 %v5210_v4  ;;  %v5188_v48 = vld [vmem:[%s7734_s10 + $0x248] sm:$0xff]  ;;  %v5203_v20 = vld [vmem:[%s7734_s10 + $0x2c0] sm:$0xff] }
0x148d   : > { %3743 = vmatpush.msra.mxu1 %v5192_v52  ;;  %v5187_v21 = vld [vmem:[%s7734_s10 + $0x240] sm:$0xff] }
0x148e   : > { %3698 = vmatpush.msra.mxu0 %v5163_v0  ;;  %3762 = vmatpush.msra.mxu2 %v5209_v50  ;;  %v5372_v0 = vld [vmem:[%s7735_s11 + $0x2] ss:$0 sm:$0xff] }
0x148f   : > { %3744 = vmatpush.msra.mxu1 %v5191_v12  ;;  %v5225_v12 = vld [vmem:[%s7727_s3 + $0x1f0] sm:$0xff] }
0x1490   : > { %3699 = vmatpush.msra.mxu0 %v5161_v3  ;;  %3763 = vmatpush.msra.mxu2 %v5208_v55 }
0x1491   : > { %3745 = vmatpush.msra.mxu1 %v5190_v15  ;;  %v5221_v15 = vld [vmem:[%s7727_s3 + $0x1d0] sm:$0xff] }
0x1492   : > { %3764 = vmatpush.msra.mxu2 %v5207_v11 }
0x1493   : > { %3746 = vmatpush.msra.mxu1 %v5189_v17  ;;  %v5219_v17 = vld [vmem:[%s7727_s3 + $0x1c0] sm:$0xff] }
0x1494   : > { %3765 = vmatpush.msra.mxu2 %v5206_v14  ;;  %v5224_v14 = vld [vmem:[%s7727_s3 + $0x1e8] sm:$0xff] }
0x1495   : > { %3747 = vmatpush.msra.mxu1 %v5188_v48  ;;  %v5217_v48 = vld [vmem:[%s7727_s3 + $0x1b0] sm:$0xff] }
0x1496   : > { %3766 = vmatpush.msra.mxu2 %v5205_v16  ;;  %v5222_v16 = vld [vmem:[%s7727_s3 + $0x1d8] sm:$0xff] }
0x1497   : > { %3748 = vmatpush.msra.mxu1 %v5187_v21  ;;  %v5215_v21 = vld [vmem:[%s7727_s3 + $0x1a0] sm:$0xff] }
0x1498   : > { %3767 = vmatpush.msra.mxu2 %v5204_v19  ;;  %v5220_v19 = vld [vmem:[%s7727_s3 + $0x1c8] sm:$0xff] }
0x1499   : > { %3749 = vmatpush.msra.mxu1 %v5186_v24  ;;  %v5211_v24 = vld [vmem:[%s7727_s3 + $0x180] sm:$0xff] }
0x149a   : > { %3768 = vmatpush.msra.mxu2 %v5203_v20  ;;  %v5218_v20 = vld [vmem:[%s7727_s3 + $0x1b8] sm:$0xff] }
0x149b   : > { %3750 = vmatpush.msra.mxu1 %v5185_v10 }
0x149c   : > { %3769 = vmatpush.msra.mxu2 %v5202_v22  ;;  %v5213_v22 = vld [vmem:[%s7727_s3 + $0x190] sm:$0xff] }
0x149e   : > { %3770 = vmatpush.msra.mxu2 %v5201_v25  ;;  %v5212_v25 = vld [vmem:[%s7727_s3 + $0x188] sm:$0xff] }
0x14a0   : > { %3771 = vmatpush.msra.mxu2 %v5200_v27 }
0x14e5   : > { %v3561_v28 = vpop.permute.xlu2 %3560 }
0x14e6   : > { %v3571_v30 = vsel %vm981_vm6, %v3552_v6, %v3561_v28  ;;  %v5199_v28 = vld [vmem:[%s7734_s10 + $0x2a0] sm:$0xff] }
0x14e7   : > { %3772 = vmatpush.msra.mxu2 %v5199_v28 }
0x14fb   : > { %v3569_v32 = vpop.permute.xlu0 %3568 }
0x14fd   : > { %v3565_v31 = vpop.permute.xlu1 %3564 }
0x14fe   : > { %v3572_v2 = vsel %vm1408_vm14, %v3571_v30, %v3565_v31  ;;  %v5198_v31 = vld [vmem:[%s7734_s10 + $0x298] sm:$0xff] }
0x14ff   : > { %v3573_v33 = vsel %vm1410_vm15, %v3572_v2, %v3569_v32  ;;  %v5370_v2 = vld [vmem:[%s7730_s6 + $0x2] ss:$0 sm:$0xff]  ;;  %3773 = vmatpush.msra.mxu2 %v5198_v31 }
0x1500   : > { %5159 = vmatmul.msk.f32.vlgmr.msrb.gmra.mxu2 %vm7793_vm0, %v3573_v33 }
0x1583   : > { %v3605_v35 = vpop.f32.mrf.mxu2 }
0x1584   : > { %v3606_v37 = vadd.f32 %v5369_v34, %v3605_v35  ;;  %v5371_v35 = vld [vmem:[%s7731_s7 + $0x2] ss:$0 sm:$0xff] }
0x1586   : > { %v6997_v42 = vadd.f32 %v3606_v37, %v6670_v44  ;;  %v5174_v44 = vld [vmem:[%s7732_s8 + $0x170] sm:$0xff] }
0x1587   : > { %3672 = vmatpush.msrb.mxu3 %v5174_v44  ;;  %v5195_v44 = vld [vmem:[%s7734_s10 + $0x280] sm:$0xff] }
0x1588   : > { %v3611_v38 = vsel %vm7794_vm12, %v6997_v42, 0.0 }
0x1589   : > { %3612 = vadd.xlane.f32.xlu2 %v3611_v38  ;;  %3673 = vmatpush.msrb.mxu3 %v5172_v47  ;;  %v5180_v47 = vld [vmem:[%s7734_s10 + $0x208] sm:$0xff] }
0x158b   : > { %3674 = vmatpush.msrb.mxu3 %v5170_v40  ;;  %v5176_v40 = vld [vmem:[%s7733_s9 + $0x2] ss:$4 sm:$0x3] }
0x158c   : > { %v3658_v51 = vperm.slane %v5176_v40, 1  ;;  %v3657_v59 = vperm.slane %v5176_v40, 0 }
0x158d   : > { %3675 = vmatpush.msrb.mxu3 %v5168_v18 }
0x158f   : > { %3676 = vmatpush.msrb.mxu3 %v5166_v58 }
0x1591   : > { %3677 = vmatpush.msrb.mxu3 %v5164_v60 }
0x1593   : > { %3678 = vmatpush.msrb.mxu3 %v5162_v63 }
0x1595   : > { %3679 = vmatpush.msrb.mxu3 %v5160_v1 }
0x1597   : > { %3838 = vmatpush.msra.mxu3 %v5225_v12 }
0x15fc   : > { %v3613_v39 = vpop.xlane.xlu2 %3612 }
0x15fd   : > { %v3614_v41 = vmul.f32 %v3613_v39, %v5683_v8  ;;  %v5184_v39 = vld [vmem:[%s7734_s10 + $0x228] sm:$0xff] }
0x15fe   : > { %3751 = vmatpush.msra.mxu1 %v5184_v39 }
0x15ff   : > { %v7003_v43 = vsub.f32 %v6997_v42, %v3614_v41  ;;  %v5197_v41 = vld [vmem:[%s7734_s10 + $0x290] sm:$0xff] }
0x1600   : > { %3774 = vmatpush.msra.mxu2 %v5197_v41 }
0x1601   : > { %v3616_v45 = vmul.f32 %v7003_v43, %v7003_v43 }
0x1603   : > { %v3617_v46 = vsel %vm7795_vm13, %v3616_v45, 0.0  ;;  %v5196_v45 = vld [vmem:[%s7734_s10 + $0x288] sm:$0xff] }
0x1604   : > { %3618 = vadd.xlane.f32.xlu0 %v3617_v46  ;;  %3775 = vmatpush.msra.mxu2 %v5196_v45  ;;  %v5182_v46 = vld [vmem:[%s7734_s10 + $0x218] sm:$0xff] }
0x1606   : > { %3776 = vmatpush.msra.mxu2 %v5195_v44 }
0x1677   : > { %v3619_v56 = vpop.xlane.xlu0 %3618 }
0x1678   : > { %v3620_v9 = vmul.f32 %v3619_v56, %v5683_v8 }
0x167a   : > { %v3621_v13 = vadd.f32 1e-05, %v3620_v9 }
0x167c   : > { %5442 = vrsqrt.f32 %v3621_v13  ;;  %vm3628_vm2 = vweird.f32 %v3621_v13 }
0x1682   : > { %v5443_v6 = vpop.eup %5442 }
0x1683   : > { %v3623_v23 = vmul.f32 %v5443_v6, %v3621_v13  ;;  %vm3629_vm1 = vweird.f32 %v5443_v6  ;;  %v5223_v13 = vld [vmem:[%s7727_s3 + $0x1e0] sm:$0xff] }
0x1684   : > { %vm3630_vm3 = vmor %vm3628_vm2, %vm3629_vm1  ;;  %3839 = vmatpush.msra.mxu3 %v5223_v13 }
0x1685   : > { %v3624_v26 = vmul.f32 %v5443_v6, %v3623_v23  ;;  %v5214_v23 = vld [vmem:[%s7727_s3 + $0x198] sm:$0xff]  ;;  %vm7800_vm1 = vmmov %vm7796_vm4 }
0x1686   : > { %3840 = vmatpush.msra.mxu3 %v5221_v15  ;;  %vm7801_vm2 = vmmov %vm7800_vm1 }
0x1687   : > { %v3625_v29 = vmul.f32 0.5, %v3624_v26 }
0x1688   : > { %3841 = vmatpush.msra.mxu3 %v5219_v17 }
0x1689   : > { %v3626_v30 = vsub.f32 1.5, %v3625_v29 }
0x168a   : > { %3842 = vmatpush.msra.mxu3 %v5217_v48 }
0x168b   : > { %v3627_v32 = vmul.f32 %v5443_v6, %v3626_v30 }
0x168c   : > { %3843 = vmatpush.msra.mxu3 %v5215_v21 }
0x168d   : > { %v3631_v33 = vsel %vm3630_vm3, %v5443_v6, %v3627_v32  ;;  %v5216_v6 = vld [vmem:[%s7727_s3 + $0x1a8] sm:$0xff] }
0x168e   : > { %v3632_v34 = vmul.f32 %v3631_v33, %v7003_v43  ;;  %v5183_v43 = vld [vmem:[%s7734_s10 + $0x220] sm:$0xff]  ;;  %3844 = vmatpush.msra.mxu3 %v5213_v22 }
0x168f   : > { %3752 = vmatpush.msra.mxu1 %v5183_v43  ;;  %v5373_v33 = vld [vmem:[%s7725_s1 + $0x3] ss:$0 sm:$0xff] }
0x1690   : > { %v3634_v37 = vmul.f32 %v5370_v2, %v3632_v34  ;;  %3845 = vmatpush.msra.mxu3 %v5211_v24 }
0x1691   : > { %3753 = vmatpush.msra.mxu1 %v5182_v46 }
0x1692   : > { %v3636_v38 = vadd.f32 %v5371_v35, %v3634_v37  ;;  %v5374_v37 = vld [vmem:[%s7726_s2 + $0x3] ss:$0 sm:$0xff] }
0x1693   : > { %3754 = vmatpush.msra.mxu1 %v5181_v36 }
0x1694   : > { %5177 = vmatmul.msk.f32.vlgmr.msrb.gmra.mxu3 %vm7796_vm4, %v3636_v38  ;;  %5178 = vmatmul.msk.f32.vlgmr.msra.gmra.mxu0 %vm7797_vm10, %v3636_v38 }
0x1695   : > { %3755 = vmatpush.msra.mxu1 %v5180_v47 }
0x1697   : > { %3756 = vmatpush.msra.mxu1 %v5179_v49 }
0x1711   : > { %v3701_v18 = vpop.f32.mrf.mxu0 }
0x1712   : > { %v3702_v57 = vadd.f32 %v3701_v18, %v3658_v51 }
0x1714   : > { %v3705_v58 = vmax.f32 %v3702_v57, 0.0 }
0x1716   : > { %3777 = vmatmul.f32.vlgmr.msra.gmra.mxu2 %v3705_v58 }
0x1717   : > { %v3681_v60 = vpop.f32.mrf.mxu3 }
0x1718   : > { %v3682_v62 = vadd.f32 %v3681_v60, %v3657_v59 }
0x171a   : > { %v3704_v63 = vmax.f32 %v3682_v62, 0.0 }
0x171c   : > { %3757 = vmatmul.f32.vlgmr.msra.gmra.mxu1 %v3704_v63 }
0x1799   : > { %v3758_v1 = vpop.f32.mrf.mxu1  ;;  %v3778_v4 = vpop.f32.mrf.mxu2 }
0x179a   : > { %v3759_v3 = vadd.f32 %v5372_v0, %v3758_v1 }
0x179c   : > { %v3779_v50 = vadd.f32 %v3778_v4, %v3759_v3 }
0x179e   : > { %v7169_v7 = vadd.f32 %v3779_v50, %v6997_v42  ;;  %v5226_v42 = vld [vmem:[%s7727_s3 + $0x1f8] sm:$0xff] }
0x179f   : > { %3858 = vmatpush.msrb.mxu0 %v5226_v42 }
0x17a0   : > { %v3784_v53 = vsel %vm7798_vm9, %v7169_v7, 0.0 }
0x17a1   : > { %3785 = vadd.xlane.f32.xlu1 %v3784_v53  ;;  %3859 = vmatpush.msrb.mxu0 %v5224_v14 }
0x17a3   : > { %3860 = vmatpush.msrb.mxu0 %v5222_v16 }
0x17a5   : > { %3861 = vmatpush.msrb.mxu0 %v5220_v19 }
0x17a7   : > { %3862 = vmatpush.msrb.mxu0 %v5218_v20 }
0x17a9   : > { %3863 = vmatpush.msrb.mxu0 %v5216_v6 }
0x17ab   : > { %3864 = vmatpush.msrb.mxu0 %v5214_v23 }
0x17ad   : > { %3865 = vmatpush.msrb.mxu0 %v5212_v25 }
0x1814   : > { %v3786_v55 = vpop.xlane.xlu1 %3785 }
0x1815   : > { %v3787_v56 = vmul.f32 %v3786_v55, %v5683_v8 }
0x1817   : > { %v3788_v52 = vsub.f32 %v7169_v7, %v3787_v56 }
0x1819   : > { %v3789_v9 = vmul.f32 %v3788_v52, %v3788_v52 }
0x181b   : > { %v3790_v11 = vsel %vm7799_vm11, %v3789_v9, 0.0 }
0x181c   : > { %3791 = vadd.xlane.f32.xlu2 %v3790_v11 }
0x188f   : > { %v3792_v26 = vpop.xlane.xlu2 %3791 }
0x1890   : > { %v3793_v10 = vmul.f32 %v3792_v26, %v5683_v8 }
0x1892   : > { %v3794_v27 = vadd.f32 1e-05, %v3793_v10 }
0x1894   : > { %5444 = vrsqrt.f32 %v3794_v27  ;;  %vm3801_vm12 = vweird.f32 %v3794_v27 }
0x189a   : > { %v5445_v29 = vpop.eup %5444 }
0x189b   : > { %v3796_v28 = vmul.f32 %v5445_v29, %v3794_v27  ;;  %vm3802_vm0 = vweird.f32 %v5445_v29 }
0x189c   : > { %vm3803_vm13 = vmor %vm3801_vm12, %vm3802_vm0 }
0x189d   : > { %v3797_v30 = vmul.f32 %v5445_v29, %v3796_v28 }
0x189f   : > { %v3798_v31 = vmul.f32 0.5, %v3797_v30 }
0x18a1   : > { %v3799_v32 = vsub.f32 1.5, %v3798_v31 }
0x18a3   : > { %v3800_v2 = vmul.f32 %v5445_v29, %v3799_v32 }
0x18a5   : > { %v3804_v34 = vsel %vm3803_vm13, %v5445_v29, %v3800_v2 }
0x18a6   : > { %v3805_v35 = vmul.f32 %v3804_v34, %v3788_v52 }
0x18a8   : > { %v3807_v38 = vmul.f32 %v5373_v33, %v3805_v35 }
0x18aa   : > { %v3809_v39 = vadd.f32 %v5374_v37, %v3807_v38 }
0x18ac   : > { %5227 = vmatmul.msk.f32.vlgmr.msra.gmra.mxu3 %vm7800_vm1, %v3809_v39  ;;  %5228 = vmatmul.msk.f32.vlgmr.msrb.gmra.mxu0 %vm7801_vm2, %v3809_v39 }
0x192f   : > { %v3847_v41 = vpop.f32.mrf.mxu3 }
0x1930   : > { %3877 = vrot.lane.b32.xlu1 %v3847_v41, %s7782_s18  ;;  %3874 = vrot.lane.b32.xlu2 %v3847_v41, %s7783_s23  ;;  %v3882_v44 = vrot.slane %v3847_v41, 4 }
0x1931   : > { %3871 = vrot.lane.b32.xlu0 %v3847_v41, %s7784_s19 }
0x1939   : > { %3990 = vrot.lane.b32.xlu0 %v3847_v41, %s7785_s20 }
0x198a   : > { %v3875_v43 = vpop.permute.xlu2 %3874 }
0x198b   : > { %3994 = vrot.lane.b32.xlu0 %v3875_v43, %s7785_s20  ;;  %v3880_v47 = vrot.slane %v3875_v43, 4  ;;  %v3883_v49 = vsel %vm629_vm5, %v3875_v43, %v3882_v44 }
0x198c   : > { %v3891_v57 = vperm.slane %v3883_v49, %v5752_v54 }
0x198d   : > { %v3881_v18 = vsel %vm629_vm5, %v3880_v47, %v3847_v41 }
0x198e   : > { %v3887_v60 = vperm.slane %v3881_v18, %v5752_v54  ;;  %v3918_v62 = vrot.slane %v3891_v57, 4 }
0x1990   : > { %v3906_v4 = vrot.slane %v3887_v60, 4 }
0x19a2   : > { %v3878_v45 = vpop.permute.xlu1 %3877 }
0x19a3   : > { %v3872_v46 = vpop.permute.xlu0 %3871  ;;  %3996 = vrot.lane.b32.xlu1 %v3878_v45, %s7785_s20  ;;  %v3892_v40 = vrot.slane %v3878_v45, 4 }
0x19a4   : > { %3992 = vrot.lane.b32.xlu2 %v3872_v46, %s7785_s20  ;;  %v3894_v36 = vrot.slane %v3872_v46, 4 }
0x19a5   : > { %v3893_v58 = vsel %vm629_vm5, %v3892_v40, %v3872_v46 }
0x19a6   : > { %v3895_v51 = vsel %vm629_vm5, %v3878_v45, %v3894_v36  ;;  %v3899_v63 = vperm.slane %v3893_v58, %v5752_v54 }
0x19a7   : > { %v3903_v59 = vperm.slane %v3895_v51, %v5752_v54 }
0x19a8   : > { %v3904_v50 = vrot.slane %v3899_v63, 4  ;;  %v3907_v53 = vsel %vm629_vm5, %v3899_v63, %v3906_v4 }
0x19a9   : > { %v3916_v0 = vrot.slane %v3903_v59, 4  ;;  %v3919_v1 = vsel %vm629_vm5, %v3903_v59, %v3918_v62  ;;  %v3915_v52 = vperm.slane %v3907_v53, %v5756_v61 }
0x19aa   : > { %v3927_v55 = vperm.slane %v3919_v1, %v5756_v61  ;;  %v3905_v9 = vsel %vm629_vm5, %v3904_v50, %v3887_v60 }
0x19ab   : > { %v3991_v3 = vpop.permute.xlu0 %3990  ;;  %v3917_v56 = vsel %vm629_vm5, %v3916_v0, %v3891_v57  ;;  %v3911_v13 = vperm.slane %v3905_v9, %v5756_v61  ;;  %v3930_v14 = vrot.slane %v3915_v52, 4 }
0x19ac   : > { %v3923_v11 = vperm.slane %v3917_v56, %v5756_v61  ;;  %v3934_v12 = vrot.slane %v3927_v55, 4  ;;  %v4004_v17 = vrot.slane %v3991_v3, 4 }
0x19ad   : > { %v3928_v20 = vrot.slane %v3911_v13, 4  ;;  %v3931_v21 = vsel %vm629_vm5, 0.0, %v3930_v14  ;;  %v3936_v51 = vsel %vm629_vm5, %v3930_v14, %v3911_v13 }
0x19ae   : > { %v3932_v15 = vrot.slane %v3923_v11, 4  ;;  %v3935_v16 = vsel %vm629_vm5, 0.0, %v3934_v12  ;;  %v3941_v26 = vrot.slane %v3931_v21, 4  ;;  %v3947_v29 = vsel %vm629_vm5, %v3934_v12, %v3923_v11 }
0x19af   : > { %v3952_v6 = vrot.slane %v3935_v16, 4  ;;  %v3929_v27 = vsel %vm629_vm5, 0.0, %v3928_v20  ;;  %v3951_v38 = vperm.slane %v3947_v29, %v5752_v54  ;;  %v3940_v4 = vperm.slane %v3936_v51, %v5752_v54 }
0x19b0   : > { %v3933_v23 = vsel %vm629_vm5, 0.0, %v3932_v15  ;;  %v3942_v37 = vsel %vm629_vm5, %v3941_v26, %v3929_v27 }
0x19b1   : > { %v3953_v31 = vsel %vm629_vm5, %v3952_v6, %v3933_v23  ;;  %v3946_v40 = vperm.slane %v3942_v37, %v5752_v54  ;;  %v3972_v60 = vrot.slane %v3951_v38, 4  ;;  %v3960_v23 = vrot.slane %v3940_v4, 4 }
0x19b2   : > { %v3957_v39 = vperm.slane %v3953_v31, %v5752_v54 }
0x19b3   : > { %v3958_v55 = vrot.slane %v3946_v40, 4 }
0x19b4   : > { %v3970_v62 = vrot.slane %v3957_v39, 4 }
0x19b5   : > { %v3959_v26 = vsel %vm629_vm5, %v3958_v55, %v3940_v4 }
0x19fd   : > { %v3995_v42 = vpop.permute.xlu0 %3994 }
0x19fe   : > { %v4002_v19 = vrot.slane %v3995_v42, 4  ;;  %v4005_v48 = vsel %vm629_vm5, %v3995_v42, %v4004_v17  ;;  %v3993_v22 = vpop.permute.xlu2 %3992  ;;  %v3973_v17 = vsel %vm629_vm5, %v3957_v39, %v3972_v60  ;;  %v3867_v60 = vpop.f32.mrf.mxu0 }
0x19ff   : > { %v4013_v25 = vperm.slane %v4005_v48, %v5752_v54  ;;  %v4016_v10 = vrot.slane %v3993_v22, 4 }
0x1a00   : > { %v4003_v24 = vsel %vm629_vm5, %v4002_v19, %v3991_v3  ;;  %v3971_v19 = vsel %vm629_vm5, %v3970_v62, %v3951_v38 }
0x1a01   : > { %v4009_v28 = vperm.slane %v4003_v24, %v5752_v54  ;;  %v4040_v33 = vrot.slane %v4013_v25, 4 }
0x1a03   : > { %v4028_v41 = vrot.slane %v4009_v28, 4 }
0x1a15   : > { %v3997_v30 = vpop.permute.xlu1 %3996 }
0x1a16   : > { %v4014_v32 = vrot.slane %v3997_v30, 4  ;;  %v4017_v2 = vsel %vm629_vm5, %v3997_v30, %v4016_v10  ;;  %v3977_v10 = vperm.slane %v3971_v19, %v5756_v61 }
0x1a17   : > { %v4025_v34 = vperm.slane %v4017_v2, %v5752_v54 }
0x1a18   : > { %v4015_v35 = vsel %vm629_vm5, %v4014_v32, %v3993_v22 }
0x1a19   : > { %v4021_v43 = vperm.slane %v4015_v35, %v5752_v54  ;;  %v4038_v45 = vrot.slane %v4025_v34, 4  ;;  %v4041_v46 = vsel %vm629_vm5, %v4025_v34, %v4040_v33  ;;  %v3961_v34 = vsel %vm629_vm5, %v3946_v40, %v3960_v23 }
0x1a1a   : > { %v4049_v44 = vperm.slane %v4041_v46, %v5756_v61  ;;  %v3965_v35 = vperm.slane %v3959_v26, %v5756_v61 }
0x1a1b   : > { %v4026_v36 = vrot.slane %v4021_v43, 4  ;;  %v4029_v47 = vsel %vm629_vm5, %v4021_v43, %v4028_v41  ;;  %v4039_v49 = vsel %vm629_vm5, %v4038_v45, %v4013_v25  ;;  %v3981_v25 = vperm.slane %v3973_v17, %v5756_v61 }
0x1a1c   : > { %v4037_v18 = vperm.slane %v4029_v47, %v5756_v61  ;;  %v4045_v57 = vperm.slane %v4039_v49, %v5756_v61  ;;  %v4056_v58 = vrot.slane %v4049_v44, 4  ;;  %v3982_v45 = vrot.slane %v3977_v10, 4 }
0x1a1d   : > { %v4027_v59 = vsel %vm629_vm5, %v4026_v36, %v4009_v28  ;;  %v3986_v39 = vrot.slane %v3981_v25, 4  ;;  %v3969_v44 = vperm.slane %v3961_v34, %v5756_v61  ;;  %v3984_v49 = vrot.slane %v3965_v35, 4 }
0x1a1e   : > { %v4033_v63 = vperm.slane %v4027_v59, %v5756_v61  ;;  %v4052_v0 = vrot.slane %v4037_v18, 4  ;;  %v4054_v1 = vrot.slane %v4045_v57, 4  ;;  %v4057_v3 = vsel %vm629_vm5, 0.0, %v4056_v58 }
0x1a1f   : > { %v4069_v50 = vsel %vm629_vm5, %v4056_v58, %v4045_v57  ;;  %v4074_v53 = vrot.slane %v4057_v3, 4  ;;  %v3987_v40 = vsel %vm629_vm5, %v3986_v39, %v3969_v44  ;;  %v3983_v18 = vsel %vm629_vm5, %v3982_v45, %v3965_v35 }
0x1a20   : > { %v4050_v56 = vrot.slane %v4033_v63, 4  ;;  %v4053_v52 = vsel %vm629_vm5, 0.0, %v4052_v0  ;;  %v4055_v9 = vsel %vm629_vm5, 0.0, %v4054_v1  ;;  %v4058_v11 = vsel %vm629_vm5, %v4052_v0, %v4033_v63 }
0x1a21   : > { %v4063_v12 = vrot.slane %v4053_v52, 4  ;;  %v4073_v42 = vperm.slane %v4069_v50, %v5752_v54  ;;  %v4075_v13 = vsel %vm629_vm5, %v4074_v53, %v4055_v9  ;;  %v4062_v14 = vperm.slane %v4058_v11, %v5752_v54 }
0x1a22   : > { %v4051_v15 = vsel %vm629_vm5, 0.0, %v4050_v56  ;;  %v4079_v16 = vperm.slane %v4075_v13, %v5752_v54  ;;  %v3985_v57 = vsel %vm629_vm5, %v3977_v10, %v3984_v49  ;;  %v3988_v58 = vrot.slane %v3969_v44, 4 }
0x1a23   : > { %v4094_v48 = vrot.slane %v4073_v42, 4  ;;  %v4064_v20 = vsel %vm629_vm5, %v4063_v12, %v4051_v15  ;;  %v4082_v21 = vrot.slane %v4062_v14, 4 }
0x1a24   : > { %v4068_v6 = vperm.slane %v4064_v20, %v5752_v54  ;;  %v4092_v22 = vrot.slane %v4079_v16, 4  ;;  %v3989_v59 = vsel %vm629_vm5, %v3981_v25, %v3988_v58 }
0x1a25   : > { %v4095_v24 = vsel %vm629_vm5, %v4079_v16, %v4094_v48 }
0x1a26   : > { %v4083_v27 = vsel %vm629_vm5, %v4068_v6, %v4082_v21  ;;  %v4103_v29 = vperm.slane %v4095_v24, %v5756_v61  ;;  %v4080_v28 = vrot.slane %v4068_v6, 4  ;;  %v4093_v30 = vsel %vm629_vm5, %v4092_v22, %v4073_v42 }
0x1a27   : > { %v4091_v31 = vperm.slane %v4083_v27, %v5756_v61  ;;  %v4099_v32 = vperm.slane %v4093_v30, %v5756_v61 }
0x1a28   : > { %v4108_v2 = vrot.slane %v4103_v29, 4  ;;  %v4081_v33 = vsel %vm629_vm5, %v4080_v28, %v4062_v14 }
0x1a29   : > { %v4087_v37 = vperm.slane %v4081_v33, %v5756_v61  ;;  %v4104_v38 = vrot.slane %v4099_v32, 4  ;;  %v4110_v41 = vrot.slane %v4091_v31, 4 }
0x1a2a   : > { %v4109_v43 = vsel %vm629_vm5, %v4108_v2, %v4091_v31 }
0x1a2b   : > { %5233 = vmatpush.xpose.msk.msrb.mxu1 %vm981_vm6, %v4109_v43  ;;  %v4105_v46 = vsel %vm629_vm5, %v4104_v38, %v4087_v37  ;;  %v4111_v36 = vsel %vm629_vm5, %v4103_v29, %v4110_v41  ;;  %v4106_v47 = vrot.slane %v4087_v37, 4 }
0x1a2c   : > { %5229 = vmatpush.xpose.msk.msrb.mxu3 %vm981_vm6, %v4105_v46 }
0x1a2d   : > { %v4107_v51 = vsel %vm629_vm5, %v4099_v32, %v4106_v47  ;;  %v4124_v32 = vrot.slane %v3867_v60, 4 }
0x1a2e   : > { %5234 = vmatmul.msk.f32.vlgmr.msrb.gmra.mxu1 %vm981_vm6, %v3987_v40  ;;  %5231 = vmatpush.xpose.msk.msra.mxu0 %vm981_vm6, %v4107_v51 }
0x1a2f   : > { %5230 = vmatmul.msk.f32.vlgmr.msrb.gmra.mxu3 %vm981_vm6, %v3983_v18 }
0x1a30   : > { %5235 = vmatpush.xpose.msk.msra.mxu3 %vm981_vm6, %v4111_v36 }
0x1a31   : > { %5232 = vmatmul.msk.f32.vlgmr.msra.gmra.mxu0 %vm981_vm6, %v3985_v57 }
0x1a37   : > { %5236 = vmatmul.msk.f32.vlgmr.msra.gmra.mxu3 %vm981_vm6, %v3989_v59 }
0x1aab   : > { %v4307_v62 = vpop.f32.mrf.mxu1 }
0x1aac   : > { %v4338_v63 = vmul.f32 0.125, %v4307_v62 }
0x1aae   : > { %v4281_v0 = vpop.f32.mrf.mxu0  ;;  %v4342_v1 = vsel %vm5855_vm7, %v4338_v63, -inf }
0x1aaf   : > { %v4350_v3 = vsel %vm1096_vm8, %v4342_v1, -inf  ;;  %v4337_v4 = vmul.f32 0.125, %v4281_v0 }
0x1ab0   : > { %4351 = vmax.xlane.f32.xlu2 %v4350_v3 }
0x1ab1   : > { %v4341_v55 = vsel %vm5855_vm7, %v4337_v4, -inf }
0x1ab2   : > { %v4255_v50 = vpop.f32.mrf.mxu3  ;;  %v4347_v9 = vsel %vm1096_vm8, %v4341_v55, -inf }
0x1ab3   : > { %v4336_v53 = vmul.f32 0.125, %v4255_v50 }
0x1ab5   : > { %v4340_v56 = vsel %vm5855_vm7, %v4336_v53, -inf }
0x1ab6   : > { %v4344_v52 = vsel %vm1096_vm8, %v4340_v56, -inf }
0x1ab7   : > { %4345 = vmax.xlane.f32.xlu1 %v4344_v52 }
0x1ab8   : > { %4348 = vmax.xlane.f32.xlu2 %v4347_v9 }
0x1aba   : > { %v4333_v11 = vpop.f32.mrf.mxu3 }
0x1abb   : > { %v4339_v12 = vmul.f32 0.125, %v4333_v11 }
0x1abd   : > { %v4343_v42 = vsel %vm5855_vm7, %v4339_v12, -inf }
0x1abe   : > { %v4353_v13 = vsel %vm1096_vm8, %v4343_v42, -inf }
0x1abf   : > { %4354 = vmax.xlane.f32.xlu0 %v4353_v13 }
0x1ad0   : > { %4119 = vrot.lane.b32.xlu2 %v3867_v60, %s7782_s18  ;;  %4116 = vrot.lane.b32.xlu1 %v3867_v60, %s7783_s23  ;;  %s7814_s23 = sld [smem:[#allocation15_spill]] }
0x1ad3   : > { %4113 = vrot.lane.b32.xlu0 %v3867_v60, %s7784_s19 }
0x1b23   : > { %v4352_v14 = vpop.xlane.xlu2 %4351 }
0x1b24   : > { %v4358_v15 = vsub.f32 %v4342_v1, %v4352_v14 }
0x1b26   : > { %v4364_v16 = vmul.f32 1.442695, %v4358_v15 }
0x1b28   : > { %5446 = vpow2.f32 %v4364_v16 }
0x1b2a   : > { %v4346_v17 = vpop.xlane.xlu1 %4345 }
0x1b2b   : > { %v4349_v19 = vpop.xlane.xlu2 %4348  ;;  %v4356_v48 = vsub.f32 %v4340_v56, %v4346_v17 }
0x1b2c   : > { %v4357_v20 = vsub.f32 %v4341_v55, %v4349_v19 }
0x1b2d   : > { %v4360_v21 = vmul.f32 1.442695, %v4356_v48 }
0x1b2e   : > { %v7343_v5 = vpop.eup %5446  ;;  %v4362_v6 = vmul.f32 1.442695, %v4357_v20 }
0x1b2f   : > { %5448 = vpow2.f32 %v4360_v21  ;;  %v4374_v22 = vsel %vm1096_vm8, %v7343_v5, 0.0 }
0x1b30   : > { %5450 = vpow2.f32 %v4362_v6  ;;  %4375 = vadd.xlane.f32.xlu0 %v4374_v22 }
0x1b32   : > { %v4355_v23 = vpop.xlane.xlu0 %4354 }
0x1b33   : > { %v4359_v24 = vsub.f32 %v4343_v42, %v4355_v23  ;;  %v4120_v31 = vpop.permute.xlu2 %4119 }
0x1b34   : > { %v4134_v35 = vrot.slane %v4120_v31, 4 }
0x1b35   : > { %v7347_v25 = vpop.eup %5448  ;;  %v4366_v26 = vmul.f32 1.442695, %v4359_v24 }
0x1b36   : > { %v7349_v10 = vpop.eup %5450  ;;  %v4368_v27 = vsel %vm1096_vm8, %v7347_v25, 0.0 }
0x1b37   : > { %5452 = vpow2.f32 %v4366_v26  ;;  %4369 = vadd.xlane.f32.xlu2 %v4368_v27  ;;  %v4371_v29 = vsel %vm1096_vm8, %v7349_v10, 0.0 }
0x1b38   : > { %4372 = vadd.xlane.f32.xlu0 %v4371_v29 }
0x1b3d   : > { %v7355_v28 = vpop.eup %5452 }
0x1b3e   : > { %v4377_v30 = vsel %vm1096_vm8, %v7355_v28, 0.0 }
0x1b3f   : > { %4378 = vadd.xlane.f32.xlu1 %v4377_v30 }
0x1b42   : > { %v4117_v2 = vpop.permute.xlu1 %4116 }
0x1b43   : > { %v4122_v33 = vrot.slane %v4117_v2, 4  ;;  %v4125_v34 = vsel %vm629_vm5, %v4117_v2, %v4124_v32 }
0x1b44   : > { %v4133_v38 = vperm.slane %v4125_v34, %v5752_v54 }
0x1b45   : > { %v4123_v37 = vsel %vm629_vm5, %v4122_v33, %v3867_v60  ;;  %v4114_v39 = vpop.permute.xlu0 %4113 }
0x1b46   : > { %v4129_v41 = vperm.slane %v4123_v37, %v5752_v54  ;;  %v4135_v43 = vsel %vm629_vm5, %v4134_v35, %v4114_v39  ;;  %v4136_v45 = vrot.slane %v4114_v39, 4  ;;  %v4160_v47 = vrot.slane %v4133_v38, 4 }
0x1b47   : > { %v4141_v46 = vperm.slane %v4135_v43, %v5752_v54 }
0x1b48   : > { %v4148_v44 = vrot.slane %v4129_v41, 4  ;;  %v4137_v36 = vsel %vm629_vm5, %v4120_v31, %v4136_v45 }
0x1b49   : > { %v4145_v49 = vperm.slane %v4137_v36, %v5752_v54  ;;  %v4146_v40 = vrot.slane %v4141_v46, 4 }
0x1b4a   : > { %v4149_v51 = vsel %vm629_vm5, %v4141_v46, %v4148_v44 }
0x1b4b   : > { %v4147_v18 = vsel %vm629_vm5, %v4146_v40, %v4129_v41  ;;  %v4157_v57 = vperm.slane %v4149_v51, %v5756_v61  ;;  %v4158_v58 = vrot.slane %v4145_v49, 4  ;;  %v4161_v59 = vsel %vm629_vm5, %v4145_v49, %v4160_v47 }
0x1b4c   : > { %v4153_v60 = vperm.slane %v4147_v18, %v5756_v61  ;;  %v4169_v62 = vperm.slane %v4161_v59, %v5756_v61 }
0x1b4d   : > { %v4159_v63 = vsel %vm629_vm5, %v4158_v58, %v4133_v38  ;;  %v4172_v0 = vrot.slane %v4157_v57, 4 }
0x1b4e   : > { %v4165_v1 = vperm.slane %v4159_v63, %v5756_v61  ;;  %v4170_v3 = vrot.slane %v4153_v60, 4  ;;  %v4176_v4 = vrot.slane %v4169_v62, 4 }
0x1b4f   : > { %v4173_v50 = vsel %vm629_vm5, 0.0, %v4172_v0  ;;  %v4178_v53 = vsel %vm629_vm5, %v4172_v0, %v4153_v60 }
0x1b50   : > { %v4171_v55 = vsel %vm629_vm5, 0.0, %v4170_v3  ;;  %v4174_v56 = vrot.slane %v4165_v1, 4  ;;  %v4177_v52 = vsel %vm629_vm5, 0.0, %v4176_v4  ;;  %v4182_v9 = vperm.slane %v4178_v53, %v5752_v54 }
0x1b51   : > { %v4183_v11 = vrot.slane %v4173_v50, 4  ;;  %v4194_v12 = vrot.slane %v4177_v52, 4  ;;  %v4189_v42 = vsel %vm629_vm5, %v4176_v4, %v4165_v1 }
0x1b52   : > { %v4175_v13 = vsel %vm629_vm5, 0.0, %v4174_v56  ;;  %v4193_v14 = vperm.slane %v4189_v42, %v5752_v54  ;;  %v4202_v15 = vrot.slane %v4182_v9, 4 }
0x1b53   : > { %v4184_v16 = vsel %vm629_vm5, %v4183_v11, %v4171_v55  ;;  %v4195_v17 = vsel %vm629_vm5, %v4194_v12, %v4175_v13 }
0x1b54   : > { %v4188_v19 = vperm.slane %v4184_v16, %v5752_v54  ;;  %v4199_v48 = vperm.slane %v4195_v17, %v5752_v54  ;;  %v4214_v20 = vrot.slane %v4193_v14, 4 }
0x1b56   : > { %v4203_v21 = vsel %vm629_vm5, %v4188_v19, %v4202_v15  ;;  %v4215_v6 = vsel %vm629_vm5, %v4199_v48, %v4214_v20  ;;  %v4200_v22 = vrot.slane %v4188_v19, 4  ;;  %v4212_v23 = vrot.slane %v4199_v48, 4 }
0x1b57   : > { %v4211_v24 = vperm.slane %v4203_v21, %v5756_v61  ;;  %v4223_v26 = vperm.slane %v4215_v6, %v5756_v61 }
0x1b58   : > { %v4201_v27 = vsel %vm629_vm5, %v4200_v22, %v4182_v9  ;;  %v4213_v29 = vsel %vm629_vm5, %v4212_v23, %v4193_v14 }
0x1b59   : > { %v4230_v30 = vrot.slane %v4211_v24, 4  ;;  %v4228_v31 = vrot.slane %v4223_v26, 4  ;;  %v4207_v32 = vperm.slane %v4201_v27, %v5756_v61  ;;  %v4219_v2 = vperm.slane %v4213_v29, %v5756_v61 }
0x1b5b   : > { %v4231_v33 = vsel %vm629_vm5, %v4223_v26, %v4230_v30  ;;  %v4229_v34 = vsel %vm629_vm5, %v4228_v31, %v4211_v24  ;;  %v4226_v35 = vrot.slane %v4207_v32, 4  ;;  %v4224_v37 = vrot.slane %v4219_v2, 4 }
0x1b5c   : > { %4527 = vmatpush.msrb.mxu3 %v4231_v33  ;;  %4504 = vmatpush.msrb.mxu2 %v4229_v34 }
0x1b5d   : > { %v4227_v38 = vsel %vm629_vm5, %v4219_v2, %v4226_v35  ;;  %v4225_v39 = vsel %vm629_vm5, %v4224_v37, %v4207_v32 }
0x1b5e   : > { %4481 = vmatpush.msra.mxu1 %v4227_v38  ;;  %4458 = vmatpush.msrb.mxu0 %v4225_v39 }
0x1ba3   : > { %v4376_v41 = vpop.xlane.xlu0 %4375 }
0x1ba4   : > { %5454 = vrcp.f32 %v4376_v41  ;;  %v4421_v47 = vand.u32 2147483648, %v4376_v41  ;;  %v4419_v40 = vand.u32 2147483647, %v4376_v41  ;;  %vm4415_vm3 = vweird.f32 %v4376_v41 }
0x1ba6   : > { %v4422_v58 = vor.u32 1.1754944e-38, %v4421_v47  ;;  %vm4420_vm10 = vcmp.eq.f32.partialorder %v4419_v40, 8.507059e+37 }
0x1baa   : > { %v5455_v43 = vpop.eup %5454  ;;  %v4370_v45 = vpop.xlane.xlu2 %4369 }
0x1bab   : > { %v4411_v46 = vmul.f32 %v5455_v43, %v4376_v41  ;;  %5456 = vrcp.f32 %v4370_v45  ;;  %v4373_v44 = vpop.xlane.xlu0 %4372  ;;  %vm4416_vm7 = vweird.f32 %v5455_v43  ;;  %v4391_v3 = vand.u32 2147483648, %v4370_v45 }
0x1bac   : > { %5458 = vrcp.f32 %v4373_v44  ;;  %vm4417_vm4 = vmor %vm4415_vm3, %vm4416_vm7  ;;  %v4389_v55 = vand.u32 2147483647, %v4370_v45  ;;  %v4406_v56 = vand.u32 2147483648, %v4373_v44  ;;  %v4404_v9 = vand.u32 2147483647, %v4373_v44 }
0x1bad   : > { %v4412_v36 = vsub.f32 1.0, %v4411_v46  ;;  %vm4385_vm0 = vweird.f32 %v4370_v45  ;;  %v4392_v42 = vor.u32 1.1754944e-38, %v4391_v3  ;;  %vm4400_vm13 = vweird.f32 %v4373_v44 }
0x1bae   : > { %vm4390_vm1 = vcmp.eq.f32.partialorder %v4389_v55, 8.507059e+37  ;;  %vm4405_vm7 = vcmp.eq.f32.partialorder %v4404_v9, 8.507059e+37 }
0x1baf   : > { %v4413_v49 = vmul.f32 %v5455_v43, %v4412_v36 }
0x1bb1   : > { %v5457_v51 = vpop.eup %5456  ;;  %v4414_v18 = vadd.f32 %v5455_v43, %v4413_v49 }
0x1bb2   : > { %v5459_v57 = vpop.eup %5458  ;;  %v4381_v59 = vmul.f32 %v5457_v51, %v4370_v45  ;;  %v4379_v60 = vpop.xlane.xlu1 %4378  ;;  %vm4386_vm9 = vweird.f32 %v5457_v51 }
0x1bb3   : > { %v4418_v62 = vsel %vm4417_vm4, %v5455_v43, %v4414_v18  ;;  %v4396_v63 = vmul.f32 %v5459_v57, %v4373_v44  ;;  %5460 = vrcp.f32 %v4379_v60  ;;  %vm4401_vm11 = vweird.f32 %v5459_v57  ;;  %vm4387_vm12 = vmor %vm4385_vm0, %vm4386_vm9 }
0x1bb4   : > { %v4423_v0 = vsel %vm4420_vm10, %v4422_v58, %v4418_v62  ;;  %v4382_v1 = vsub.f32 1.0, %v4381_v59  ;;  %vm4402_vm2 = vmor %vm4400_vm13, %vm4401_vm11  ;;  %v4436_v21 = vand.u32 2147483648, %v4379_v60  ;;  %v4434_v23 = vand.u32 2147483647, %v4379_v60 }
0x1bb5   : > { %v4397_v4 = vsub.f32 1.0, %v4396_v63  ;;  %v4424_v50 = vmul.f32 %v7343_v5, %v4423_v0  ;;  %v4407_v5 = vor.u32 1.1754944e-38, %v4406_v56  ;;  %vm4430_vm4 = vweird.f32 %v4379_v60 }
0x1bb6   : > { %v4383_v53 = vmul.f32 %v5457_v51, %v4382_v1  ;;  %v4437_v26 = vor.u32 1.1754944e-38, %v4436_v21  ;;  %vm4435_vm9 = vcmp.eq.f32.partialorder %v4434_v23, 8.507059e+37 }
0x1bb7   : > { %v4398_v52 = vmul.f32 %v5459_v57, %v4397_v4  ;;  %5239 = vmatmul.msk.f32.vlgmr.msrb.gmra.mxu2 %vm1096_vm8, %v4424_v50 }
0x1bb8   : > { %v4384_v11 = vadd.f32 %v5457_v51, %v4383_v53 }
0x1bb9   : > { %v5461_v12 = vpop.eup %5460  ;;  %v4399_v13 = vadd.f32 %v5459_v57, %v4398_v52 }
0x1bba   : > { %v4388_v14 = vsel %vm4387_vm12, %v5457_v51, %v4384_v11  ;;  %v4426_v15 = vmul.f32 %v5461_v12, %v4379_v60  ;;  %vm4431_vm3 = vweird.f32 %v5461_v12 }
0x1bbb   : > { %v4393_v16 = vsel %vm4390_vm1, %v4392_v42, %v4388_v14  ;;  %v4403_v17 = vsel %vm4402_vm2, %v5459_v57, %v4399_v13  ;;  %vm4432_vm10 = vmor %vm4430_vm4, %vm4431_vm3 }
0x1bbc   : > { %v4408_v19 = vsel %vm4405_vm7, %v4407_v5, %v4403_v17  ;;  %v4427_v48 = vsub.f32 1.0, %v4426_v15  ;;  %v4394_v20 = vmul.f32 %v7347_v25, %v4393_v16 }
0x1bbd   : > { %v4409_v6 = vmul.f32 %v7349_v10, %v4408_v19 }
0x1bbe   : > { %v4428_v22 = vmul.f32 %v5461_v12, %v4427_v48  ;;  %5237 = vmatmul.msk.f32.vlgmr.msrb.gmra.mxu0 %vm1096_vm8, %v4394_v20 }
0x1bbf   : > { %5238 = vmatmul.msk.f32.vlgmr.msra.gmra.mxu1 %vm1096_vm8, %v4409_v6 }
0x1bc0   : > { %v4429_v24 = vadd.f32 %v5461_v12, %v4428_v22 }
0x1bc2   : > { %v4433_v27 = vsel %vm4432_vm10, %v5461_v12, %v4429_v24 }
0x1bc3   : > { %v4438_v29 = vsel %vm4435_vm9, %v4437_v26, %v4433_v27 }
0x1bc4   : > { %v4439_v30 = vmul.f32 %v7355_v28, %v4438_v29 }
0x1bc6   : > { %5240 = vmatmul.msk.f32.vlgmr.msrb.gmra.mxu3 %vm1096_vm8, %v4439_v30 }
0x1c3a   : > { %v4506_v10 = vpop.f32.mrf.mxu2 }
0x1c3b   : > { %v4460_v25 = vpop.f32.mrf.mxu0  ;;  %v4532_v32 = vrot.slane %v4506_v10, 4 }
0x1c3c   : > { %v4534_v31 = vrot.slane %v4460_v25, 4  ;;  %v4483_v33 = vpop.f32.mrf.mxu1 }
0x1c3d   : > { %v4533_v34 = vsel %vm629_vm5, %v4532_v32, %v4460_v25  ;;  %v4546_v37 = vrot.slane %v4483_v33, 4 }
0x1c3e   : > { %v4535_v2 = vsel %vm629_vm5, %v4506_v10, %v4534_v31  ;;  %v4539_v38 = vperm.slane %v4533_v34, %v5752_v54  ;;  %v5246_v34 = vld [vmem:[%s7728_s4 + $0xe8] sm:$0xff] }
0x1c3f   : > { %v4543_v35 = vperm.slane %v4535_v2, %v5752_v54 }
0x1c40   : > { %v4558_v44 = vrot.slane %v4539_v38, 4 }
0x1c41   : > { %v4570_v43 = vrot.slane %v4543_v35, 4 }
0x1c49   : > { %v4529_v39 = vpop.f32.mrf.mxu3 }
0x1c4a   : > { %v4544_v41 = vrot.slane %v4529_v39, 4  ;;  %v4547_v28 = vsel %vm629_vm5, %v4529_v39, %v4546_v37  ;;  %v5244_v37 = vld [vmem:[%s7728_s4 + $0xd8] sm:$0xff]  ;;  %v5242_v39 = vld [vmem:[%s7728_s4 + $0xc8] sm:$0xff] }
0x1c4b   : > { %v4555_v45 = vperm.slane %v4547_v28, %v5752_v54 }
0x1c4c   : > { %v4545_v46 = vsel %vm629_vm5, %v4544_v41, %v4483_v33  ;;  %v5248_v33 = vld [vmem:[%s7728_s4 + $0xf8] sm:$0xff]  ;;  %v5241_v41 = vld [vmem:[%s7728_s4 + $0xc0] sm:$0xff] }
0x1c4d   : > { %v4551_v36 = vperm.slane %v4545_v46, %v5752_v54  ;;  %v4568_v47 = vrot.slane %v4555_v45, 4  ;;  %v4571_v49 = vsel %vm629_vm5, %v4555_v45, %v4570_v43  ;;  %4679 = vmatpush.msra.mxu0 %v5248_v33 }
0x1c4e   : > { %v4579_v40 = vperm.slane %v4571_v49, %v5756_v61 }
0x1c4f   : > { %v4556_v51 = vrot.slane %v4551_v36, 4  ;;  %v4559_v18 = vsel %vm629_vm5, %v4551_v36, %v4558_v44  ;;  %v4569_v57 = vsel %vm629_vm5, %v4568_v47, %v4543_v35  ;;  %v5245_v35 = vld [vmem:[%s7728_s4 + $0xe0] sm:$0xff] }
0x1c50   : > { %v4567_v58 = vperm.slane %v4559_v18, %v5756_v61  ;;  %v4575_v59 = vperm.slane %v4569_v57, %v5756_v61  ;;  %v4586_v60 = vrot.slane %v4579_v40, 4  ;;  %v5375_v47 = vld [vmem:[%s7729_s5 + $0x3] ss:$0 sm:$0xff] }
0x1c51   : > { %v4557_v62 = vsel %vm629_vm5, %v4556_v51, %v4539_v38  ;;  %v5243_v38 = vld [vmem:[%s7728_s4 + $0xd0] sm:$0xff] }
0x1c52   : > { %v4563_v63 = vperm.slane %v4557_v62, %v5756_v61  ;;  %v4582_v0 = vrot.slane %v4567_v58, 4  ;;  %v4584_v1 = vrot.slane %v4575_v59, 4  ;;  %v4587_v3 = vsel %vm629_vm5, 0.0, %v4586_v60 }
0x1c53   : > { %v4599_v4 = vsel %vm629_vm5, %v4586_v60, %v4575_v59  ;;  %v4604_v50 = vrot.slane %v4587_v3, 4  ;;  %v5260_v3 = vld [vmem:[%s7732_s8 + $0x1d0] sm:$0xff] }
0x1c54   : > { %v4580_v53 = vrot.slane %v4563_v63, 4  ;;  %v4583_v55 = vsel %vm629_vm5, 0.0, %v4582_v0  ;;  %v4585_v56 = vsel %vm629_vm5, 0.0, %v4584_v1  ;;  %v4603_v52 = vperm.slane %v4599_v4, %v5752_v54  ;;  %v5263_v1 = vld [vmem:[%s7732_s8 + $0x1e8] sm:$0xff]  ;;  %v5261_v4 = vld [vmem:[%s7732_s8 + $0x1d8] sm:$0xff] }
0x1c55   : > { %v4593_v9 = vrot.slane %v4583_v55, 4  ;;  %v4588_v11 = vsel %vm629_vm5, %v4582_v0, %v4563_v63  ;;  %v4605_v12 = vsel %vm629_vm5, %v4604_v50, %v4585_v56  ;;  %v5265_v63 = vld [vmem:[%s7732_s8 + $0x1f8] sm:$0xff]  ;;  %v5262_v0 = vld [vmem:[%s7732_s8 + $0x1e0] sm:$0xff]  ;;  %v5256_v55 = vld [vmem:[%s7732_s8 + $0x1b0] sm:$0xff] }
0x1c56   : > { %v4581_v42 = vsel %vm629_vm5, 0.0, %v4580_v53  ;;  %v4592_v13 = vperm.slane %v4588_v11, %v5752_v54  ;;  %v4609_v14 = vperm.slane %v4605_v12, %v5752_v54  ;;  %v4624_v5 = vrot.slane %v4603_v52, 4  ;;  %4775 = vmatpush.msra.mxu2 %v5265_v63  ;;  %v5258_v50 = vld [vmem:[%s7732_s8 + $0x1c0] sm:$0xff]  ;;  %v5259_v53 = vld [vmem:[%s7732_s8 + $0x1c8] sm:$0xff]  ;;  %v5257_v56 = vld [vmem:[%s7732_s8 + $0x1b8] sm:$0xff] }
0x1c57   : > { %v4594_v15 = vsel %vm629_vm5, %v4593_v9, %v4581_v42  ;;  %v5255_v9 = vld [vmem:[%s7732_s8 + $0x1a8] sm:$0xff]  ;;  %v5252_v11 = vld [vmem:[%s7732_s8 + $0x190] sm:$0xff]  ;;  %v5253_v12 = vld [vmem:[%s7732_s8 + $0x198] sm:$0xff] }
0x1c58   : > { %v4598_v16 = vperm.slane %v4594_v15, %v5752_v54  ;;  %v4612_v17 = vrot.slane %v4592_v13, 4  ;;  %v4625_v19 = vsel %vm629_vm5, %v4609_v14, %v4624_v5  ;;  %v4622_v48 = vrot.slane %v4609_v14, 4  ;;  %4776 = vmatpush.msra.mxu2 %v5263_v1  ;;  %v5250_v42 = vld [vmem:[%s7732_s8 + $0x180] sm:$0xff]  ;;  %v5284_v14 = vld [vmem:[%s7734_s10 + $0x378] sm:$0xff]  ;;  %v5283_v5 = vld [vmem:[%s7734_s10 + $0x370] sm:$0xff] }
0x1c59   : > { %v4633_v20 = vperm.slane %v4625_v19, %v5756_v61  ;;  %v5300_v15 = vld [vmem:[%s7734_s10 + $0x3f8] sm:$0xff]  ;;  %4824 = vmatpush.msra.mxu3 %v5284_v14  ;;  %v5282_v19 = vld [vmem:[%s7734_s10 + $0x368] sm:$0xff]  ;;  %v5266_v63 = vld [vmem:[%s7733_s9 + $0x3] ss:$4 sm:$0x3] }
0x1c5a   : > { %v4613_v21 = vsel %vm629_vm5, %v4598_v16, %v4612_v17  ;;  %v4610_v6 = vrot.slane %v4598_v16, 4  ;;  %v4623_v22 = vsel %vm629_vm5, %v4622_v48, %v4603_v52  ;;  %4777 = vmatpush.msra.mxu2 %v5261_v4  ;;  %v5254_v52 = vld [vmem:[%s7732_s8 + $0x1a0] sm:$0xff]  ;;  %v5299_v16 = vld [vmem:[%s7734_s10 + $0x3f0] sm:$0xff]  ;;  %v5298_v48 = vld [vmem:[%s7734_s10 + $0x3e8] sm:$0xff] }
0x1c5b   : > { %v4621_v23 = vperm.slane %v4613_v21, %v5756_v61  ;;  %v4638_v24 = vrot.slane %v4633_v20, 4  ;;  %v4629_v26 = vperm.slane %v4623_v22, %v5756_v61  ;;  %4825 = vmatpush.msra.mxu3 %v5283_v5  ;;  %v5281_v21 = vld [vmem:[%s7734_s10 + $0x360] sm:$0xff] }
0x1c5c   : > { %v4611_v27 = vsel %vm629_vm5, %v4610_v6, %v4592_v13  ;;  %4778 = vmatpush.msra.mxu2 %v5259_v53  ;;  %v5251_v13 = vld [vmem:[%s7732_s8 + $0x188] sm:$0xff]  ;;  %v5297_v6 = vld [vmem:[%s7734_s10 + $0x3e0] sm:$0xff] }
0x1c5d   : > { %v4639_v54 = vsel %vm629_vm5, %v4638_v24, %v4621_v23  ;;  %v4640_v29 = vrot.slane %v4621_v23, 4  ;;  %v4617_v30 = vperm.slane %v4611_v27, %v5756_v61  ;;  %v4634_v25 = vrot.slane %v4629_v26, 4  ;;  %v5247_v61 = vld [vmem:[%s7728_s4 + $0xf0] sm:$0xff]  ;;  %4826 = vmatpush.msra.mxu3 %v5282_v19  ;;  %v5280_v23 = vld [vmem:[%s7734_s10 + $0x358] sm:$0xff] }
0x1c5e   : > { %4647 = vrot.lane.b32.xlu0 %v4639_v54, %s7786_s29  ;;  %4680 = vmatpush.msra.mxu0 %v5247_v61  ;;  %v5296_v24 = vld [vmem:[%s7734_s10 + $0x3d8] sm:$0xff]  ;;  %v5295_v27 = vld [vmem:[%s7734_s10 + $0x3d0] sm:$0xff]  ;;  %v5278_v54 = vld [vmem:[%s7734_s10 + $0x348] sm:$0xff]  ;;  %s7809_s29 = sld [smem:[#allocation13_spill]] }
0x1c5f   : > { %v4641_v10 = vsel %vm629_vm5, %v4633_v20, %v4640_v29  ;;  %v4636_v31 = vrot.slane %v4617_v30, 4  ;;  %v4635_v32 = vsel %vm629_vm5, %v4634_v25, %v4617_v30  ;;  %4779 = vmatpush.msra.mxu2 %v5257_v56  ;;  %4827 = vmatpush.msra.mxu3 %v5281_v21  ;;  %v5294_v29 = vld [vmem:[%s7734_s10 + $0x3c8] sm:$0xff]  ;;  %v5277_v30 = vld [vmem:[%s7734_s10 + $0x340] sm:$0xff]  ;;  %v5275_v61 = vld [vmem:[%s7734_s10 + $0x330] sm:$0xff] }
0x1c60   : > { %4651 = vrot.lane.b32.xlu2 %v4641_v10, %s7787_s28  ;;  %4681 = vmatpush.msra.mxu0 %v5246_v34  ;;  %v5293_v25 = vld [vmem:[%s7734_s10 + $0x3c0] sm:$0xff]  ;;  %v5291_v34 = vld [vmem:[%s7734_s10 + $0x3b0] sm:$0xff]  ;;  %s7810_s28 = sld [smem:[#allocation14_spill]] }
0x1c61   : > { %v4637_v2 = vsel %vm629_vm5, %v4629_v26, %v4636_v31  ;;  %vm7802_vm5 = vcmask 523264   ;;  %4780 = vmatpush.msra.mxu2 %v5255_v9  ;;  %v5279_v26 = vld [vmem:[%s7734_s10 + $0x350] sm:$0xff]  ;;  %4828 = vmatpush.msra.mxu3 %v5280_v23  ;;  %v4901_v21 = vld [vmem:[%s7738_s14 + $0x20] sm:$0xff]  ;;  %v4898_v23 = vld [vmem:[%s7738_s14 + $0x8] sm:$0xff] }
0x1c62   : > { %4643 = vrot.lane.b32.xlu1 %v4637_v2, %s7788_s26  ;;  %4682 = vmatpush.msra.mxu0 %v5245_v35  ;;  %vm7803_vm8 = vmmov %vm7802_vm5  ;;  %v5292_v2 = vld [vmem:[%s7734_s10 + $0x3b8] sm:$0xff]  ;;  %s510_s26 = sand.u32 1, %s5521_s22  }
0x1c63   : > { %4781 = vmatpush.msra.mxu2 %v5253_v12  ;;  %4829 = vmatpush.msra.mxu3 %v5279_v26  ;;  %vm7805_vm0 = vmmov %vm7802_vm5  ;;  %s5012_s16 = sshll.u32 %s510_s26, 3  ;;  %s4934_s12 = scalar_lea.sflag [#allocation3], %s510_s26 }
0x1c64   : > { %4683 = vmatpush.msra.mxu0 %v5244_v37  ;;  %v5274_v37 = vld [vmem:[%s7734_s10 + $0x328] sm:$0xff]  ;;  %vm7806_vm12 = vmmov %vm7805_vm0  ;;  %s512_s19 = scalar_lea.vmem [#allocation2], %s5012_s16 }
0x1c65   : > { %4782 = vmatpush.msra.mxu2 %v5251_v13  ;;  %4830 = vmatpush.msra.mxu3 %v5278_v54  ;;  %vm7807_vm13 = vmmov %vm7805_vm0  ;;  %s4946_s20 = sshll.u32 %s512_s19, 4  ;;  %s4947_s20 = int_to_ptr.vmem [resolvable:$true] %s4946_s20 }
0x1c66   : > { %4684 = vmatpush.msra.mxu0 %v5243_v38  ;;  %vm7808_vm1 = vmmov %vm7805_vm0 }
0x1c67   : > { %4831 = vmatpush.msra.mxu3 %v5277_v30  ;;  %vm7811_vm4 = vmmov %vm7805_vm0 }
0x1c68   : > { %4685 = vmatpush.msra.mxu0 %v5242_v39  ;;  %v5273_v39 = vld [vmem:[%s7734_s10 + $0x320] sm:$0xff] }
0x1c6a   : > { %4686 = vmatpush.msra.mxu0 %v5241_v41 }
0x1c6c   : > { %4844 = vmatpush.msrb.mxu0 %v5300_v15 }
0x1c6e   : > { %4845 = vmatpush.msrb.mxu0 %v5299_v16 }
0x1c70   : > { %4846 = vmatpush.msrb.mxu0 %v5298_v48  ;;  %v4904_v48 = vld [vmem:[%s7738_s14 + $0x38] sm:$0xff] }
0x1c72   : > { %4847 = vmatpush.msrb.mxu0 %v5297_v6  ;;  %v4900_v6 = vld [vmem:[%s7738_s14 + $0x18] sm:$0xff] }
0x1c74   : > { %4848 = vmatpush.msrb.mxu0 %v5296_v24  ;;  %v4897_v24 = vld [vmem:[%s7738_s14] sm:$0xff] }
0x1c76   : > { %4849 = vmatpush.msrb.mxu0 %v5295_v27 }
0x1c78   : > { %4850 = vmatpush.msrb.mxu0 %v5294_v29 }
0x1c7a   : > { %4851 = vmatpush.msrb.mxu0 %v5293_v25 }
0x1c7c   : > { %4852 = vmatpush.msrb.mxu0 %v5292_v2  ;;  %v5379_v2 = vld [vmem:[%s7809_s29] ss:$0 sm:$0xff]  ;;  %s4948_s29 = sshll.u32 %s4944_s24, 4  ;;  %s4949_s29 = int_to_ptr.hbm [resolvable:$true] %s4948_s29 }
0x1c7d   : > { %s5481_s13 = sshra.s32 %s4949_s29, 4  ;;  %s5482_s13 = int_to_ptr.hbm [resolvable:$true] %s5481_s13 }
0x1c7e   : > { %4853 = vmatpush.msrb.mxu0 %v5291_v34  ;;  %s5483_s25 = scalar_lea.hbm %s5482_s13, 8  ;;  %p5488_p0 = scmp.lt.s32.totalorder %s5482_s13, %s7812_s27 }
0x1c7f   : > { %p5484_p11 = scmp.ne.s32.totalorder %s5482_s13, %s5483_s25  ;;  %p5489_p1 = scmp.lt.s32.totalorder %s5487_s30, %s5483_s25 }
0x1c81   : > { %p5485_p12 = pnand %p5484_p11, %p5664_p5  ;;  %p5490_p2 = por %p5489_p1, %p5488_p0 }
0x1c83   : > { %p5486_p13 = pneg %p5485_p12 }
0x1c85   : > { %p5491_p3 = pnand %p5490_p2, %p5486_p13 }
0x1cba   : > { %v4652_v46 = vpop.permute.xlu2 %4651 }
0x1cd0   : > { %v4648_v43 = vpop.permute.xlu0 %4647 }
0x1cd4   : > { %v4644_v28 = vpop.permute.xlu1 %4643 }
0x1cd5   : > { %v4654_v45 = vsel %vm981_vm6, %v4635_v32, %v4644_v28  ;;  %vm7804_vm6 = vmmov %vm7802_vm5  ;;  %v5276_v32 = vld [vmem:[%s7734_s10 + $0x338] sm:$0xff] }
0x1cd6   : > { %v4655_v44 = vsel %vm1408_vm14, %v4654_v45, %v4648_v43  ;;  %4832 = vmatpush.msra.mxu3 %v5276_v32  ;;  %v5272_v28 = vld [vmem:[%s7734_s10 + $0x318] sm:$0xff]  ;;  %v5376_v43 = vld [vmem:[%s7730_s6 + $0x3] ss:$0 sm:$0xff] }
0x1cd7   : > { %v4656_v36 = vsel %vm1410_vm15, %v4655_v44, %v4652_v46  ;;  %v5377_v44 = vld [vmem:[%s7731_s7 + $0x3] ss:$0 sm:$0xff] }
0x1cd8   : > { %5249 = vmatmul.msk.f32.vlgmr.msra.gmra.mxu0 %vm7802_vm5, %v4656_v36  ;;  %4833 = vmatpush.msra.mxu3 %v5275_v61 }
0x1cda   : > { %4834 = vmatpush.msra.mxu3 %v5274_v37  ;;  %v5381_v37 = vld [vmem:[%s7814_s23] ss:$0 sm:$0xff] }
0x1cdc   : > { %4835 = vmatpush.msra.mxu3 %v5273_v39 }
0x1cde   : > { %4836 = vmatpush.msra.mxu3 %v5272_v28 }
0x1d55   : > { %v4688_v49 = vpop.f32.mrf.mxu0 }
0x1d56   : > { %v4689_v40 = vadd.f32 %v5375_v47, %v4688_v49  ;;  %v5271_v49 = vld [vmem:[%s7734_s10 + $0x310] sm:$0xff] }
0x1d57   : > { %4837 = vmatpush.msra.mxu3 %v5271_v49 }
0x1d58   : > { %v7482_v51 = vadd.f32 %v4689_v40, %v7169_v7  ;;  %v5264_v7 = vld [vmem:[%s7732_s8 + $0x1f0] sm:$0xff]  ;;  %v5290_v40 = vld [vmem:[%s7734_s10 + $0x3a8] sm:$0xff] }
0x1d59   : > { %4755 = vmatpush.msrb.mxu1 %v5264_v7  ;;  %4854 = vmatpush.msrb.mxu0 %v5290_v40  ;;  %v5285_v7 = vld [vmem:[%s7734_s10 + $0x380] sm:$0xff] }
0x1d5a   : > { %v4694_v18 = vsel %vm7803_vm8, %v7482_v51, 0.0 }
0x1d5b   : > { %4695 = vadd.xlane.f32.xlu0 %v4694_v18  ;;  %4756 = vmatpush.msrb.mxu1 %v5262_v0  ;;  %v5270_v18 = vld [vmem:[%s7734_s10 + $0x308] sm:$0xff]  ;;  %v4740_v0 = vperm.slane %v5266_v63, 0 }
0x1d5c   : > { %4838 = vmatpush.msra.mxu3 %v5270_v18 }
0x1d5d   : > { %4757 = vmatpush.msrb.mxu1 %v5260_v3 }
0x1d5f   : > { %4758 = vmatpush.msrb.mxu1 %v5258_v50  ;;  %v4741_v50 = vperm.slane %v5266_v63, 1 }
0x1d61   : > { %4759 = vmatpush.msrb.mxu1 %v5256_v55 }
0x1d63   : > { %4760 = vmatpush.msrb.mxu1 %v5254_v52  ;;  %v5378_v52 = vld [vmem:[%s7735_s11 + $0x3] ss:$0 sm:$0xff] }
0x1d65   : > { %4761 = vmatpush.msrb.mxu1 %v5252_v11 }
0x1d67   : > { %4762 = vmatpush.msrb.mxu1 %v5250_v42 }
0x1d69   : > { %4920 = vmatpush.msra.mxu1 %v4904_v48 }
0x1dce   : > { %v4696_v57 = vpop.xlane.xlu0 %4695 }
0x1dcf   : > { %v4697_v58 = vmul.f32 %v4696_v57, %v5683_v8  ;;  %v5289_v57 = vld [vmem:[%s7734_s10 + $0x3a0] sm:$0xff] }
0x1dd0   : > { %4855 = vmatpush.msrb.mxu0 %v5289_v57 }
0x1dd1   : > { %v7488_v59 = vsub.f32 %v7482_v51, %v4697_v58  ;;  %v5269_v58 = vld [vmem:[%s7734_s10 + $0x300] sm:$0xff] }
0x1dd2   : > { %4839 = vmatpush.msra.mxu3 %v5269_v58 }
0x1dd3   : > { %v4699_v60 = vmul.f32 %v7488_v59, %v7488_v59 }
0x1dd5   : > { %v4700_v62 = vsel %vm7804_vm6, %v4699_v60, 0.0  ;;  %v5287_v60 = vld [vmem:[%s7734_s10 + $0x390] sm:$0xff] }
0x1dd6   : > { %4701 = vadd.xlane.f32.xlu1 %v4700_v62  ;;  %v5286_v62 = vld [vmem:[%s7734_s10 + $0x388] sm:$0xff] }
0x1e49   : > { %v4702_v17 = vpop.xlane.xlu1 %4701 }
0x1e4a   : > { %v4703_v20 = vmul.f32 %v4702_v17, %v5683_v8 }
0x1e4c   : > { %v4704_v22 = vadd.f32 1e-05, %v4703_v20  ;;  %v4902_v20 = vld [vmem:[%s7738_s14 + $0x28] sm:$0xff] }
0x1e4e   : > { %5462 = vrsqrt.f32 %v4704_v22  ;;  %vm4711_vm15 = vweird.f32 %v4704_v22 }
0x1e54   : > { %v5463_v10 = vpop.eup %5462 }
0x1e55   : > { %v4706_v31 = vmul.f32 %v5463_v10, %v4704_v22  ;;  %vm4712_vm14 = vweird.f32 %v5463_v10  ;;  %v4899_v22 = vld [vmem:[%s7738_s14 + $0x10] sm:$0xff] }
0x1e56   : > { %vm4713_vm11 = vmor %vm4711_vm15, %vm4712_vm14 }
0x1e57   : > { %v4707_v33 = vmul.f32 %v5463_v10, %v4706_v31 }
0x1e59   : > { %v4708_v35 = vmul.f32 0.5, %v4707_v33 }
0x1e5b   : > { %v4709_v38 = vsub.f32 1.5, %v4708_v35 }
0x1e5d   : > { %v4710_v41 = vmul.f32 %v5463_v10, %v4709_v38 }
0x1e5f   : > { %v4714_v45 = vsel %vm4713_vm11, %v5463_v10, %v4710_v41 }
0x1e60   : > { %v4715_v46 = vmul.f32 %v4714_v45, %v7488_v59  ;;  %v5288_v59 = vld [vmem:[%s7734_s10 + $0x398] sm:$0xff] }
0x1e61   : > { %4856 = vmatpush.msrb.mxu0 %v5288_v59 }
0x1e62   : > { %v4717_v36 = vmul.f32 %v5376_v43, %v4715_v46 }
0x1e63   : > { %4857 = vmatpush.msrb.mxu0 %v5287_v60 }
0x1e64   : > { %v4719_v47 = vadd.f32 %v5377_v44, %v4717_v36 }
0x1e65   : > { %4858 = vmatpush.msrb.mxu0 %v5286_v62 }
0x1e66   : > { %5267 = vmatmul.msk.f32.vlgmr.msrb.gmra.mxu1 %vm7805_vm0, %v4719_v47  ;;  %5268 = vmatmul.msk.f32.vlgmr.msra.gmra.mxu2 %vm7806_vm12, %v4719_v47 }
0x1e67   : > { %4859 = vmatpush.msrb.mxu0 %v5285_v7 }
0x1ee3   : > { %v4764_v1 = vpop.f32.mrf.mxu1 }
0x1ee4   : > { %v4765_v3 = vadd.f32 %v4764_v1, %v4740_v0 }
0x1ee6   : > { %v4787_v4 = vmax.f32 %v4765_v3, 0.0 }
0x1ee8   : > { %4840 = vmatmul.f32.vlgmr.msra.gmra.mxu3 %v4787_v4 }
0x1ee9   : > { %v4784_v53 = vpop.f32.mrf.mxu2 }
0x1eea   : > { %v4785_v55 = vadd.f32 %v4784_v53, %v4741_v50 }
0x1eec   : > { %v4788_v56 = vmax.f32 %v4785_v55, 0.0 }
0x1eee   : > { %4860 = vmatmul.f32.vlgmr.msrb.gmra.mxu0 %v4788_v56 }
0x1f6b   : > { %v4841_v9 = vpop.f32.mrf.mxu3  ;;  %v4861_v12 = vpop.f32.mrf.mxu0 }
0x1f6c   : > { %v4842_v11 = vadd.f32 %v5378_v52, %v4841_v9 }
0x1f6e   : > { %v4862_v42 = vadd.f32 %v4861_v12, %v4842_v11 }
0x1f70   : > { %v4864_v13 = vadd.f32 %v4862_v42, %v7482_v51  ;;  %v4903_v51 = vld [vmem:[%s7738_s14 + $0x30] sm:$0xff] }
0x1f71   : > { %4921 = vmatpush.msra.mxu1 %v4903_v51 }
0x1f72   : > { %v4867_v14 = vsel %vm7807_vm13, %v4864_v13, 0.0 }
0x1f73   : > { %4868 = vadd.xlane.f32.xlu2 %v4867_v14  ;;  %4922 = vmatpush.msra.mxu1 %v4902_v20 }
0x1f75   : > { %4923 = vmatpush.msra.mxu1 %v4901_v21 }
0x1f77   : > { %4924 = vmatpush.msra.mxu1 %v4900_v6 }
0x1f79   : > { %4925 = vmatpush.msra.mxu1 %v4899_v22 }
0x1f7b   : > { %4926 = vmatpush.msra.mxu1 %v4898_v23 }
0x1f7d   : > { %4927 = vmatpush.msra.mxu1 %v4897_v24 }
0x1fe6   : > { %v4869_v5 = vpop.xlane.xlu2 %4868 }
0x1fe7   : > { %v4870_v15 = vmul.f32 %v4869_v5, %v5683_v8 }
0x1fe9   : > { %v4871_v16 = vsub.f32 %v4864_v13, %v4870_v15 }
0x1feb   : > { %v4872_v17 = vmul.f32 %v4871_v16, %v4871_v16 }
0x1fed   : > { %v4873_v19 = vsel %vm7808_vm1, %v4872_v17, 0.0 }
0x1fee   : > { %4874 = vadd.xlane.f32.xlu0 %v4873_v19 }
0x2061   : > { %v4875_v26 = vpop.xlane.xlu0 %4874 }
0x2062   : > { %v4876_v27 = vmul.f32 %v4875_v26, %v5683_v8  ;;  %v5380_v8 = vld [vmem:[%s7810_s28] ss:$0 sm:$0xff] }
0x2064   : > { %v4877_v54 = vadd.f32 1e-05, %v4876_v27 }
0x2066   : > { %5464 = vrsqrt.f32 %v4877_v54  ;;  %vm4884_vm7 = vweird.f32 %v4877_v54 }
0x206c   : > { %v5465_v29 = vpop.eup %5464 }
0x206d   : > { %v4879_v30 = vmul.f32 %v5465_v29, %v4877_v54  ;;  %vm4885_vm2 = vweird.f32 %v5465_v29 }
0x206e   : > { %vm4886_vm3 = vmor %vm4884_vm7, %vm4885_vm2 }
0x206f   : > { %v4880_v25 = vmul.f32 %v5465_v29, %v4879_v30 }
0x2071   : > { %v4881_v10 = vmul.f32 0.5, %v4880_v25 }
0x2073   : > { %v4882_v31 = vsub.f32 1.5, %v4881_v10 }
0x2075   : > { %v4883_v32 = vmul.f32 %v5465_v29, %v4882_v31 }
0x2077   : > { %v4887_v33 = vsel %vm4886_vm3, %v5465_v29, %v4883_v32 }
0x2078   : > { %v4888_v61 = vmul.f32 %v4887_v33, %v4871_v16 }
0x207a   : > { %v4892_v34 = vmul.f32 %v5379_v2, %v4888_v61 }
0x207c   : > { %v4896_v35 = vadd.f32 %v5380_v8, %v4892_v34 }
0x207e   : > { %5301 = vmatmul.msk.f32.vlgmr.msra.gmra.mxu1 %vm7811_vm4, %v4896_v35 }
0x20fb   : > { %v4929_v38 = vpop.f32.mrf.mxu1 }
0x20fc   : > { %v4930_v39 = vadd.f32 %v5381_v37, %v4929_v38 }
0x20fe   : > { %4932 = vst [vmem:[%s512_s19] sm:$0xff] %v4930_v39 }
0x20ff   : > { %5494 = shalt.err (!%p5491_p3)
}
0x2100   : > { %5306 = dma.vmem_to_hbm [thread:$0]  (%p5664_p5), %s4947_s20, 128, %s4949_s29, %s4934_s12  }
0x2101 PF: > { %s7815_s26 = sld [smem:[#allocation7_spill]] }
0x2102   : > { %s7816_s24 = sld [smem:[#allocation5_spill]] }
0x2107   : > { %p5312_p4 = scmp.ge.s32.totalorder %s7815_s26, 2 }
0x2108   : > { %s4960_s18 = sand.u32 1, %s7816_s24  }
0x2109   : > { %p5309_p7 = pnand %p5312_p4, %p5668_p6  ;;  %s4961_s23 = scalar_lea.sflag [#allocation3], %s4960_s18 }
0x210b   : > { %p5310_p8 = pneg %p5309_p7 }
0x210d   : > { %5512 = dma.done.wait (%p5310_p8), %s4961_s23, 128  }
0x210e   : > { %5514 = vsyncadd (%p5310_p8), %s4961_s23, 4294967168  ;;  %s7818_s24 = sld [smem:[#allocation8_spill]]  ;;  %s7821_s21 = smov %s5521_s22 }
0x210f   : > { %s7819_s19 = sld [smem:[#allocation6_spill]] }
0x2110   : > { %s7820_s23 = sld [smem:[#allocation9_spill]] }
0x2114   : > { %p26_p9 = scmp.ge.s32.totalorder %s7818_s24, 4  }
0x2115   : > { %s7822_s22 = smov %s7819_s19 }
0x2116   :  { %28 = sbr.rel (!%p26_p9) target bundleno = 9 (0x9), region = 134 }
0x211b   :  { %4967 = vsyncpa [#allocation3], 1 }
0x211c   :  { %4969 = vsyncpa [#allocation3 + $0x1], 1 }

</bundles_post_ra>
